<compile_context>
chip_gen: v6e
topology: v6e:2x2x1
jax: 0.10.0
libtpu: 0.0.40
codegen_flags: <defaults>
</compile_context>

<pallas_src>
import math
import functools

import numpy as np
import jax
import jax.numpy as jnp
from jax.experimental import pallas as pl
from jax.experimental.pallas import tpu as pltpu

D_MODEL = 32
NHEAD = 2
DIM_FF = 64
INPUT_SIZE = 27
NUM_CLASSES = 2
NUM_LAYERS = 2
HEAD_DIM = D_MODEL // NHEAD
LN_EPS = 1e-5
MAX_LEN = 200                      # PositionalEncoding max_len

# ---------------------------------------------------------------------------
# Parameter slab layout (row offsets inside one f32 (SLAB_ROWS, SLAB_COLS) slab)
# ---------------------------------------------------------------------------
R_IN_W = 0                        # (D, 3D)
R_OUT_W = R_IN_W + D_MODEL        # (D, D)
R_W1 = R_OUT_W + D_MODEL          # (D, F)
R_W2 = R_W1 + D_MODEL             # (F, D)
R_IN_B = R_W2 + DIM_FF            # (1, 3D)
R_OUT_B = R_IN_B + 1
R_LN1_G = R_OUT_B + 1
R_LN1_B = R_LN1_G + 1
R_B1 = R_LN1_B + 1
R_B2 = R_B1 + 1
R_LN2_G = R_B2 + 1
R_LN2_B = R_LN2_G + 1
LAYER_ROWS = R_LN2_B + 1          # 168 rows per encoder layer
R_CLS_W = NUM_LAYERS * LAYER_ROWS          # (D, C) at rows [336, 368)
R_CLS_B = R_CLS_W + D_MODEL                # (1, C) at row 368
R_EMB = R_CLS_B + 1                        # (INPUT_SIZE, D): pre-scaled by sqrt(d_model)
R_PE = R_EMB + INPUT_SIZE                  # (MAX_LEN, D): positional encoding
SLAB_ROWS = ((R_PE + MAX_LEN + 7) // 8) * 8   # 600 rows, sublane aligned
SLAB_COLS = 128                               # lane aligned (>= 3*D_MODEL)


def _layer_norm(x, g, b):
    mu = jnp.mean(x, axis=-1, keepdims=True)
    var = jnp.mean((x - mu) ** 2, axis=-1, keepdims=True)
    return (x - mu) * jax.lax.rsqrt(var + LN_EPS) * g + b


# ---------------------------------------------------------------------------
# Fused Pallas kernel: embed + PE + 2x encoder layer + mean pool + classifier
# ---------------------------------------------------------------------------
def fused_transformer_kernel(idx_ref, w_ref, o_ref, x_scratch, *, batch, seq, mxu_dtype):
    B, S, D, H, Hd, F = batch, seq, D_MODEL, NHEAD, HEAD_DIM, DIM_FF
    scale = 1.0 / math.sqrt(Hd)

    def mm(a, b):
        # MXU matmul; operands optionally bf16 (v5e lever), always f32 accumulation.
        return jnp.dot(a.astype(mxu_dtype), b.astype(mxu_dtype),
                       preferred_element_type=jnp.float32)

    # ---- Embedding gather + positional encoding, fully in-kernel -------------------
    # Rows ordered (s, b): row r = s*B + b (seq-major layout the encoder expects).
    # Embedding rows in the slab are pre-scaled by sqrt(d_model).
    # TODO(synk): dropout (p=0.1) after the PE add is identity here (eval mode);
    # train-mode dropout would need in-kernel pltpu.prng_* masking.
    for s in range(S):
        pe_row = w_ref[R_PE + s: R_PE + s + 1, 0:D]                      # (1, D) static
        for b in range(B):
            tok = idx_ref[b * S + s]                                     # SMEM scalar read
            emb_row = w_ref[pl.ds(R_EMB + tok, 1), 0:D]                  # (1, D) dynamic row
            x_scratch[s * B + b: s * B + b + 1, :] = emb_row + pe_row
    x2 = x_scratch[...]                                                  # (S*B, D) f32

    for layer in range(NUM_LAYERS):                                      # static unroll (2)
        base = layer * LAYER_ROWS
        in_wT = w_ref[base + R_IN_W: base + R_IN_W + D, 0:3 * D]
        out_wT = w_ref[base + R_OUT_W: base + R_OUT_W + D, 0:D]
        w1T = w_ref[base + R_W1: base + R_W1 + D, 0:F]
        w2T = w_ref[base + R_W2: base + R_W2 + F, 0:D]
        in_b = w_ref[base + R_IN_B: base + R_IN_B + 1, 0:3 * D]
        out_b = w_ref[base + R_OUT_B: base + R_OUT_B + 1, 0:D]
        ln1_g = w_ref[base + R_LN1_G: base + R_LN1_G + 1, 0:D]
        ln1_b = w_ref[base + R_LN1_B: base + R_LN1_B + 1, 0:D]
        b1 = w_ref[base + R_B1: base + R_B1 + 1, 0:F]
        b2 = w_ref[base + R_B2: base + R_B2 + 1, 0:D]
        ln2_g = w_ref[base + R_LN2_G: base + R_LN2_G + 1, 0:D]
        ln2_b = w_ref[base + R_LN2_B: base + R_LN2_B + 1, 0:D]

        # QKV projection over all S*B rows in one MXU matmul.
        qkv2 = mm(x2, in_wT) + in_b                                      # (S*B, 3D)
        qkv3 = qkv2.reshape(S, B, 3 * D)

        # Head-batched attention: merge heads into the dot_general batch axis
        # (z = h*S + s), keeping a SINGLE batch dim (known-good Mosaic lowering).
        def head_major(off):
            return jnp.concatenate(
                [qkv3[:, :, off + h * Hd: off + (h + 1) * Hd] for h in range(H)],
                axis=0)                                                  # (H*S, B, Hd)

        q = head_major(0)
        k = head_major(D)
        v = head_major(2 * D)

        sc = jnp.einsum('zbd,zcd->zbc', q, k,
                        preferred_element_type=jnp.float32) * scale      # (H*S, B, B)
        sc = sc - jnp.max(sc, axis=-1, keepdims=True)
        e = jnp.exp(sc)
        p = e * pl.reciprocal(jnp.sum(e, axis=-1, keepdims=True), approx=True)
        oz = jnp.einsum('zbc,zcd->zbd', p, v,
                        preferred_element_type=jnp.float32)               # (H*S, B, Hd)
        o4 = oz.reshape(H, S, B, Hd)
        attn_sbd = jnp.concatenate([o4[h] for h in range(H)], axis=-1)    # (S, B, D), head-contig
        attn2 = mm(attn_sbd.reshape(S * B, D), out_wT) + out_b            # ONE K=D out-proj

        # Post-norm residual blocks (PyTorch default: norm_first=False, relu activation).
        y = _layer_norm(x2 + attn2, ln1_g, ln1_b)
        ff = jnp.maximum(mm(y, w1T) + b1, 0.0)
        ff = mm(ff, w2T) + b2
        x2 = _layer_norm(y + ff, ln2_g, ln2_b)

    # mean over dim=1 (S) of the original (B, S, D) tensor, fused with the classifier.
    # Classifier slices keep all 128 lanes (zero beyond NUM_CLASSES) -> lane-dense store.
    cls_wT = w_ref[R_CLS_W: R_CLS_W + D, :]                              # (D, 128)
    cls_b = w_ref[R_CLS_B: R_CLS_B + 1, :]                               # (1, 128)
    pooled = jnp.mean(x2.reshape(S, B, D), axis=0)                       # (B, D)
    o_ref[...] = mm(pooled, cls_wT) + cls_b                              # (B, 128)


# ---------------------------------------------------------------------------
# One-time parameter packing (host-side numpy; NOT in the per-call jitted path)
# ---------------------------------------------------------------------------
def pack_params(params):
    slab = np.zeros((SLAB_ROWS, SLAB_COLS), np.float32)

    def put(row, a):
        a = np.asarray(a, np.float32)
        if a.ndim == 1:
            a = a[None, :]
        slab[row: row + a.shape[0], : a.shape[1]] = a

    for li, lp in enumerate(params['layers']):
        base = li * LAYER_ROWS
        put(base + R_IN_W, np.asarray(lp['in_w']).T)
        put(base + R_OUT_W, np.asarray(lp['out_w']).T)
        put(base + R_W1, np.asarray(lp['w1']).T)
        put(base + R_W2, np.asarray(lp['w2']).T)
        put(base + R_IN_B, lp['in_b'])
        put(base + R_OUT_B, lp['out_b'])
        put(base + R_LN1_G, lp['ln1_g'])
        put(base + R_LN1_B, lp['ln1_b'])
        put(base + R_B1, lp['b1'])
        put(base + R_B2, lp['b2'])
        put(base + R_LN2_G, lp['ln2_g'])
        put(base + R_LN2_B, lp['ln2_b'])
    put(R_CLS_W, np.asarray(params['cls_w']).T)
    put(R_CLS_B, params['cls_b'])
    # Embedding pre-scaled by sqrt(d_model) once here (free: init-time numpy).
    put(R_EMB, np.asarray(params['emb']) * math.sqrt(D_MODEL))
    put(R_PE, params['pe'])
    return jnp.asarray(slab)


# ---------------------------------------------------------------------------
# Wrapper: single pallas_call per forward (ids scalar-prefetched, slab pre-packed)
# ---------------------------------------------------------------------------
@functools.partial(jax.jit, static_argnames=("mxu_bf16",))
def transformer_classifier_forward(idx, slab, *, mxu_bf16=True):
    B, S = idx.shape
    assert S <= MAX_LEN
    idx_flat = idx.reshape(-1).astype(jnp.int32)          # (B*S,), element (b,s) -> b*S+s

    kernel = functools.partial(
        fused_transformer_kernel, batch=B, seq=S,
        mxu_dtype=jnp.bfloat16 if mxu_bf16 else jnp.float32)

    out = pl.pallas_call(
        kernel,
        out_shape=jax.ShapeDtypeStruct((B, SLAB_COLS), jnp.float32),
        grid_spec=pltpu.PrefetchScalarGridSpec(
            num_scalar_prefetch=1,
            grid=(1,),
            in_specs=[pl.BlockSpec((SLAB_ROWS, SLAB_COLS), lambda i, idx_ref: (0, 0))],
            out_specs=pl.BlockSpec((B, SLAB_COLS), lambda i, idx_ref: (0, 0)),
            scratch_shapes=[pltpu.VMEM((S * B, D_MODEL), jnp.float32)],
        ),
        compiler_params=pltpu.CompilerParams(dimension_semantics=("arbitrary",)),
    )(idx_flat, slab)
    return out[:, :NUM_CLASSES]


# ---------------------------------------------------------------------------
# Parameters / pure-JAX reference (for validation)
# ---------------------------------------------------------------------------
def make_pe(max_len, d_model):
    pos = np.arange(max_len, dtype=np.float32)[:, None]
    div = np.exp(np.arange(0, d_model, 2, dtype=np.float32) * (-math.log(10000.0) / d_model))
    pe = np.zeros((max_len, d_model), dtype=np.float32)
    pe[:, 0::2] = np.sin(pos * div)
    pe[:, 1::2] = np.cos(pos * div)
    return jnp.asarray(pe)


def init_params(key, max_len=MAX_LEN):
    ks = iter(jax.random.split(key, 40))

    def w(shape, scale=0.1):
        return scale * jax.random.normal(next(ks), shape, dtype=jnp.float32)

    params = {
        'emb': w((INPUT_SIZE, D_MODEL), 1.0),
        'pe': make_pe(max_len, D_MODEL),
        'cls_w': w((NUM_CLASSES, D_MODEL)),
        'cls_b': w((NUM_CLASSES,)),
        'layers': [],
    }
    for _ in range(NUM_LAYERS):
        params['layers'].append({
            'in_w': w((3 * D_MODEL, D_MODEL)),
            'in_b': w((3 * D_MODEL,)),
            'out_w': w((D_MODEL, D_MODEL)),
            'out_b': w((D_MODEL,)),
            'ln1_g': jnp.ones((D_MODEL,), jnp.float32),
            'ln1_b': jnp.zeros((D_MODEL,), jnp.float32),
            'w1': w((DIM_FF, D_MODEL)),
            'b1': w((DIM_FF,)),
            'w2': w((D_MODEL, DIM_FF)),
            'b2': w((D_MODEL,)),
            'ln2_g': jnp.ones((D_MODEL,), jnp.float32),
            'ln2_b': jnp.zeros((D_MODEL,), jnp.float32),
        })
    return params


def ref_forward(idx, params):
    """Plain-JAX reference with identical semantics (validation only)."""
    B, S = idx.shape
    h = jnp.take(params['emb'], idx, axis=0) * math.sqrt(D_MODEL)
    h = h + params['pe'][None, :S, :]                      # PositionalEncoding (dropout=id)
    z = jnp.transpose(h, (1, 0, 2))                        # (S, B, D)
    for lp in params['layers']:
        x = z
        qkv = jnp.einsum('sbd,de->sbe', x, lp['in_w'].T) + lp['in_b']
        q, k, v = jnp.split(qkv, 3, axis=-1)

        def heads(t):
            return t.reshape(S, B, NHEAD, HEAD_DIM).transpose(0, 2, 1, 3)

        qh, kh, vh = heads(q), heads(k), heads(v)
        sc = jnp.einsum('shqe,shke->shqk', qh, kh) / math.sqrt(HEAD_DIM)
        p = jax.nn.softmax(sc, axis=-1)
        ao = jnp.einsum('shqk,shke->shqe', p, vh).transpose(0, 2, 1, 3).reshape(S, B, D_MODEL)
        ao = jnp.einsum('sbd,de->sbe', ao, lp['out_w'].T) + lp['out_b']
        x = _layer_norm(x + ao, lp['ln1_g'], lp['ln1_b'])
        ff = jnp.maximum(jnp.einsum('sbd,df->sbf', x, lp['w1'].T) + lp['b1'], 0.0)
        ff = jnp.einsum('sbf,fd->sbd', ff, lp['w2'].T) + lp['b2']
        z = _layer_norm(x + ff, lp['ln2_g'], lp['ln2_b'])
    pooled = jnp.mean(z, axis=0)
    return pooled @ params['cls_w'].T + params['cls_b']


if __name__ == "__main__":
    key = jax.random.PRNGKey(0)
    pkey, dkey = jax.random.split(key)
    params = init_params(pkey)
    slab = pack_params(params)        # packed ONCE at init; reused by every forward call

    B, S = 2, 8
    idx = jax.random.randint(dkey, (B, S), 0, INPUT_SIZE, dtype=jnp.int32)

    with jax.default_matmul_precision("highest"):
        ref = jax.block_until_ready(ref_forward(idx, params))

    # Tight check of the exact-f32 MXU path.
    logits_f32 = jax.block_until_ready(
        transformer_classifier_forward(idx, slab, mxu_bf16=False))
    np.testing.assert_allclose(np.asarray(logits_f32), np.asarray(ref), rtol=1e-2, atol=1e-2)

    # bf16-operand MXU path (v5e lever from the review); looser tolerance for rounding.
    logits_bf16 = jax.block_until_ready(
        transformer_classifier_forward(idx, slab, mxu_bf16=True))
    np.testing.assert_allclose(np.asarray(logits_bf16), np.asarray(ref), rtol=5e-2, atol=5e-2)

    assert logits_f32.shape == (B, NUM_CLASSES)
    print("KERNEL_OK")
</pallas_src>

<mosaic_0001>
module attributes {stable_mosaic.version = 11 : i64} {
  func.func @fused_transformer_kernel(%arg0: i32, %arg1: memref<16xi32, #tpu.memory_space<smem>>, %arg2: memref<600x128xf32, #tpu.memory_space<vmem>>, %arg3: memref<2x128xf32, #tpu.memory_space<vmem>>, %arg4: memref<16x32xf32, #tpu.memory_space<vmem>>) attributes {dimension_semantics = [#tpu.dimension_semantics<arbitrary>], iteration_bounds = array<i64: 1>, scalar_prefetch = 1 : i64, scratch_operands = 1 : i64, tpu.core_type = #tpu.core_type<tc>, window_params = [{pipeline_mode = #tpu.pipeline_mode<synchronous>, transform_indices = @transform_0, window_bounds = array<i64: 600, 128>}, {pipeline_mode = #tpu.pipeline_mode<synchronous>, transform_indices = @transform_1, window_bounds = array<i64: 2, 128>}]} {
    %c396 = arith.constant 396 : index
    %c0 = arith.constant 0 : index
    %0 = vector.load %arg2[%c396, %c0] : memref<600x128xf32, #tpu.memory_space<vmem>>, vector<1x32xf32>
    %c0_0 = arith.constant 0 : index
    %1 = memref.load %arg1[%c0_0] : memref<16xi32, #tpu.memory_space<smem>>
    %c369_i32 = arith.constant 369 : i32
    %2 = arith.addi %c369_i32, %1 : i32
    %3 = arith.index_cast %2 : i32 to index
    %c0_1 = arith.constant 0 : index
    %4 = vector.load %arg2[%3, %c0_1] : memref<600x128xf32, #tpu.memory_space<vmem>>, vector<1x32xf32>
    %5 = arith.addf %4, %0 : vector<1x32xf32>
    %c0_2 = arith.constant 0 : index
    %c0_3 = arith.constant 0 : index
    %6 = vector.load %arg4[%c0_2, %c0_3] : memref<16x32xf32, #tpu.memory_space<vmem>>, vector<1x32xf32>
    tpu.vector_store %arg4[%c0_2, %c0_3], %5 {strides = array<i32>} : memref<16x32xf32, #tpu.memory_space<vmem>>, vector<1x32xf32>,
    %c8 = arith.constant 8 : index
    %7 = memref.load %arg1[%c8] : memref<16xi32, #tpu.memory_space<smem>>
    %c369_i32_4 = arith.constant 369 : i32
    %8 = arith.addi %c369_i32_4, %7 : i32
    %9 = arith.index_cast %8 : i32 to index
    %c0_5 = arith.constant 0 : index
    %10 = vector.load %arg2[%9, %c0_5] : memref<600x128xf32, #tpu.memory_space<vmem>>, vector<1x32xf32>
    %11 = arith.addf %10, %0 : vector<1x32xf32>
    %c1 = arith.constant 1 : index
    %c0_6 = arith.constant 0 : index
    %12 = vector.load %arg4[%c1, %c0_6] : memref<16x32xf32, #tpu.memory_space<vmem>>, vector<1x32xf32>
    tpu.vector_store %arg4[%c1, %c0_6], %11 {strides = array<i32>} : memref<16x32xf32, #tpu.memory_space<vmem>>, vector<1x32xf32>,
    %c397 = arith.constant 397 : index
    %c0_7 = arith.constant 0 : index
    %13 = vector.load %arg2[%c397, %c0_7] : memref<600x128xf32, #tpu.memory_space<vmem>>, vector<1x32xf32>
    %c1_8 = arith.constant 1 : index
    %14 = memref.load %arg1[%c1_8] : memref<16xi32, #tpu.memory_space<smem>>
    %c369_i32_9 = arith.constant 369 : i32
    %15 = arith.addi %c369_i32_9, %14 : i32
    %16 = arith.index_cast %15 : i32 to index
    %c0_10 = arith.constant 0 : index
    %17 = vector.load %arg2[%16, %c0_10] : memref<600x128xf32, #tpu.memory_space<vmem>>, vector<1x32xf32>
    %18 = arith.addf %17, %13 : vector<1x32xf32>
    %c2 = arith.constant 2 : index
    %c0_11 = arith.constant 0 : index
    %19 = vector.load %arg4[%c2, %c0_11] : memref<16x32xf32, #tpu.memory_space<vmem>>, vector<1x32xf32>
    tpu.vector_store %arg4[%c2, %c0_11], %18 {strides = array<i32>} : memref<16x32xf32, #tpu.memory_space<vmem>>, vector<1x32xf32>,
    %c9 = arith.constant 9 : index
    %20 = memref.load %arg1[%c9] : memref<16xi32, #tpu.memory_space<smem>>
    %c369_i32_12 = arith.constant 369 : i32
    %21 = arith.addi %c369_i32_12, %20 : i32
    %22 = arith.index_cast %21 : i32 to index
    %c0_13 = arith.constant 0 : index
    %23 = vector.load %arg2[%22, %c0_13] : memref<600x128xf32, #tpu.memory_space<vmem>>, vector<1x32xf32>
    %24 = arith.addf %23, %13 : vector<1x32xf32>
    %c3 = arith.constant 3 : index
    %c0_14 = arith.constant 0 : index
    %25 = vector.load %arg4[%c3, %c0_14] : memref<16x32xf32, #tpu.memory_space<vmem>>, vector<1x32xf32>
    tpu.vector_store %arg4[%c3, %c0_14], %24 {strides = array<i32>} : memref<16x32xf32, #tpu.memory_space<vmem>>, vector<1x32xf32>,
    %c398 = arith.constant 398 : index
    %c0_15 = arith.constant 0 : index
    %26 = vector.load %arg2[%c398, %c0_15] : memref<600x128xf32, #tpu.memory_space<vmem>>, vector<1x32xf32>
    %c2_16 = arith.constant 2 : index
    %27 = memref.load %arg1[%c2_16] : memref<16xi32, #tpu.memory_space<smem>>
    %c369_i32_17 = arith.constant 369 : i32
    %28 = arith.addi %c369_i32_17, %27 : i32
    %29 = arith.index_cast %28 : i32 to index
    %c0_18 = arith.constant 0 : index
    %30 = vector.load %arg2[%29, %c0_18] : memref<600x128xf32, #tpu.memory_space<vmem>>, vector<1x32xf32>
    %31 = arith.addf %30, %26 : vector<1x32xf32>
    %c4 = arith.constant 4 : index
    %c0_19 = arith.constant 0 : index
    %32 = vector.load %arg4[%c4, %c0_19] : memref<16x32xf32, #tpu.memory_space<vmem>>, vector<1x32xf32>
    tpu.vector_store %arg4[%c4, %c0_19], %31 {strides = array<i32>} : memref<16x32xf32, #tpu.memory_space<vmem>>, vector<1x32xf32>,
    %c10 = arith.constant 10 : index
    %33 = memref.load %arg1[%c10] : memref<16xi32, #tpu.memory_space<smem>>
    %c369_i32_20 = arith.constant 369 : i32
    %34 = arith.addi %c369_i32_20, %33 : i32
    %35 = arith.index_cast %34 : i32 to index
    %c0_21 = arith.constant 0 : index
    %36 = vector.load %arg2[%35, %c0_21] : memref<600x128xf32, #tpu.memory_space<vmem>>, vector<1x32xf32>
    %37 = arith.addf %36, %26 : vector<1x32xf32>
    %c5 = arith.constant 5 : index
    %c0_22 = arith.constant 0 : index
    %38 = vector.load %arg4[%c5, %c0_22] : memref<16x32xf32, #tpu.memory_space<vmem>>, vector<1x32xf32>
    tpu.vector_store %arg4[%c5, %c0_22], %37 {strides = array<i32>} : memref<16x32xf32, #tpu.memory_space<vmem>>, vector<1x32xf32>,
    %c399 = arith.constant 399 : index
    %c0_23 = arith.constant 0 : index
    %39 = vector.load %arg2[%c399, %c0_23] : memref<600x128xf32, #tpu.memory_space<vmem>>, vector<1x32xf32>
    %c3_24 = arith.constant 3 : index
    %40 = memref.load %arg1[%c3_24] : memref<16xi32, #tpu.memory_space<smem>>
    %c369_i32_25 = arith.constant 369 : i32
    %41 = arith.addi %c369_i32_25, %40 : i32
    %42 = arith.index_cast %41 : i32 to index
    %c0_26 = arith.constant 0 : index
    %43 = vector.load %arg2[%42, %c0_26] : memref<600x128xf32, #tpu.memory_space<vmem>>, vector<1x32xf32>
    %44 = arith.addf %43, %39 : vector<1x32xf32>
    %c6 = arith.constant 6 : index
    %c0_27 = arith.constant 0 : index
    %45 = vector.load %arg4[%c6, %c0_27] : memref<16x32xf32, #tpu.memory_space<vmem>>, vector<1x32xf32>
    tpu.vector_store %arg4[%c6, %c0_27], %44 {strides = array<i32>} : memref<16x32xf32, #tpu.memory_space<vmem>>, vector<1x32xf32>,
    %c11 = arith.constant 11 : index
    %46 = memref.load %arg1[%c11] : memref<16xi32, #tpu.memory_space<smem>>
    %c369_i32_28 = arith.constant 369 : i32
    %47 = arith.addi %c369_i32_28, %46 : i32
    %48 = arith.index_cast %47 : i32 to index
    %c0_29 = arith.constant 0 : index
    %49 = vector.load %arg2[%48, %c0_29] : memref<600x128xf32, #tpu.memory_space<vmem>>, vector<1x32xf32>
    %50 = arith.addf %49, %39 : vector<1x32xf32>
    %c7 = arith.constant 7 : index
    %c0_30 = arith.constant 0 : index
    %51 = vector.load %arg4[%c7, %c0_30] : memref<16x32xf32, #tpu.memory_space<vmem>>, vector<1x32xf32>
    tpu.vector_store %arg4[%c7, %c0_30], %50 {strides = array<i32>} : memref<16x32xf32, #tpu.memory_space<vmem>>, vector<1x32xf32>,
    %c400 = arith.constant 400 : index
    %c0_31 = arith.constant 0 : index
    %52 = vector.load %arg2[%c400, %c0_31] : memref<600x128xf32, #tpu.memory_space<vmem>>, vector<1x32xf32>
    %c4_32 = arith.constant 4 : index
    %53 = memref.load %arg1[%c4_32] : memref<16xi32, #tpu.memory_space<smem>>
    %c369_i32_33 = arith.constant 369 : i32
    %54 = arith.addi %c369_i32_33, %53 : i32
    %55 = arith.index_cast %54 : i32 to index
    %c0_34 = arith.constant 0 : index
    %56 = vector.load %arg2[%55, %c0_34] : memref<600x128xf32, #tpu.memory_space<vmem>>, vector<1x32xf32>
    %57 = arith.addf %56, %52 : vector<1x32xf32>
    %c8_35 = arith.constant 8 : index
    %c0_36 = arith.constant 0 : index
    %58 = vector.load %arg4[%c8_35, %c0_36] : memref<16x32xf32, #tpu.memory_space<vmem>>, vector<1x32xf32>
    tpu.vector_store %arg4[%c8_35, %c0_36], %57 {strides = array<i32>} : memref<16x32xf32, #tpu.memory_space<vmem>>, vector<1x32xf32>,
    %c12 = arith.constant 12 : index
    %59 = memref.load %arg1[%c12] : memref<16xi32, #tpu.memory_space<smem>>
    %c369_i32_37 = arith.constant 369 : i32
    %60 = arith.addi %c369_i32_37, %59 : i32
    %61 = arith.index_cast %60 : i32 to index
    %c0_38 = arith.constant 0 : index
    %62 = vector.load %arg2[%61, %c0_38] : memref<600x128xf32, #tpu.memory_space<vmem>>, vector<1x32xf32>
    %63 = arith.addf %62, %52 : vector<1x32xf32>
    %c9_39 = arith.constant 9 : index
    %c0_40 = arith.constant 0 : index
    %64 = vector.load %arg4[%c9_39, %c0_40] : memref<16x32xf32, #tpu.memory_space<vmem>>, vector<1x32xf32>
    tpu.vector_store %arg4[%c9_39, %c0_40], %63 {strides = array<i32>} : memref<16x32xf32, #tpu.memory_space<vmem>>, vector<1x32xf32>,
    %c401 = arith.constant 401 : index
    %c0_41 = arith.constant 0 : index
    %65 = vector.load %arg2[%c401, %c0_41] : memref<600x128xf32, #tpu.memory_space<vmem>>, vector<1x32xf32>
    %c5_42 = arith.constant 5 : index
    %66 = memref.load %arg1[%c5_42] : memref<16xi32, #tpu.memory_space<smem>>
    %c369_i32_43 = arith.constant 369 : i32
    %67 = arith.addi %c369_i32_43, %66 : i32
    %68 = arith.index_cast %67 : i32 to index
    %c0_44 = arith.constant 0 : index
    %69 = vector.load %arg2[%68, %c0_44] : memref<600x128xf32, #tpu.memory_space<vmem>>, vector<1x32xf32>
    %70 = arith.addf %69, %65 : vector<1x32xf32>
    %c10_45 = arith.constant 10 : index
    %c0_46 = arith.constant 0 : index
    %71 = vector.load %arg4[%c10_45, %c0_46] : memref<16x32xf32, #tpu.memory_space<vmem>>, vector<1x32xf32>
    tpu.vector_store %arg4[%c10_45, %c0_46], %70 {strides = array<i32>} : memref<16x32xf32, #tpu.memory_space<vmem>>, vector<1x32xf32>,
    %c13 = arith.constant 13 : index
    %72 = memref.load %arg1[%c13] : memref<16xi32, #tpu.memory_space<smem>>
    %c369_i32_47 = arith.constant 369 : i32
    %73 = arith.addi %c369_i32_47, %72 : i32
    %74 = arith.index_cast %73 : i32 to index
    %c0_48 = arith.constant 0 : index
    %75 = vector.load %arg2[%74, %c0_48] : memref<600x128xf32, #tpu.memory_space<vmem>>, vector<1x32xf32>
    %76 = arith.addf %75, %65 : vector<1x32xf32>
    %c11_49 = arith.constant 11 : index
    %c0_50 = arith.constant 0 : index
    %77 = vector.load %arg4[%c11_49, %c0_50] : memref<16x32xf32, #tpu.memory_space<vmem>>, vector<1x32xf32>
    tpu.vector_store %arg4[%c11_49, %c0_50], %76 {strides = array<i32>} : memref<16x32xf32, #tpu.memory_space<vmem>>, vector<1x32xf32>,
    %c402 = arith.constant 402 : index
    %c0_51 = arith.constant 0 : index
    %78 = vector.load %arg2[%c402, %c0_51] : memref<600x128xf32, #tpu.memory_space<vmem>>, vector<1x32xf32>
    %c6_52 = arith.constant 6 : index
    %79 = memref.load %arg1[%c6_52] : memref<16xi32, #tpu.memory_space<smem>>
    %c369_i32_53 = arith.constant 369 : i32
    %80 = arith.addi %c369_i32_53, %79 : i32
    %81 = arith.index_cast %80 : i32 to index
    %c0_54 = arith.constant 0 : index
    %82 = vector.load %arg2[%81, %c0_54] : memref<600x128xf32, #tpu.memory_space<vmem>>, vector<1x32xf32>
    %83 = arith.addf %82, %78 : vector<1x32xf32>
    %c12_55 = arith.constant 12 : index
    %c0_56 = arith.constant 0 : index
    %84 = vector.load %arg4[%c12_55, %c0_56] : memref<16x32xf32, #tpu.memory_space<vmem>>, vector<1x32xf32>
    tpu.vector_store %arg4[%c12_55, %c0_56], %83 {strides = array<i32>} : memref<16x32xf32, #tpu.memory_space<vmem>>, vector<1x32xf32>,
    %c14 = arith.constant 14 : index
    %85 = memref.load %arg1[%c14] : memref<16xi32, #tpu.memory_space<smem>>
    %c369_i32_57 = arith.constant 369 : i32
    %86 = arith.addi %c369_i32_57, %85 : i32
    %87 = arith.index_cast %86 : i32 to index
    %c0_58 = arith.constant 0 : index
    %88 = vector.load %arg2[%87, %c0_58] : memref<600x128xf32, #tpu.memory_space<vmem>>, vector<1x32xf32>
    %89 = arith.addf %88, %78 : vector<1x32xf32>
    %c13_59 = arith.constant 13 : index
    %c0_60 = arith.constant 0 : index
    %90 = vector.load %arg4[%c13_59, %c0_60] : memref<16x32xf32, #tpu.memory_space<vmem>>, vector<1x32xf32>
    tpu.vector_store %arg4[%c13_59, %c0_60], %89 {strides = array<i32>} : memref<16x32xf32, #tpu.memory_space<vmem>>, vector<1x32xf32>,
    %c403 = arith.constant 403 : index
    %c0_61 = arith.constant 0 : index
    %91 = vector.load %arg2[%c403, %c0_61] : memref<600x128xf32, #tpu.memory_space<vmem>>, vector<1x32xf32>
    %c7_62 = arith.constant 7 : index
    %92 = memref.load %arg1[%c7_62] : memref<16xi32, #tpu.memory_space<smem>>
    %c369_i32_63 = arith.constant 369 : i32
    %93 = arith.addi %c369_i32_63, %92 : i32
    %94 = arith.index_cast %93 : i32 to index
    %c0_64 = arith.constant 0 : index
    %95 = vector.load %arg2[%94, %c0_64] : memref<600x128xf32, #tpu.memory_space<vmem>>, vector<1x32xf32>
    %96 = arith.addf %95, %91 : vector<1x32xf32>
    %c14_65 = arith.constant 14 : index
    %c0_66 = arith.constant 0 : index
    %97 = vector.load %arg4[%c14_65, %c0_66] : memref<16x32xf32, #tpu.memory_space<vmem>>, vector<1x32xf32>
    tpu.vector_store %arg4[%c14_65, %c0_66], %96 {strides = array<i32>} : memref<16x32xf32, #tpu.memory_space<vmem>>, vector<1x32xf32>,
    %c15 = arith.constant 15 : index
    %98 = memref.load %arg1[%c15] : memref<16xi32, #tpu.memory_space<smem>>
    %c369_i32_67 = arith.constant 369 : i32
    %99 = arith.addi %c369_i32_67, %98 : i32
    %100 = arith.index_cast %99 : i32 to index
    %c0_68 = arith.constant 0 : index
    %101 = vector.load %arg2[%100, %c0_68] : memref<600x128xf32, #tpu.memory_space<vmem>>, vector<1x32xf32>
    %102 = arith.addf %101, %91 : vector<1x32xf32>
    %c15_69 = arith.constant 15 : index
    %c0_70 = arith.constant 0 : index
    %103 = vector.load %arg4[%c15_69, %c0_70] : memref<16x32xf32, #tpu.memory_space<vmem>>, vector<1x32xf32>
    tpu.vector_store %arg4[%c15_69, %c0_70], %102 {strides = array<i32>} : memref<16x32xf32, #tpu.memory_space<vmem>>, vector<1x32xf32>,
    %c0_71 = arith.constant 0 : index
    %c0_72 = arith.constant 0 : index
    %104 = vector.load %arg4[%c0_71, %c0_72] : memref<16x32xf32, #tpu.memory_space<vmem>>, vector<16x32xf32>
    %c0_73 = arith.constant 0 : index
    %c0_74 = arith.constant 0 : index
    %105 = vector.load %arg2[%c0_73, %c0_74] : memref<600x128xf32, #tpu.memory_space<vmem>>, vector<32x96xf32>
    %c32 = arith.constant 32 : index
    %c0_75 = arith.constant 0 : index
    %106 = vector.load %arg2[%c32, %c0_75] : memref<600x128xf32, #tpu.memory_space<vmem>>, vector<32x32xf32>
    %c64 = arith.constant 64 : index
    %c0_76 = arith.constant 0 : index
    %107 = vector.load %arg2[%c64, %c0_76] : memref<600x128xf32, #tpu.memory_space<vmem>>, vector<32x64xf32>
    %c96 = arith.constant 96 : index
    %c0_77 = arith.constant 0 : index
    %108 = vector.load %arg2[%c96, %c0_77] : memref<600x128xf32, #tpu.memory_space<vmem>>, vector<64x32xf32>
    %c160 = arith.constant 160 : index
    %c0_78 = arith.constant 0 : index
    %109 = vector.load %arg2[%c160, %c0_78] : memref<600x128xf32, #tpu.memory_space<vmem>>, vector<1x96xf32>
    %c161 = arith.constant 161 : index
    %c0_79 = arith.constant 0 : index
    %110 = vector.load %arg2[%c161, %c0_79] : memref<600x128xf32, #tpu.memory_space<vmem>>, vector<1x32xf32>
    %c162 = arith.constant 162 : index
    %c0_80 = arith.constant 0 : index
    %111 = vector.load %arg2[%c162, %c0_80] : memref<600x128xf32, #tpu.memory_space<vmem>>, vector<1x32xf32>
    %c163 = arith.constant 163 : index
    %c0_81 = arith.constant 0 : index
    %112 = vector.load %arg2[%c163, %c0_81] : memref<600x128xf32, #tpu.memory_space<vmem>>, vector<1x32xf32>
    %c164 = arith.constant 164 : index
    %c0_82 = arith.constant 0 : index
    %113 = vector.load %arg2[%c164, %c0_82] : memref<600x128xf32, #tpu.memory_space<vmem>>, vector<1x64xf32>
    %c165 = arith.constant 165 : index
    %c0_83 = arith.constant 0 : index
    %114 = vector.load %arg2[%c165, %c0_83] : memref<600x128xf32, #tpu.memory_space<vmem>>, vector<1x32xf32>
    %c166 = arith.constant 166 : index
    %c0_84 = arith.constant 0 : index
    %115 = vector.load %arg2[%c166, %c0_84] : memref<600x128xf32, #tpu.memory_space<vmem>>, vector<1x32xf32>
    %c167 = arith.constant 167 : index
    %c0_85 = arith.constant 0 : index
    %116 = vector.load %arg2[%c167, %c0_85] : memref<600x128xf32, #tpu.memory_space<vmem>>, vector<1x32xf32>
    %cst = arith.constant dense<0.000000e+00> : vector<16x96xf32>
    %117 = tpu.matmul %104, %105, %cst {dimension_numbers = #tpu.dot_dimension_numbers<[1], [0], [0], [1], [0, 0, 1, 1], [], []>} : vector<16x32xf32>, vector<32x96xf32>, vector<16x96xf32> -> vector<16x96xf32>
    %118 = vector.broadcast %109 : vector<1x96xf32> to vector<16x96xf32>
    %119 = arith.addf %117, %118 : vector<16x96xf32>
    %120 = vector.shape_cast %119 : vector<16x96xf32> to vector<8x2x96xf32>
    %121 = vector.extract_strided_slice %120 {offsets = [0, 0, 0], sizes = [8, 2, 16], strides = [1, 1, 1]} : vector<8x2x96xf32> to vector<8x2x16xf32>
    %122 = vector.extract_strided_slice %120 {offsets = [0, 0, 16], sizes = [8, 2, 16], strides = [1, 1, 1]} : vector<8x2x96xf32> to vector<8x2x16xf32>
    %123 = tpu.concatenate %121, %122 in 0 : vector<8x2x16xf32>, vector<8x2x16xf32> -> vector<16x2x16xf32>
    %124 = vector.extract_strided_slice %120 {offsets = [0, 0, 32], sizes = [8, 2, 16], strides = [1, 1, 1]} : vector<8x2x96xf32> to vector<8x2x16xf32>
    %125 = vector.extract_strided_slice %120 {offsets = [0, 0, 48], sizes = [8, 2, 16], strides = [1, 1, 1]} : vector<8x2x96xf32> to vector<8x2x16xf32>
    %126 = tpu.concatenate %124, %125 in 0 : vector<8x2x16xf32>, vector<8x2x16xf32> -> vector<16x2x16xf32>
    %127 = vector.extract_strided_slice %120 {offsets = [0, 0, 64], sizes = [8, 2, 16], strides = [1, 1, 1]} : vector<8x2x96xf32> to vector<8x2x16xf32>
    %128 = vector.extract_strided_slice %120 {offsets = [0, 0, 80], sizes = [8, 2, 16], strides = [1, 1, 1]} : vector<8x2x96xf32> to vector<8x2x16xf32>
    %129 = tpu.concatenate %127, %128 in 0 : vector<8x2x16xf32>, vector<8x2x16xf32> -> vector<16x2x16xf32>
    "tpu.trace_start"() <{level = 10 : i32, message = "zbd,zcd->zbc"}> : () -> ()
    %cst_86 = arith.constant dense<0.000000e+00> : vector<16x2x2xf32>
    %130 = tpu.matmul %123, %126, %cst_86 {dimension_numbers = #tpu.dot_dimension_numbers<[2], [2], [1], [1], [0, 0, 0, 1, 1, 1], [0], [0]>} : vector<16x2x16xf32>, vector<16x2x16xf32>, vector<16x2x2xf32> -> vector<16x2x2xf32>
    "tpu.trace_stop"() : () -> ()
    %cst_87 = arith.constant 2.500000e-01 : f32
    %131 = vector.broadcast %cst_87 : f32 to vector<16x2x2xf32>
    %132 = arith.mulf %130, %131 : vector<16x2x2xf32>
    %cst_88 = arith.constant dense<0xFF800000> : vector<16x2xf32>
    %133 = vector.multi_reduction <maximumf>, %132, %cst_88 [2] : vector<16x2x2xf32> to vector<16x2xf32>
    %134 = vector.shape_cast %133 : vector<16x2xf32> to vector<16x2x1xf32>
    %135 = vector.broadcast %134 : vector<16x2x1xf32> to vector<16x2x2xf32>
    %136 = arith.subf %132, %135 : vector<16x2x2xf32>
    %137 = math.exp %136 : vector<16x2x2xf32>
    %cst_89 = arith.constant dense<0.000000e+00> : vector<16x2xf32>
    %138 = vector.multi_reduction <add>, %137, %cst_89 [2] : vector<16x2x2xf32> to vector<16x2xf32>
    %139 = vector.shape_cast %138 : vector<16x2xf32> to vector<16x2x1xf32>
    %140 = tpu.reciprocal %139 {approx = true} : vector<16x2x1xf32> -> vector<16x2x1xf32>
    %141 = vector.broadcast %140 : vector<16x2x1xf32> to vector<16x2x2xf32>
    %142 = arith.mulf %137, %141 : vector<16x2x2xf32>
    "tpu.trace_start"() <{level = 10 : i32, message = "zbc,zcd->zbd"}> : () -> ()
    %cst_90 = arith.constant dense<0.000000e+00> : vector<16x2x16xf32>
    %143 = tpu.matmul %142, %129, %cst_90 {dimension_numbers = #tpu.dot_dimension_numbers<[2], [1], [1], [2], [0, 0, 0, 1, 1, 2], [0], [0]>} : vector<16x2x2xf32>, vector<16x2x16xf32>, vector<16x2x16xf32> -> vector<16x2x16xf32>
    "tpu.trace_stop"() : () -> ()
    %144 = vector.shape_cast %143 : vector<16x2x16xf32> to vector<2x8x2x16xf32>
    %145 = vector.extract_strided_slice %144 {offsets = [0, 0, 0, 0], sizes = [1, 8, 2, 16], strides = [1, 1, 1, 1]} : vector<2x8x2x16xf32> to vector<1x8x2x16xf32>
    %146 = vector.shape_cast %145 : vector<1x8x2x16xf32> to vector<8x2x16xf32>
    %147 = vector.extract_strided_slice %144 {offsets = [1, 0, 0, 0], sizes = [1, 8, 2, 16], strides = [1, 1, 1, 1]} : vector<2x8x2x16xf32> to vector<1x8x2x16xf32>
    %148 = vector.shape_cast %147 : vector<1x8x2x16xf32> to vector<8x2x16xf32>
    %149 = tpu.concatenate %146, %148 in 2 : vector<8x2x16xf32>, vector<8x2x16xf32> -> vector<8x2x32xf32>
    %150 = vector.shape_cast %149 : vector<8x2x32xf32> to vector<16x32xf32>
    %cst_91 = arith.constant dense<0.000000e+00> : vector<16x32xf32>
    %151 = tpu.matmul %150, %106, %cst_91 {dimension_numbers = #tpu.dot_dimension_numbers<[1], [0], [0], [1], [0, 0, 1, 1], [], []>} : vector<16x32xf32>, vector<32x32xf32>, vector<16x32xf32> -> vector<16x32xf32>
    %152 = vector.broadcast %110 : vector<1x32xf32> to vector<16x32xf32>
    %153 = arith.addf %151, %152 : vector<16x32xf32>
    %154 = arith.addf %104, %153 : vector<16x32xf32>
    %cst_92 = arith.constant dense<0.000000e+00> : vector<16xf32>
    %155 = vector.multi_reduction <add>, %154, %cst_92 [1] : vector<16x32xf32> to vector<16xf32>
    %156 = vector.shape_cast %155 : vector<16xf32> to vector<16x1xf32>
    %cst_93 = arith.constant 3.200000e+01 : f32
    %157 = vector.broadcast %cst_93 : f32 to vector<16x1xf32>
    %158 = arith.divf %156, %157 : vector<16x1xf32>
    %159 = vector.broadcast %158 : vector<16x1xf32> to vector<16x32xf32>
    %160 = arith.subf %154, %159 : vector<16x32xf32>
    %161 = arith.mulf %160, %160 : vector<16x32xf32>
    %cst_94 = arith.constant dense<0.000000e+00> : vector<16xf32>
    %162 = vector.multi_reduction <add>, %161, %cst_94 [1] : vector<16x32xf32> to vector<16xf32>
    %163 = vector.shape_cast %162 : vector<16xf32> to vector<16x1xf32>
    %cst_95 = arith.constant 3.200000e+01 : f32
    %164 = vector.broadcast %cst_95 : f32 to vector<16x1xf32>
    %165 = arith.divf %163, %164 : vector<16x1xf32>
    %166 = vector.broadcast %158 : vector<16x1xf32> to vector<16x32xf32>
    %167 = arith.subf %154, %166 : vector<16x32xf32>
    %cst_96 = arith.constant 9.99999974E-6 : f32
    %168 = vector.broadcast %cst_96 : f32 to vector<16x1xf32>
    %169 = arith.addf %165, %168 : vector<16x1xf32>
    %170 = math.rsqrt %169 : vector<16x1xf32>
    %171 = vector.broadcast %170 : vector<16x1xf32> to vector<16x32xf32>
    %172 = arith.mulf %167, %171 : vector<16x32xf32>
    %173 = vector.broadcast %111 : vector<1x32xf32> to vector<16x32xf32>
    %174 = arith.mulf %172, %173 : vector<16x32xf32>
    %175 = vector.broadcast %112 : vector<1x32xf32> to vector<16x32xf32>
    %176 = arith.addf %174, %175 : vector<16x32xf32>
    %cst_97 = arith.constant dense<0.000000e+00> : vector<16x64xf32>
    %177 = tpu.matmul %176, %107, %cst_97 {dimension_numbers = #tpu.dot_dimension_numbers<[1], [0], [0], [1], [0, 0, 1, 1], [], []>} : vector<16x32xf32>, vector<32x64xf32>, vector<16x64xf32> -> vector<16x64xf32>
    %178 = vector.broadcast %113 : vector<1x64xf32> to vector<16x64xf32>
    %179 = arith.addf %177, %178 : vector<16x64xf32>
    %cst_98 = arith.constant 0.000000e+00 : f32
    %180 = vector.broadcast %cst_98 : f32 to vector<16x64xf32>
    %181 = arith.maximumf %179, %180 : vector<16x64xf32>
    %cst_99 = arith.constant dense<0.000000e+00> : vector<16x32xf32>
    %182 = tpu.matmul %181, %108, %cst_99 {dimension_numbers = #tpu.dot_dimension_numbers<[1], [0], [0], [1], [0, 0, 1, 1], [], []>} : vector<16x64xf32>, vector<64x32xf32>, vector<16x32xf32> -> vector<16x32xf32>
    %183 = vector.broadcast %114 : vector<1x32xf32> to vector<16x32xf32>
    %184 = arith.addf %182, %183 : vector<16x32xf32>
    %185 = arith.addf %176, %184 : vector<16x32xf32>
    %cst_100 = arith.constant dense<0.000000e+00> : vector<16xf32>
    %186 = vector.multi_reduction <add>, %185, %cst_100 [1] : vector<16x32xf32> to vector<16xf32>
    %187 = vector.shape_cast %186 : vector<16xf32> to vector<16x1xf32>
    %cst_101 = arith.constant 3.200000e+01 : f32
    %188 = vector.broadcast %cst_101 : f32 to vector<16x1xf32>
    %189 = arith.divf %187, %188 : vector<16x1xf32>
    %190 = vector.broadcast %189 : vector<16x1xf32> to vector<16x32xf32>
    %191 = arith.subf %185, %190 : vector<16x32xf32>
    %192 = arith.mulf %191, %191 : vector<16x32xf32>
    %cst_102 = arith.constant dense<0.000000e+00> : vector<16xf32>
    %193 = vector.multi_reduction <add>, %192, %cst_102 [1] : vector<16x32xf32> to vector<16xf32>
    %194 = vector.shape_cast %193 : vector<16xf32> to vector<16x1xf32>
    %cst_103 = arith.constant 3.200000e+01 : f32
    %195 = vector.broadcast %cst_103 : f32 to vector<16x1xf32>
    %196 = arith.divf %194, %195 : vector<16x1xf32>
    %197 = vector.broadcast %189 : vector<16x1xf32> to vector<16x32xf32>
    %198 = arith.subf %185, %197 : vector<16x32xf32>
    %cst_104 = arith.constant 9.99999974E-6 : f32
    %199 = vector.broadcast %cst_104 : f32 to vector<16x1xf32>
    %200 = arith.addf %196, %199 : vector<16x1xf32>
    %201 = math.rsqrt %200 : vector<16x1xf32>
    %202 = vector.broadcast %201 : vector<16x1xf32> to vector<16x32xf32>
    %203 = arith.mulf %198, %202 : vector<16x32xf32>
    %204 = vector.broadcast %115 : vector<1x32xf32> to vector<16x32xf32>
    %205 = arith.mulf %203, %204 : vector<16x32xf32>
    %206 = vector.broadcast %116 : vector<1x32xf32> to vector<16x32xf32>
    %207 = arith.addf %205, %206 : vector<16x32xf32>
    %c168 = arith.constant 168 : index
    %c0_105 = arith.constant 0 : index
    %208 = vector.load %arg2[%c168, %c0_105] : memref<600x128xf32, #tpu.memory_space<vmem>>, vector<32x96xf32>
    %c200 = arith.constant 200 : index
    %c0_106 = arith.constant 0 : index
    %209 = vector.load %arg2[%c200, %c0_106] : memref<600x128xf32, #tpu.memory_space<vmem>>, vector<32x32xf32>
    %c232 = arith.constant 232 : index
    %c0_107 = arith.constant 0 : index
    %210 = vector.load %arg2[%c232, %c0_107] : memref<600x128xf32, #tpu.memory_space<vmem>>, vector<32x64xf32>
    %c264 = arith.constant 264 : index
    %c0_108 = arith.constant 0 : index
    %211 = vector.load %arg2[%c264, %c0_108] : memref<600x128xf32, #tpu.memory_space<vmem>>, vector<64x32xf32>
    %c328 = arith.constant 328 : index
    %c0_109 = arith.constant 0 : index
    %212 = vector.load %arg2[%c328, %c0_109] : memref<600x128xf32, #tpu.memory_space<vmem>>, vector<1x96xf32>
    %c329 = arith.constant 329 : index
    %c0_110 = arith.constant 0 : index
    %213 = vector.load %arg2[%c329, %c0_110] : memref<600x128xf32, #tpu.memory_space<vmem>>, vector<1x32xf32>
    %c330 = arith.constant 330 : index
    %c0_111 = arith.constant 0 : index
    %214 = vector.load %arg2[%c330, %c0_111] : memref<600x128xf32, #tpu.memory_space<vmem>>, vector<1x32xf32>
    %c331 = arith.constant 331 : index
    %c0_112 = arith.constant 0 : index
    %215 = vector.load %arg2[%c331, %c0_112] : memref<600x128xf32, #tpu.memory_space<vmem>>, vector<1x32xf32>
    %c332 = arith.constant 332 : index
    %c0_113 = arith.constant 0 : index
    %216 = vector.load %arg2[%c332, %c0_113] : memref<600x128xf32, #tpu.memory_space<vmem>>, vector<1x64xf32>
    %c333 = arith.constant 333 : index
    %c0_114 = arith.constant 0 : index
    %217 = vector.load %arg2[%c333, %c0_114] : memref<600x128xf32, #tpu.memory_space<vmem>>, vector<1x32xf32>
    %c334 = arith.constant 334 : index
    %c0_115 = arith.constant 0 : index
    %218 = vector.load %arg2[%c334, %c0_115] : memref<600x128xf32, #tpu.memory_space<vmem>>, vector<1x32xf32>
    %c335 = arith.constant 335 : index
    %c0_116 = arith.constant 0 : index
    %219 = vector.load %arg2[%c335, %c0_116] : memref<600x128xf32, #tpu.memory_space<vmem>>, vector<1x32xf32>
    %cst_117 = arith.constant dense<0.000000e+00> : vector<16x96xf32>
    %220 = tpu.matmul %207, %208, %cst_117 {dimension_numbers = #tpu.dot_dimension_numbers<[1], [0], [0], [1], [0, 0, 1, 1], [], []>} : vector<16x32xf32>, vector<32x96xf32>, vector<16x96xf32> -> vector<16x96xf32>
    %221 = vector.broadcast %212 : vector<1x96xf32> to vector<16x96xf32>
    %222 = arith.addf %220, %221 : vector<16x96xf32>
    %223 = vector.shape_cast %222 : vector<16x96xf32> to vector<8x2x96xf32>
    %224 = vector.extract_strided_slice %223 {offsets = [0, 0, 0], sizes = [8, 2, 16], strides = [1, 1, 1]} : vector<8x2x96xf32> to vector<8x2x16xf32>
    %225 = vector.extract_strided_slice %223 {offsets = [0, 0, 16], sizes = [8, 2, 16], strides = [1, 1, 1]} : vector<8x2x96xf32> to vector<8x2x16xf32>
    %226 = tpu.concatenate %224, %225 in 0 : vector<8x2x16xf32>, vector<8x2x16xf32> -> vector<16x2x16xf32>
    %227 = vector.extract_strided_slice %223 {offsets = [0, 0, 32], sizes = [8, 2, 16], strides = [1, 1, 1]} : vector<8x2x96xf32> to vector<8x2x16xf32>
    %228 = vector.extract_strided_slice %223 {offsets = [0, 0, 48], sizes = [8, 2, 16], strides = [1, 1, 1]} : vector<8x2x96xf32> to vector<8x2x16xf32>
    %229 = tpu.concatenate %227, %228 in 0 : vector<8x2x16xf32>, vector<8x2x16xf32> -> vector<16x2x16xf32>
    %230 = vector.extract_strided_slice %223 {offsets = [0, 0, 64], sizes = [8, 2, 16], strides = [1, 1, 1]} : vector<8x2x96xf32> to vector<8x2x16xf32>
    %231 = vector.extract_strided_slice %223 {offsets = [0, 0, 80], sizes = [8, 2, 16], strides = [1, 1, 1]} : vector<8x2x96xf32> to vector<8x2x16xf32>
    %232 = tpu.concatenate %230, %231 in 0 : vector<8x2x16xf32>, vector<8x2x16xf32> -> vector<16x2x16xf32>
    "tpu.trace_start"() <{level = 10 : i32, message = "zbd,zcd->zbc"}> : () -> ()
    %cst_118 = arith.constant dense<0.000000e+00> : vector<16x2x2xf32>
    %233 = tpu.matmul %226, %229, %cst_118 {dimension_numbers = #tpu.dot_dimension_numbers<[2], [2], [1], [1], [0, 0, 0, 1, 1, 1], [0], [0]>} : vector<16x2x16xf32>, vector<16x2x16xf32>, vector<16x2x2xf32> -> vector<16x2x2xf32>
    "tpu.trace_stop"() : () -> ()
    %cst_119 = arith.constant 2.500000e-01 : f32
    %234 = vector.broadcast %cst_119 : f32 to vector<16x2x2xf32>
    %235 = arith.mulf %233, %234 : vector<16x2x2xf32>
    %cst_120 = arith.constant dense<0xFF800000> : vector<16x2xf32>
    %236 = vector.multi_reduction <maximumf>, %235, %cst_120 [2] : vector<16x2x2xf32> to vector<16x2xf32>
    %237 = vector.shape_cast %236 : vector<16x2xf32> to vector<16x2x1xf32>
    %238 = vector.broadcast %237 : vector<16x2x1xf32> to vector<16x2x2xf32>
    %239 = arith.subf %235, %238 : vector<16x2x2xf32>
    %240 = math.exp %239 : vector<16x2x2xf32>
    %cst_121 = arith.constant dense<0.000000e+00> : vector<16x2xf32>
    %241 = vector.multi_reduction <add>, %240, %cst_121 [2] : vector<16x2x2xf32> to vector<16x2xf32>
    %242 = vector.shape_cast %241 : vector<16x2xf32> to vector<16x2x1xf32>
    %243 = tpu.reciprocal %242 {approx = true} : vector<16x2x1xf32> -> vector<16x2x1xf32>
    %244 = vector.broadcast %243 : vector<16x2x1xf32> to vector<16x2x2xf32>
    %245 = arith.mulf %240, %244 : vector<16x2x2xf32>
    "tpu.trace_start"() <{level = 10 : i32, message = "zbc,zcd->zbd"}> : () -> ()
    %cst_122 = arith.constant dense<0.000000e+00> : vector<16x2x16xf32>
    %246 = tpu.matmul %245, %232, %cst_122 {dimension_numbers = #tpu.dot_dimension_numbers<[2], [1], [1], [2], [0, 0, 0, 1, 1, 2], [0], [0]>} : vector<16x2x2xf32>, vector<16x2x16xf32>, vector<16x2x16xf32> -> vector<16x2x16xf32>
    "tpu.trace_stop"() : () -> ()
    %247 = vector.shape_cast %246 : vector<16x2x16xf32> to vector<2x8x2x16xf32>
    %248 = vector.extract_strided_slice %247 {offsets = [0, 0, 0, 0], sizes = [1, 8, 2, 16], strides = [1, 1, 1, 1]} : vector<2x8x2x16xf32> to vector<1x8x2x16xf32>
    %249 = vector.shape_cast %248 : vector<1x8x2x16xf32> to vector<8x2x16xf32>
    %250 = vector.extract_strided_slice %247 {offsets = [1, 0, 0, 0], sizes = [1, 8, 2, 16], strides = [1, 1, 1, 1]} : vector<2x8x2x16xf32> to vector<1x8x2x16xf32>
    %251 = vector.shape_cast %250 : vector<1x8x2x16xf32> to vector<8x2x16xf32>
    %252 = tpu.concatenate %249, %251 in 2 : vector<8x2x16xf32>, vector<8x2x16xf32> -> vector<8x2x32xf32>
    %253 = vector.shape_cast %252 : vector<8x2x32xf32> to vector<16x32xf32>
    %cst_123 = arith.constant dense<0.000000e+00> : vector<16x32xf32>
    %254 = tpu.matmul %253, %209, %cst_123 {dimension_numbers = #tpu.dot_dimension_numbers<[1], [0], [0], [1], [0, 0, 1, 1], [], []>} : vector<16x32xf32>, vector<32x32xf32>, vector<16x32xf32> -> vector<16x32xf32>
    %255 = vector.broadcast %213 : vector<1x32xf32> to vector<16x32xf32>
    %256 = arith.addf %254, %255 : vector<16x32xf32>
    %257 = arith.addf %207, %256 : vector<16x32xf32>
    %cst_124 = arith.constant dense<0.000000e+00> : vector<16xf32>
    %258 = vector.multi_reduction <add>, %257, %cst_124 [1] : vector<16x32xf32> to vector<16xf32>
    %259 = vector.shape_cast %258 : vector<16xf32> to vector<16x1xf32>
    %cst_125 = arith.constant 3.200000e+01 : f32
    %260 = vector.broadcast %cst_125 : f32 to vector<16x1xf32>
    %261 = arith.divf %259, %260 : vector<16x1xf32>
    %262 = vector.broadcast %261 : vector<16x1xf32> to vector<16x32xf32>
    %263 = arith.subf %257, %262 : vector<16x32xf32>
    %264 = arith.mulf %263, %263 : vector<16x32xf32>
    %cst_126 = arith.constant dense<0.000000e+00> : vector<16xf32>
    %265 = vector.multi_reduction <add>, %264, %cst_126 [1] : vector<16x32xf32> to vector<16xf32>
    %266 = vector.shape_cast %265 : vector<16xf32> to vector<16x1xf32>
    %cst_127 = arith.constant 3.200000e+01 : f32
    %267 = vector.broadcast %cst_127 : f32 to vector<16x1xf32>
    %268 = arith.divf %266, %267 : vector<16x1xf32>
    %269 = vector.broadcast %261 : vector<16x1xf32> to vector<16x32xf32>
    %270 = arith.subf %257, %269 : vector<16x32xf32>
    %cst_128 = arith.constant 9.99999974E-6 : f32
    %271 = vector.broadcast %cst_128 : f32 to vector<16x1xf32>
    %272 = arith.addf %268, %271 : vector<16x1xf32>
    %273 = math.rsqrt %272 : vector<16x1xf32>
    %274 = vector.broadcast %273 : vector<16x1xf32> to vector<16x32xf32>
    %275 = arith.mulf %270, %274 : vector<16x32xf32>
    %276 = vector.broadcast %214 : vector<1x32xf32> to vector<16x32xf32>
    %277 = arith.mulf %275, %276 : vector<16x32xf32>
    %278 = vector.broadcast %215 : vector<1x32xf32> to vector<16x32xf32>
    %279 = arith.addf %277, %278 : vector<16x32xf32>
    %cst_129 = arith.constant dense<0.000000e+00> : vector<16x64xf32>
    %280 = tpu.matmul %279, %210, %cst_129 {dimension_numbers = #tpu.dot_dimension_numbers<[1], [0], [0], [1], [0, 0, 1, 1], [], []>} : vector<16x32xf32>, vector<32x64xf32>, vector<16x64xf32> -> vector<16x64xf32>
    %281 = vector.broadcast %216 : vector<1x64xf32> to vector<16x64xf32>
    %282 = arith.addf %280, %281 : vector<16x64xf32>
    %cst_130 = arith.constant 0.000000e+00 : f32
    %283 = vector.broadcast %cst_130 : f32 to vector<16x64xf32>
    %284 = arith.maximumf %282, %283 : vector<16x64xf32>
    %cst_131 = arith.constant dense<0.000000e+00> : vector<16x32xf32>
    %285 = tpu.matmul %284, %211, %cst_131 {dimension_numbers = #tpu.dot_dimension_numbers<[1], [0], [0], [1], [0, 0, 1, 1], [], []>} : vector<16x64xf32>, vector<64x32xf32>, vector<16x32xf32> -> vector<16x32xf32>
    %286 = vector.broadcast %217 : vector<1x32xf32> to vector<16x32xf32>
    %287 = arith.addf %285, %286 : vector<16x32xf32>
    %288 = arith.addf %279, %287 : vector<16x32xf32>
    %cst_132 = arith.constant dense<0.000000e+00> : vector<16xf32>
    %289 = vector.multi_reduction <add>, %288, %cst_132 [1] : vector<16x32xf32> to vector<16xf32>
    %290 = vector.shape_cast %289 : vector<16xf32> to vector<16x1xf32>
    %cst_133 = arith.constant 3.200000e+01 : f32
    %291 = vector.broadcast %cst_133 : f32 to vector<16x1xf32>
    %292 = arith.divf %290, %291 : vector<16x1xf32>
    %293 = vector.broadcast %292 : vector<16x1xf32> to vector<16x32xf32>
    %294 = arith.subf %288, %293 : vector<16x32xf32>
    %295 = arith.mulf %294, %294 : vector<16x32xf32>
    %cst_134 = arith.constant dense<0.000000e+00> : vector<16xf32>
    %296 = vector.multi_reduction <add>, %295, %cst_134 [1] : vector<16x32xf32> to vector<16xf32>
    %297 = vector.shape_cast %296 : vector<16xf32> to vector<16x1xf32>
    %cst_135 = arith.constant 3.200000e+01 : f32
    %298 = vector.broadcast %cst_135 : f32 to vector<16x1xf32>
    %299 = arith.divf %297, %298 : vector<16x1xf32>
    %300 = vector.broadcast %292 : vector<16x1xf32> to vector<16x32xf32>
    %301 = arith.subf %288, %300 : vector<16x32xf32>
    %cst_136 = arith.constant 9.99999974E-6 : f32
    %302 = vector.broadcast %cst_136 : f32 to vector<16x1xf32>
    %303 = arith.addf %299, %302 : vector<16x1xf32>
    %304 = math.rsqrt %303 : vector<16x1xf32>
    %305 = vector.broadcast %304 : vector<16x1xf32> to vector<16x32xf32>
    %306 = arith.mulf %301, %305 : vector<16x32xf32>
    %307 = vector.broadcast %218 : vector<1x32xf32> to vector<16x32xf32>
    %308 = arith.mulf %306, %307 : vector<16x32xf32>
    %309 = vector.broadcast %219 : vector<1x32xf32> to vector<16x32xf32>
    %310 = arith.addf %308, %309 : vector<16x32xf32>
    %c336 = arith.constant 336 : index
    %c0_137 = arith.constant 0 : index
    %311 = vector.load %arg2[%c336, %c0_137] : memref<600x128xf32, #tpu.memory_space<vmem>>, vector<32x128xf32>
    %c368 = arith.constant 368 : index
    %c0_138 = arith.constant 0 : index
    %312 = vector.load %arg2[%c368, %c0_138] : memref<600x128xf32, #tpu.memory_space<vmem>>, vector<1x128xf32>
    %313 = vector.shape_cast %310 : vector<16x32xf32> to vector<8x2x32xf32>
    %cst_139 = arith.constant dense<0.000000e+00> : vector<2x32xf32>
    %314 = vector.multi_reduction <add>, %313, %cst_139 [0] : vector<8x2x32xf32> to vector<2x32xf32>
    %cst_140 = arith.constant 8.000000e+00 : f32
    %315 = vector.broadcast %cst_140 : f32 to vector<2x32xf32>
    %316 = arith.divf %314, %315 : vector<2x32xf32>
    %cst_141 = arith.constant dense<0.000000e+00> : vector<2x128xf32>
    %317 = tpu.matmul %316, %311, %cst_141 {dimension_numbers = #tpu.dot_dimension_numbers<[1], [0], [0], [1], [0, 0, 1, 1], [], []>} : vector<2x32xf32>, vector<32x128xf32>, vector<2x128xf32> -> vector<2x128xf32>
    %318 = vector.broadcast %312 : vector<1x128xf32> to vector<2x128xf32>
    %319 = arith.addf %317, %318 : vector<2x128xf32>
    %c0_142 = arith.constant 0 : index
    %c0_143 = arith.constant 0 : index
    %320 = vector.load %arg3[%c0_142, %c0_143] : memref<2x128xf32, #tpu.memory_space<vmem>>, vector<2x128xf32>
    tpu.vector_store %arg3[%c0_142, %c0_143], %319 {strides = array<i32>} : memref<2x128xf32, #tpu.memory_space<vmem>>, vector<2x128xf32>,
    return
  }
  func.func @transform_0(%arg0: i32, %arg1: memref<16xi32, #tpu.memory_space<smem>>) -> (i32, i32) {
    %c0_i32 = arith.constant 0 : i32
    %c0_i32_0 = arith.constant 0 : i32
    %c0_i32_1 = arith.constant 0 : i32
    return %c0_i32, %c0_i32_0 : i32, i32
  }
  func.func @transform_1(%arg0: i32, %arg1: memref<16xi32, #tpu.memory_space<smem>>) -> (i32, i32) {
    %c0_i32 = arith.constant 0 : i32
    %c0_i32_0 = arith.constant 0 : i32
    %c0_i32_1 = arith.constant 0 : i32
    return %c0_i32, %c0_i32_0 : i32, i32
  }
}

</mosaic_0001>

<bundles_post_ra>
// kernel: transformer_classifier_forward.1
= control target key start
LH: loop header
LB: loop body
LE: loop exit
PB: predicated region body
PF: predicated region fallthrough
CT: control target
= control target key end

     0   :  { %s9283_s0 = inlined_call_operand.vmem [shape: s32[16], index: 0, kind: input, shape index: {}]   ;;  %s9284_s1 = inlined_call_operand.hbm [shape: f32[600,128], index: 1, kind: input, shape index: {}]   ;;  %s9285_s2 = inlined_call_operand.hbm [shape: f32[2,128], index: 2, kind: output, shape index: {}]  }
   0x1   :  { %s7_s11 = sshll.u32 %s9283_s0, 4  ;;  %s8_s11 = int_to_ptr.vmem [resolvable:$true] %s7_s11 }
   0x2   :  { %s7979_s12 = scalar_lea.vmem %s8_s11, 16  ;;  %p7984_p1 = scmp.lt.s32.totalorder %s8_s11, %s8_s11 }
   0x3   :  { %p7980_p0 = scmp.ne.s32.totalorder %s8_s11, %s7979_s12  ;;  %p7985_p2 = scmp.lt.s32.totalorder %s7979_s12, %s7979_s12 }
   0x5   :  { %p7986_p3 = por %p7985_p2, %p7984_p1 }
   0x7   :  { %p7987_p4 = pnand %p7986_p3, %p7980_p0 }
   0x9   :  { %7990 = shalt.err (!%p7987_p4)  }
   0xa   :  { %s8037_s13 = smov [#allocation4]  }
   0xb   :  { %10 = dma.vmem_to_smem %s8_s11, 16, %s8037_s13, [#allocation3] }
   0xc   :  { %8031 = dma.done.wait [#allocation3], 16 }
   0xd   :  { %8032 = vsyncadd [#allocation3], 4294967280 }
   0xe   :  { %12 = sfence }
   0xf   :  { %13 = vsyncpa [#allocation6], 0 }
  0x10   :  { %14 = vsyncpa [#allocation7], 0  ;;  %s8038_s14 = smov [#allocation5]  }
  0x11   :  { %s20_s15 = sshll.u32 %s8038_s14, 4  ;;  %s21_s15 = int_to_ptr.vmem [resolvable:$true] %s20_s15 }
  0x12   :  { %s7999_s16 = scalar_lea.vmem %s21_s15, 9600  ;;  %p8004_p6 = scmp.lt.s32.totalorder %s21_s15, %s21_s15 }
  0x13   :  { %p8000_p5 = scmp.ne.s32.totalorder %s21_s15, %s7999_s16  ;;  %p8005_p7 = scmp.lt.s32.totalorder %s7999_s16, %s7999_s16 }
  0x15   :  { %p8006_p8 = por %p8005_p7, %p8004_p6 }
  0x17   :  { %p8007_p9 = pnand %p8006_p8, %p8000_p5 }
  0x19   :  { %8010 = shalt.err (!%p8007_p9)
}
  0x1a   :  { %s8039_s0 = smov 128   ;;  %s8040_s17 = smov 8  }
  0x1b   :  { %26 = dma.hbm_to_vmem [thread:$0]  %s9284_s1, 9600, %s21_s15, [#allocation6], %s8039_s0, %s8039_s0, %s8040_s17  }
  0x1c   :  { %8033 = dma.done.wait [#allocation6], 9600  }
  0x1d   :  { %8034 = vsyncadd [#allocation6], 4294957696  ;;  %s31_s20 = sld [smem:[#allocation4]]  ;;  %v140_v0 = vld [vmem:[#allocation5 + $0x18] sm:$0xff]  ;;  %v139_v1 = vld [vmem:[#allocation5 + $0x10] sm:$0xff]  ;;  %vm36_vm0 = vcmask 253952   ;;  %v257_v48 = vlaneseq }
  0x1e   :  { %s7005_s21 = sld [smem:[#allocation4 + $0x8]]  ;;  %7386 = vmatprep.subr.mxu0 %v140_v0  ;;  %v30_v2 = vld [vmem:[#allocation5 + $0x18c] sm:$0x1]  ;;  %v44_v7 = vld [vmem:[#allocation5 + $0x18d] sm:$0x1]  ;;  %v137_v11 = vld [vmem:[#allocation5] sm:$0xff] }
  0x1f   :  { %s7007_s22 = sld [smem:[#allocation4 + $0x1]]  ;;  %7387 = vmatpush3.msra.mxu0 %v140_v0  ;;  %v138_v4 = vld [vmem:[#allocation5 + $0x8] sm:$0xff]  ;;  %v83_v23 = vld [vmem:[#allocation5 + $0x190] sm:$0x1]  ;;  %v96_v25 = vld [vmem:[#allocation5 + $0x191] sm:$0x1] }
  0x20   :  { %s7009_s23 = sld [smem:[#allocation4 + $0x9]]  ;;  %7388 = vmatprep.subr.mxu0 %v139_v1  ;;  %v57_v10 = vld [vmem:[#allocation5 + $0x18e] sm:$0x1]  ;;  %v70_v14 = vld [vmem:[#allocation5 + $0x18f] sm:$0x1]  ;;  %vm169_vm1 = vcmask 261120  }
  0x21   :  { %s8070_s24 = sld [smem:[#allocation4 + $0x2]]  ;;  %7389 = vmatpush3.msra.mxu0 %v139_v1  ;;  %v109_v31 = vld [vmem:[#allocation5 + $0x192] sm:$0x1]  ;;  %v122_v36 = vld [vmem:[#allocation5 + $0x193] sm:$0x1]  ;;  %v258_v50 = vshrl.u32 %v257_v48, 7 }
  0x22   :  { %s8072_s25 = sld [smem:[#allocation4 + $0xa]]  ;;  %7390 = vmatprep.subr.mxu0 %v138_v4  ;;  %v8041_v46 = vmov 1983009808   ;;  %v7035_v52 = vld [vmem:[#allocation5 + $0xa0] ss:$0 sm:$0xff]  ;;  %v8043_v61 = vmov 0.0  }
  0x23   :  { %s8074_s26 = sld [smem:[#allocation4 + $0x3]]  ;;  %s6972_s27 = scalar_lea.vmem [#allocation5], %s31_s20  ;;  %7391 = vmatpush3.msra.mxu0 %v138_v4  ;;  %v255_v47 = vunpack.c.l.s4 %v8041_v46  ;;  %7397 = vmatprep.subr.mxu1 %v8043_v61  ;;  %vm8044_vm2 = vmmov 0   ;;  %vm312_vm3 = vcmask 130048   ;;  %vm1831_vm4 = vcmask 1041408  }
  0x24   :  { %v7004_v3 = vld [vmem:[%s6972_s27 + $0x171] sm:$0x1]  ;;  %s6974_s1 = scalar_lea.vmem [#allocation5], %s7005_s21  ;;  %s7017_s3 = sld [smem:[#allocation4 + $0xb]]  ;;  %7392 = vmatprep.subr.mxu0 %v137_v11  ;;  %7399 = vmatprep.mubr.msk.f32.mxu1 %vm8044_vm2, %v8043_v61  ;;  %vm1648_vm5 = vcmask 9216   ;;  %vm1827_vm6 = vcmask 15360  }
  0x25   :  { %v35_v5 = vadd.f32 %v7004_v3, %v30_v2  ;;  %v7006_v6 = vld [vmem:[%s6974_s1 + $0x171] sm:$0x1]  ;;  %s6976_s28 = scalar_lea.vmem [#allocation5], %s7007_s22  ;;  %s7019_s6 = sld [smem:[#allocation4 + $0x4]]  ;;  %7393 = vmatpush3.msra.mxu0 %v137_v11  ;;  %v256_v49 = vunpack.c.0.s8 %v255_v47  ;;  %vm3356_vm7 = vcmask 523264   ;;  %vm6861_vm8 = vcmask 254976  }
  0x26   :  { %v42_v8 = vadd.f32 %v7006_v6, %v30_v2  ;;  %v7008_v9 = vld [vmem:[%s6976_s28 + $0x171] sm:$0x1]  ;;  %s6978_s29 = scalar_lea.vmem [#allocation5], %s7009_s23  ;;  %s7021_s7 = sld [smem:[#allocation4 + $0xc]]  ;;  %7417 = vmatprep.subr.mxu0 %v8043_v61 }
  0x27   :  { %37 = vst.msk [vmem:[#allocation2] sm:$0x1] %vm36_vm0, %v35_v5  ;;  %v49_v12 = vadd.f32 %v7008_v9, %v44_v7  ;;  %v7010_v13 = vld [vmem:[%s6978_s29 + $0x171] sm:$0x1]  ;;  %s6980_s30 = scalar_lea.vmem [#allocation5], %s8070_s24  ;;  %s7023_s8 = sld [smem:[#allocation4 + $0x5]]  ;;  %v8103_v54 = vsub.s32 %v256_v49, %v258_v50 }
  0x28   :  { %43 = vst.msk [vmem:[#allocation2 + $0x1] sm:$0x1] %vm36_vm0, %v42_v8  ;;  %v55_v15 = vadd.f32 %v7010_v13, %v44_v7  ;;  %v7012_v16 = vld [vmem:[%s6980_s30 + $0x171] sm:$0x1]  ;;  %s6982_s4 = scalar_lea.vmem [#allocation5], %s8072_s25  ;;  %s7025_s9 = sld [smem:[#allocation4 + $0xd]] }
  0x29   :  { %50 = vst.msk [vmem:[#allocation2 + $0x2] sm:$0x1] %vm36_vm0, %v49_v12  ;;  %v62_v17 = vadd.f32 %v7012_v16, %v57_v10  ;;  %v7014_v18 = vld [vmem:[%s6982_s4 + $0x171] sm:$0x1]  ;;  %s6984_s5 = scalar_lea.vmem [#allocation5], %s8074_s26  ;;  %s7027_s10 = sld [smem:[#allocation4 + $0x6]] }
  0x2a   :  { %56 = vst.msk [vmem:[#allocation2 + $0x3] sm:$0x1] %vm36_vm0, %v55_v15  ;;  %v68_v19 = vadd.f32 %v7014_v18, %v57_v10  ;;  %v7016_v20 = vld [vmem:[%s6984_s5 + $0x171] sm:$0x1]  ;;  %s6986_s11 = scalar_lea.vmem [#allocation5], %s7017_s3  ;;  %s7029_s12 = sld [smem:[#allocation4 + $0xe]] }
  0x2b   :  { %63 = vst.msk [vmem:[#allocation2 + $0x4] sm:$0x1] %vm36_vm0, %v62_v17  ;;  %v75_v21 = vadd.f32 %v7016_v20, %v70_v14  ;;  %v7018_v22 = vld [vmem:[%s6986_s11 + $0x171] sm:$0x1]  ;;  %s8086_s13 = sld [smem:[#allocation4 + $0x7]]  ;;  %s6988_s14 = scalar_lea.vmem [#allocation5], %s7019_s6 }
  0x2c   :  { %69 = vst.msk [vmem:[#allocation2 + $0x5] sm:$0x1] %vm36_vm0, %v68_v19  ;;  %v81_v24 = vadd.f32 %v7018_v22, %v70_v14  ;;  %v7020_v26 = vld [vmem:[%s6988_s14 + $0x171] sm:$0x1]  ;;  %s8088_s15 = sld [smem:[#allocation4 + $0xf]]  ;;  %s6990_s16 = scalar_lea.vmem [#allocation5], %s7021_s7 }
  0x2d   :  { %76 = vst.msk [vmem:[#allocation2 + $0x6] sm:$0x1] %vm36_vm0, %v75_v21  ;;  %v88_v27 = vadd.f32 %v7020_v26, %v83_v23  ;;  %v7022_v28 = vld [vmem:[%s6990_s16 + $0x171] sm:$0x1]  ;;  %s6992_s0 = scalar_lea.vmem [#allocation5], %s7023_s8  ;;  %s8042_s22 = smov 112  }
  0x2e   :  { %82 = vst.msk [vmem:[#allocation2 + $0x7] sm:$0x1] %vm36_vm0, %v81_v24  ;;  %v94_v29 = vadd.f32 %v7022_v28, %v83_v23  ;;  %v7024_v30 = vld [vmem:[%s6992_s0 + $0x171] sm:$0x1]  ;;  %s6994_s17 = scalar_lea.vmem [#allocation5], %s7025_s9  ;;  %s8045_s23 = smov 96  }
  0x2f   :  { %89 = vst.msk [vmem:[#allocation2 + $0x8] sm:$0x1] %vm36_vm0, %v88_v27  ;;  %v101_v32 = vadd.f32 %v7024_v30, %v96_v25  ;;  %v7026_v33 = vld [vmem:[%s6994_s17 + $0x171] sm:$0x1]  ;;  %s6996_s18 = scalar_lea.vmem [#allocation5], %s7027_s10  ;;  %s8046_s24 = smov 64  }
  0x30   :  { %95 = vst.msk [vmem:[#allocation2 + $0x9] sm:$0x1] %vm36_vm0, %v94_v29  ;;  %v107_v34 = vadd.f32 %v7026_v33, %v96_v25  ;;  %v7028_v35 = vld [vmem:[%s6996_s18 + $0x171] sm:$0x1]  ;;  %s6998_s19 = scalar_lea.vmem [#allocation5], %s7029_s12  ;;  %s8047_s25 = smov 16  }
  0x31   :  { %102 = vst.msk [vmem:[#allocation2 + $0xa] sm:$0x1] %vm36_vm0, %v101_v32  ;;  %v114_v37 = vadd.f32 %v7028_v35, %v109_v31  ;;  %v7030_v38 = vld [vmem:[%s6998_s19 + $0x171] sm:$0x1]  ;;  %s7000_s20 = scalar_lea.vmem [#allocation5], %s8086_s13  ;;  %s8048_s26 = smov [#allocation8]  }
  0x32   :  { %108 = vst.msk [vmem:[#allocation2 + $0xb] sm:$0x1] %vm36_vm0, %v107_v34  ;;  %v120_v39 = vadd.f32 %v7030_v38, %v109_v31  ;;  %v7032_v40 = vld [vmem:[%s7000_s20 + $0x171] sm:$0x1]  ;;  %s7002_s21 = scalar_lea.vmem [#allocation5], %s8088_s15  ;;  %s6963_s27 = sshll.u32 %s8048_s26, 4  ;;  %s6964_s27 = int_to_ptr.vmem [resolvable:$true] %s6963_s27 }
  0x33   :  { %115 = vst.msk [vmem:[#allocation2 + $0xc] sm:$0x1] %vm36_vm0, %v114_v37  ;;  %v127_v41 = vadd.f32 %v7032_v40, %v122_v36  ;;  %v7034_v42 = vld [vmem:[%s7002_s21 + $0x171] sm:$0x1]  ;;  %s8011_s1 = scalar_lea.vmem %s6964_s27, 32  ;;  %p8016_p11 = scmp.lt.s32.totalorder %s6964_s27, %s6964_s27 }
  0x34   :  { %121 = vst.msk [vmem:[#allocation2 + $0xd] sm:$0x1] %vm36_vm0, %v120_v39  ;;  %v133_v44 = vadd.f32 %v7034_v42, %v122_v36  ;;  %p8012_p10 = scmp.ne.s32.totalorder %s6964_s27, %s8011_s1  ;;  %p8017_p12 = scmp.lt.s32.totalorder %s8011_s1, %s8011_s1 }
  0x35   :  { %v135_v43 = vld [vmem:[#allocation2] sm:$0xff]  ;;  %128 = vst.msk [vmem:[#allocation2 + $0xe] sm:$0x1] %vm36_vm0, %v127_v41 }
  0x36   :  { %7394 = vmatprep.mubr.msk.f32.mxu0 %vm169_vm1, %v135_v43  ;;  %134 = vst.msk [vmem:[#allocation2 + $0xf] sm:$0x1] %vm36_vm0, %v133_v44  ;;  %p8018_p13 = por %p8017_p12, %p8016_p11 }
  0x38   :  { %p8019_p0 = pnand %p8018_p13, %p8012_p10 }
  0x3d   :  { %v136_v45 = vld [vmem:[#allocation2 + $0x8] sm:$0xff] }
  0x3e   :  { %7395 = vmatmul.mubr.msk.f32.vlgmr.msra.gmra.mxu0 %vm169_vm1, %v136_v45 }
  0x3f   :  { %7419 = vmatprep.mubr.msk.f32.mxu0 %vm8044_vm2, %v8043_v61 }
  0xfe   :  { %v7396_v51 = vpop.f32.mrf.mxu0 }
  0xff   :  { %v248_v58 = vadd.f32 %v7396_v51, %v7035_v52 }
 0x100   :  { %v242_v53 = vpop.f32.mrf.mxu0 }
 0x101   :  { %v243_v55 = vadd.f32 %v7035_v52, %v242_v53  ;;  %v270_v62 = vcombine.high %v248_v58, %v248_v58  ;;  %v8122_v63 = vrot.slane %v248_v58, %v8103_v54 }
 0x103   :  { %v253_v56 = vcombine.high %v243_v55, %v243_v55  ;;  %v8106_v57 = vrot.slane %v243_v55, %v8103_v54  ;;  %v8137_v1 = vrot.slane %v270_v62, %v8103_v54  ;;  %v8143_v2 = vcombine.high %v8122_v63, %v8122_v63 }
 0x104   :  { %v8169_v8 = vrot.slane %v8122_v63, %v8103_v54 }
 0x105   :  { %v8109_v59 = vrot.slane %v253_v56, %v8103_v54  ;;  %287 = vrot.lane.b32.xlu0 %v8106_v57, %s8042_s22  ;;  %v8117_v60 = vcombine.high %v8106_v57, %v8106_v57  ;;  %v8151_v3 = vcombine.high %v8137_v1, %v8137_v1  ;;  %v309_v4 = vrot.slane %v8106_v57, %v8103_v54 }
 0x106   :  { %v8175_v9 = vrot.slane %v8143_v2, %v8103_v54  ;;  %v808_v10 = vrot.slane %v8137_v1, %v8103_v54 }
 0x107   :  { %291 = vrot.lane.b32.xlu1 %v8109_v59, %s8042_s22  ;;  %v8128_v0 = vcombine.high %v8109_v59, %v8109_v59  ;;  %v393_v5 = vrot.slane %v8117_v60, %v8103_v54  ;;  %v476_v6 = vrot.slane %v8109_v59, %v8103_v54  ;;  %v8184_v11 = vrot.slane %v8151_v3, %v8103_v54 }
 0x109   :  { %289 = vrot.lane.b32.xlu0 %v8117_v60, %s8042_s22  ;;  %v559_v7 = vrot.slane %v8128_v0, %v8103_v54 }
 0x10b   :  { %293 = vrot.lane.b32.xlu1 %v8128_v0, %s8042_s22 }
 0x10d   :  { %295 = vrot.lane.b32.xlu0 %v8122_v63, %s8042_s22 }
 0x10f   :  { %297 = vrot.lane.b32.xlu1 %v8143_v2, %s8042_s22 }
 0x111   :  { %299 = vrot.lane.b32.xlu0 %v8137_v1, %s8042_s22 }
 0x113   :  { %301 = vrot.lane.b32.xlu1 %v8151_v3, %s8042_s22 }
 0x115   :  { %310 = vrot.lane.b32.xlu0 %v309_v4, %s8045_s23 }
 0x117   :  { %394 = vrot.lane.b32.xlu1 %v393_v5, %s8045_s23 }
 0x119   :  { %477 = vrot.lane.b32.xlu0 %v476_v6, %s8045_s23 }
 0x11b   :  { %560 = vrot.lane.b32.xlu1 %v559_v7, %s8045_s23 }
 0x11d   :  { %643 = vrot.lane.b32.xlu0 %v8169_v8, %s8045_s23 }
 0x11f   :  { %726 = vrot.lane.b32.xlu1 %v8175_v9, %s8045_s23 }
 0x121   :  { %809 = vrot.lane.b32.xlu0 %v808_v10, %s8045_s23 }
 0x123   :  { %892 = vrot.lane.b32.xlu1 %v8184_v11, %s8045_s23 }
 0x177   :  { %v8188_v12 = vpop.permute.xlu0 %287 }
 0x178   :  { %v974_v13 = vrot.slane %v8188_v12, %v8103_v54 }
 0x179   :  { %v8192_v14 = vpop.permute.xlu1 %291 }
 0x17a   :  { %975 = vrot.lane.b32.xlu0 %v974_v13, %s8045_s23  ;;  %v8199_v16 = vrot.slane %v8192_v14, %v8103_v54 }
 0x17b   :  { %v8195_v15 = vpop.permute.xlu0 %289 }
 0x17c   :  { %v8203_v17 = vrot.slane %v8195_v15, %v8103_v54 }
 0x17d   :  { %v8205_v18 = vpop.permute.xlu1 %293 }
 0x17e   :  { %1141 = vrot.lane.b32.xlu0 %v8199_v16, %s8045_s23  ;;  %1058 = vrot.lane.b32.xlu1 %v8203_v17, %s8045_s23  ;;  %v8215_v20 = vrot.slane %v8205_v18, %v8103_v54 }
 0x17f   :  { %v8211_v19 = vpop.permute.xlu0 %295 }
 0x180   :  { %v8219_v21 = vrot.slane %v8211_v19, %v8103_v54 }
 0x181   :  { %v8221_v22 = vpop.permute.xlu1 %297 }
 0x182   :  { %1307 = vrot.lane.b32.xlu0 %v8219_v21, %s8045_s23  ;;  %1224 = vrot.lane.b32.xlu1 %v8215_v20, %s8045_s23  ;;  %v8231_v24 = vrot.slane %v8221_v22, %v8103_v54 }
 0x183   :  { %v8227_v23 = vpop.permute.xlu0 %299 }
 0x184   :  { %v8235_v25 = vrot.slane %v8227_v23, %v8103_v54 }
 0x185   :  { %v8237_v26 = vpop.permute.xlu1 %301 }
 0x186   :  { %1473 = vrot.lane.b32.xlu0 %v8235_v25, %s8045_s23  ;;  %1390 = vrot.lane.b32.xlu1 %v8231_v24, %s8045_s23  ;;  %v8245_v28 = vrot.slane %v8237_v26, %v8103_v54 }
 0x187   :  { %v311_v27 = vpop.permute.xlu0 %310 }
 0x188   :  { %7398 = vmatpush3.xpose.msk.msra.mxu1 %vm312_vm3, %v311_v27 }
 0x189   :  { %7402 = vmatprep.subr.mxu1 %v8043_v61  ;;  %v395_v29 = vpop.permute.xlu1 %394 }
 0x18a   :  { %1904 = vrot.lane.b32.xlu0 %v393_v5, %s8046_s24  ;;  %1556 = vrot.lane.b32.xlu1 %v8245_v28, %s8045_s23 }
 0x18b   :  { %7400 = vmatmul.mubr.msk.f32.vlgmr.msra.gmra.mxu1 %vm312_vm3, %v8106_v57  ;;  %v478_v30 = vpop.permute.xlu0 %477 }
 0x18c   :  { %7403 = vmatpush3.xpose.msk.msra.mxu1 %vm312_vm3, %v395_v29  ;;  %7404 = vmatprep.mubr.msk.f32.mxu1 %vm8044_vm2, %v8043_v61 }
 0x18d   :  { %7407 = vmatprep.subr.mxu1 %v8043_v61  ;;  %v561_v32 = vpop.permute.xlu1 %560 }
 0x18e   :  { %2058 = vrot.lane.b32.xlu0 %v559_v7, %s8046_s24  ;;  %1825 = vrot.lane.b32.xlu1 %v309_v4, %s8046_s24 }
 0x18f   :  { %v644_v31 = vpop.permute.xlu0 %643  ;;  %7405 = vmatmul.mubr.msk.f32.vlgmr.msra.gmra.mxu1 %vm312_vm3, %v8117_v60 }
 0x190   :  { %7408 = vmatpush3.xpose.msk.msra.mxu1 %vm312_vm3, %v478_v30  ;;  %7418 = vmatpush3.xpose.msk.msra.mxu0 %vm312_vm3, %v644_v31 }
 0x191   :  { %7409 = vmatprep.mubr.msk.f32.mxu1 %vm8044_vm2, %v8043_v61  ;;  %7427 = vmatprep.subr.mxu0 %v8043_v61  ;;  %v727_v34 = vpop.permute.xlu1 %726 }
 0x192   :  { %2289 = vrot.lane.b32.xlu0 %v808_v10, %s8046_s24  ;;  %1981 = vrot.lane.b32.xlu1 %v476_v6, %s8046_s24 }
 0x193   :  { %7420 = vmatmul.mubr.msk.f32.vlgmr.msra.gmra.mxu0 %vm312_vm3, %v8122_v63  ;;  %v810_v33 = vpop.permute.xlu0 %809  ;;  %7410 = vmatmul.mubr.msk.f32.vlgmr.msra.gmra.mxu1 %vm312_vm3, %v8109_v59 }
 0x194   :  { %7412 = vmatprep.subr.mxu1 %v8043_v61  ;;  %7428 = vmatpush3.xpose.msk.msra.mxu0 %vm312_vm3, %v810_v33 }
 0x195   :  { %7413 = vmatpush3.xpose.msk.msra.mxu1 %vm312_vm3, %v561_v32  ;;  %7414 = vmatprep.mubr.msk.f32.mxu1 %vm8044_vm2, %v8043_v61  ;;  %v893_v35 = vpop.permute.xlu1 %892 }
 0x196   :  { %7429 = vmatprep.mubr.msk.f32.mxu0 %vm8044_vm2, %v8043_v61  ;;  %2443 = vrot.lane.b32.xlu0 %v974_v13, %s8046_s24 }
 0x197   :  { %2135 = vrot.lane.b32.xlu1 %v8169_v8, %s8046_s24  ;;  %7422 = vmatprep.subr.mxu1 %v8043_v61 }
 0x198   :  { %7415 = vmatmul.mubr.msk.f32.vlgmr.msra.gmra.mxu1 %vm312_vm3, %v8128_v0  ;;  %7430 = vmatmul.mubr.msk.f32.vlgmr.msra.gmra.mxu0 %vm312_vm3, %v8137_v1 }
 0x199   :  { %7423 = vmatpush3.xpose.msk.msra.mxu1 %vm312_vm3, %v727_v34  ;;  %7424 = vmatprep.mubr.msk.f32.mxu1 %vm8044_vm2, %v8043_v61 }
 0x19a   :  { %7432 = vmatprep.subr.mxu1 %v8043_v61  ;;  %7437 = vmatprep.subr.mxu0 %v8043_v61 }
 0x19b   :  { %2212 = vrot.lane.b32.xlu1 %v8175_v9, %s8046_s24  ;;  %7439 = vmatprep.mubr.msk.f32.mxu0 %vm8044_vm2, %v8043_v61 }
 0x19c   :  { %7425 = vmatmul.mubr.msk.f32.vlgmr.msra.gmra.mxu1 %vm312_vm3, %v8143_v2 }
 0x19d   :  { %7433 = vmatpush3.xpose.msk.msra.mxu1 %vm312_vm3, %v893_v35  ;;  %7434 = vmatprep.mubr.msk.f32.mxu1 %vm8044_vm2, %v8043_v61 }
 0x19e   :  { %7442 = vmatprep.subr.mxu1 %v8043_v61 }
 0x19f   :  { %2366 = vrot.lane.b32.xlu1 %v8184_v11, %s8046_s24 }
 0x1a0   :  { %7435 = vmatmul.mubr.msk.f32.vlgmr.msra.gmra.mxu1 %vm312_vm3, %v8151_v3 }
 0x1a1   :  { %7444 = vmatprep.mubr.msk.f32.mxu1 %vm8044_vm2, %v8043_v61 }
 0x1ec   :  { %v976_v36 = vpop.permute.xlu0 %975 }
 0x1ed   :  { %7438 = vmatpush3.xpose.msk.msra.mxu0 %vm312_vm3, %v976_v36 }
 0x1ee   :  { %7447 = vmatprep.subr.mxu0 %v8043_v61 }
 0x1f0   :  { %7440 = vmatmul.mubr.msk.f32.vlgmr.msra.gmra.mxu0 %vm312_vm3, %v8188_v12  ;;  %v1142_v37 = vpop.permute.xlu0 %1141  ;;  %v1059_v38 = vpop.permute.xlu1 %1058 }
 0x1f1   :  { %7443 = vmatpush3.xpose.msk.msra.mxu1 %vm312_vm3, %v1059_v38  ;;  %7448 = vmatpush3.xpose.msk.msra.mxu0 %vm312_vm3, %v1142_v37 }
 0x1f2   :  { %7449 = vmatprep.mubr.msk.f32.mxu0 %vm8044_vm2, %v8043_v61  ;;  %7457 = vmatprep.subr.mxu0 %v8043_v61 }
 0x1f3   :  { %7452 = vmatprep.subr.mxu1 %v8043_v61 }
 0x1f4   :  { %7450 = vmatmul.mubr.msk.f32.vlgmr.msra.gmra.mxu0 %vm312_vm3, %v8192_v14  ;;  %v1308_v39 = vpop.permute.xlu0 %1307  ;;  %7445 = vmatmul.mubr.msk.f32.vlgmr.msra.gmra.mxu1 %vm312_vm3, %v8195_v15  ;;  %v1225_v40 = vpop.permute.xlu1 %1224 }
 0x1f5   :  { %7453 = vmatpush3.xpose.msk.msra.mxu1 %vm312_vm3, %v1225_v40  ;;  %7458 = vmatpush3.xpose.msk.msra.mxu0 %vm312_vm3, %v1308_v39 }
 0x1f6   :  { %7454 = vmatprep.mubr.msk.f32.mxu1 %vm8044_vm2, %v8043_v61  ;;  %7459 = vmatprep.mubr.msk.f32.mxu0 %vm8044_vm2, %v8043_v61 }
 0x1f7   :  { %7467 = vmatprep.subr.mxu0 %v8043_v61  ;;  %7462 = vmatprep.subr.mxu1 %v8043_v61 }
 0x1f8   :  { %7460 = vmatmul.mubr.msk.f32.vlgmr.msra.gmra.mxu0 %vm312_vm3, %v8211_v19  ;;  %v1474_v41 = vpop.permute.xlu0 %1473  ;;  %7455 = vmatmul.mubr.msk.f32.vlgmr.msra.gmra.mxu1 %vm312_vm3, %v8205_v18  ;;  %v1391_v42 = vpop.permute.xlu1 %1390 }
 0x1f9   :  { %7463 = vmatpush3.xpose.msk.msra.mxu1 %vm312_vm3, %v1391_v42  ;;  %7468 = vmatpush3.xpose.msk.msra.mxu0 %vm312_vm3, %v1474_v41 }
 0x1fa   :  { %7464 = vmatprep.mubr.msk.f32.mxu1 %vm8044_vm2, %v8043_v61  ;;  %7469 = vmatprep.mubr.msk.f32.mxu0 %vm8044_vm2, %v8043_v61 }
 0x1fb   :  { %7472 = vmatprep.subr.mxu1 %v8043_v61  ;;  %7477 = vmatprep.subr.mxu0 %v8043_v61 }
 0x1fc   :  { %7470 = vmatmul.mubr.msk.f32.vlgmr.msra.gmra.mxu0 %vm312_vm3, %v8227_v23  ;;  %7465 = vmatmul.mubr.msk.f32.vlgmr.msra.gmra.mxu1 %vm312_vm3, %v8221_v22  ;;  %v1557_v43 = vpop.permute.xlu1 %1556  ;;  %v1905_v44 = vpop.permute.xlu0 %1904 }
 0x1fd   :  { %7473 = vmatpush3.xpose.msk.msra.mxu1 %vm312_vm3, %v1557_v43  ;;  %7474 = vmatprep.mubr.msk.f32.mxu1 %vm8044_vm2, %v8043_v61 }
 0x1fe   :  { %7482 = vmatprep.subr.mxu1 %v8043_v61  ;;  %7479 = vmatprep.mubr.msk.f32.mxu0 %vm8044_vm2, %v8043_v61 }
 0x200   :  { %7475 = vmatmul.mubr.msk.f32.vlgmr.msra.gmra.mxu1 %vm312_vm3, %v8237_v26  ;;  %v1826_v45 = vpop.permute.xlu1 %1825 }
 0x201   :  { %7478 = vmatpush3.msk.msra.mxu0 %vm1831_vm4, %v1826_v45  ;;  %7483 = vmatpush3.msk.msra.mxu1 %vm1831_vm4, %v1905_v44 }
 0x202   :  { %7484 = vmatprep.mubr.msk.f32.mxu1 %vm8044_vm2, %v8043_v61  ;;  %7487 = vmatprep.subr.mxu0 %v8043_v61 }
 0x203   :  { %7492 = vmatprep.subr.mxu1 %v8043_v61 }
 0x24b   :  { %v383_v46 = vpop.f32.mrf.mxu1 }
 0x24c   :  { %v8361_v47 = vmul.f32 0.25, %v383_v46 }
 0x24d   :  { %v7401_v48 = vpop.f32.mrf.mxu1 }
 0x24e   :  { %v1649_v49 = vsel %vm1648_vm5, %v8361_v47, -inf }
 0x24f   :  { %v466_v50 = vpop.f32.mrf.mxu1  ;;  %1650 = vmax.xlane.f32.xlu0 %v1649_v49 }
 0x250   :  { %v8377_v4 = vmul.f32 0.25, %v466_v50 }
 0x251   :  { %v7406_v51 = vpop.f32.mrf.mxu1 }
 0x252   :  { %v1652_v10 = vsel %vm1648_vm5, %v8377_v4, -inf }
 0x253   :  { %v549_v52 = vpop.f32.mrf.mxu1  ;;  %v715_v53 = vpop.f32.mrf.mxu0 }
 0x254   :  { %v8365_v55 = vmul.f32 0.25, %v549_v52  ;;  %v8367_v56 = vmul.f32 0.25, %v715_v53 }
 0x255   :  { %v7411_v57 = vpop.f32.mrf.mxu1  ;;  %v7421_v58 = vpop.f32.mrf.mxu0 }
 0x256   :  { %v1655_v59 = vsel %vm1648_vm5, %v8365_v55, -inf  ;;  %v1661_v60 = vsel %vm1648_vm5, %v8367_v56, -inf  ;;  %v8427_v58 = vpop.permute.xlu1 %1981 }
 0x257   :  { %1656 = vmax.xlane.f32.xlu0 %v1655_v59  ;;  %1662 = vmax.xlane.f32.xlu1 %v1661_v60  ;;  %v8429_v59 = vpop.permute.xlu0 %2058 }
 0x258   :  { %v881_v62 = vpop.f32.mrf.mxu0  ;;  %v632_v63 = vpop.f32.mrf.mxu1 }
 0x259   :  { %v8373_v0 = vmul.f32 0.25, %v881_v62  ;;  %v8375_v1 = vmul.f32 0.25, %v632_v63 }
 0x25a   :  { %v7416_v2 = vpop.f32.mrf.mxu1  ;;  %v7431_v3 = vpop.f32.mrf.mxu0 }
 0x25b   :  { %v1667_v5 = vsel %vm1648_vm5, %v8373_v0, -inf  ;;  %v1658_v6 = vsel %vm1648_vm5, %v8375_v1, -inf  ;;  %v8431_v60 = vpop.permute.xlu1 %2135  ;;  %v8435_v62 = vpop.permute.xlu0 %2289 }
 0x25c   :  { %1668 = vmax.xlane.f32.xlu1 %v1667_v5  ;;  %1659 = vmax.xlane.f32.xlu0 %v1658_v6  ;;  %v798_v7 = vpop.f32.mrf.mxu1 }
 0x25d   :  { %v8383_v8 = vmul.f32 0.25, %v798_v7 }
 0x25e   :  { %v7426_v9 = vpop.f32.mrf.mxu1 }
 0x25f   :  { %v1664_v11 = vsel %vm1648_vm5, %v8383_v8, -inf  ;;  %v8439_v63 = vpop.permute.xlu1 %2212  ;;  %v8441_v2 = vpop.permute.xlu0 %2443 }
 0x260   :  { %1653 = vmax.xlane.f32.xlu1 %v1652_v10  ;;  %1665 = vmax.xlane.f32.xlu0 %v1664_v11  ;;  %v964_v12 = vpop.f32.mrf.mxu1 }
 0x261   :  { %v8389_v13 = vmul.f32 0.25, %v964_v12 }
 0x262   :  { %v7436_v14 = vpop.f32.mrf.mxu1 }
 0x263   :  { %v1670_v15 = vsel %vm1648_vm5, %v8389_v13, -inf  ;;  %v8445_v3 = vpop.permute.xlu1 %2366 }
 0x264   :  { %1671 = vmax.xlane.f32.xlu0 %v1670_v15 }
 0x271   :  { %2520 = vrot.lane.b32.xlu1 %v8203_v17, %s8046_s24 }
 0x2b0   :  { %v1047_v18 = vpop.f32.mrf.mxu0 }
 0x2b1   :  { %v8395_v19 = vmul.f32 0.25, %v1047_v18 }
 0x2b2   :  { %v7441_v22 = vpop.f32.mrf.mxu0 }
 0x2b3   :  { %v1673_v23 = vsel %vm1648_vm5, %v8395_v19, -inf }
 0x2b4   :  { %v1213_v26 = vpop.f32.mrf.mxu0  ;;  %1674 = vmax.xlane.f32.xlu1 %v1673_v23  ;;  %v1130_v27 = vpop.f32.mrf.mxu1 }
 0x2b5   :  { %v8399_v29 = vmul.f32 0.25, %v1213_v26  ;;  %v8401_v30 = vmul.f32 0.25, %v1130_v27 }
 0x2b6   :  { %v7446_v31 = vpop.f32.mrf.mxu1  ;;  %v7451_v32 = vpop.f32.mrf.mxu0 }
 0x2b7   :  { %v1679_v33 = vsel %vm1648_vm5, %v8399_v29, -inf  ;;  %v1676_v17 = vsel %vm1648_vm5, %v8401_v30, -inf }
 0x2b8   :  { %v1379_v34 = vpop.f32.mrf.mxu0  ;;  %1680 = vmax.xlane.f32.xlu1 %v1679_v33  ;;  %1677 = vmax.xlane.f32.xlu0 %v1676_v17  ;;  %v1296_v35 = vpop.f32.mrf.mxu1 }
 0x2b9   :  { %v8407_v36 = vmul.f32 0.25, %v1379_v34  ;;  %v8409_v37 = vmul.f32 0.25, %v1296_v35 }
 0x2ba   :  { %v7456_v38 = vpop.f32.mrf.mxu1  ;;  %v7461_v39 = vpop.f32.mrf.mxu0 }
 0x2bb   :  { %v1685_v40 = vsel %vm1648_vm5, %v8407_v36, -inf  ;;  %v1682_v41 = vsel %vm1648_vm5, %v8409_v37, -inf }
 0x2bc   :  { %v1545_v42 = vpop.f32.mrf.mxu0  ;;  %1686 = vmax.xlane.f32.xlu1 %v1685_v40  ;;  %1683 = vmax.xlane.f32.xlu0 %v1682_v41  ;;  %v1462_v43 = vpop.f32.mrf.mxu1 }
 0x2bd   :  { %v8415_v44 = vmul.f32 0.25, %v1545_v42  ;;  %v8417_v45 = vmul.f32 0.25, %v1462_v43 }
 0x2be   :  { %v7466_v46 = vpop.f32.mrf.mxu1  ;;  %v7471_v48 = vpop.f32.mrf.mxu0 }
 0x2bf   :  { %v1691_v49 = vsel %vm1648_vm5, %v8415_v44, -inf  ;;  %v1688_v50 = vsel %vm1648_vm5, %v8417_v45, -inf }
 0x2c0   :  { %1692 = vmax.xlane.f32.xlu1 %v1691_v49  ;;  %1689 = vmax.xlane.f32.xlu0 %v1688_v50  ;;  %v1628_v51 = vpop.f32.mrf.mxu1 }
 0x2c1   :  { %v8423_v52 = vmul.f32 0.25, %v1628_v51 }
 0x2c2   :  { %v7476_v53 = vpop.f32.mrf.mxu1 }
 0x2c3   :  { %v1694_v57 = vsel %vm1648_vm5, %v8423_v52, -inf }
 0x2c4   :  { %1695 = vmax.xlane.f32.xlu0 %v1694_v57 }
 0x2d1   :  { %2674 = vrot.lane.b32.xlu1 %v8215_v20, %s8046_s24 }
 0x2d5   :  { %2828 = vrot.lane.b32.xlu1 %v8231_v24, %s8046_s24 }
 0x2d8   :  { %v1651_v5 = vpop.xlane.xlu0 %1650 }
 0x2d9   :  { %v1697_v9 = vsub.f32 %v8361_v47, %v1651_v5 }
 0x2da   :  { %2597 = vrot.lane.b32.xlu0 %v8199_v16, %s8046_s24 }
 0x2db   :  { %v1713_v12 = vmul.f32 1.442695, %v1697_v9 }
 0x2de   :  { %2751 = vrot.lane.b32.xlu0 %v8219_v21, %s8046_s24 }
 0x2e0   :  { %v1657_v6 = vpop.xlane.xlu0 %1656  ;;  %v1663_v20 = vpop.xlane.xlu1 %1662 }
 0x2e1   :  { %v1701_v7 = vsub.f32 %v8367_v56, %v1663_v20  ;;  %v1699_v21 = vsub.f32 %v8365_v55, %v1657_v6 }
 0x2e3   :  { %v1721_v24 = vmul.f32 1.442695, %v1701_v7  ;;  %v1717_v31 = vmul.f32 1.442695, %v1699_v21 }
 0x2e5   :  { %v1660_v10 = vpop.xlane.xlu0 %1659  ;;  %v1669_v11 = vpop.xlane.xlu1 %1668  ;;  %7833 = vpow2.f32 %v1721_v24 }
 0x2e6   :  { %v1703_v14 = vsub.f32 %v8373_v0, %v1669_v11  ;;  %v1700_v16 = vsub.f32 %v8375_v1, %v1660_v10  ;;  %7835 = vpow2.f32 %v1713_v12 }
 0x2e8   :  { %v1725_v23 = vmul.f32 1.442695, %v1703_v14  ;;  %v1719_v26 = vmul.f32 1.442695, %v1700_v16 }
 0x2e9   :  { %v1666_v15 = vpop.xlane.xlu0 %1665  ;;  %v1654_v18 = vpop.xlane.xlu1 %1653 }
 0x2ea   :  { %v1698_v22 = vsub.f32 %v8377_v4, %v1654_v18  ;;  %v1702_v47 = vsub.f32 %v8383_v8, %v1666_v15 }
 0x2ec   :  { %v1715_v56 = vmul.f32 1.442695, %v1698_v22  ;;  %v1723_v0 = vmul.f32 1.442695, %v1702_v47 }
 0x2ed   :  { %v1672_v27 = vpop.xlane.xlu0 %1671  ;;  %v8489_v49 = vpop.permute.xlu1 %2520 }
 0x2ee   :  { %7837 = vpow2.f32 %v1715_v56  ;;  %v1704_v1 = vsub.f32 %v8389_v13, %v1672_v27 }
 0x2ef   :  { %7839 = vpow2.f32 %v1725_v23 }
 0x2f0   :  { %7841 = vpow2.f32 %v1719_v26  ;;  %v1727_v4 = vmul.f32 1.442695, %v1704_v1 }
 0x2f1   :  { %7843 = vpow2.f32 %v1717_v31 }
 0x2f2   :  { %v8457_v32 = vpop.eup %7833  ;;  %7845 = vpow2.f32 %v1723_v0 }
 0x2f3   :  { %v1757_v55 = vsel %vm1648_vm5, %v8457_v32, 0.0  ;;  %v8461_v33 = vpop.eup %7835  ;;  %7847 = vpow2.f32 %v1727_v4 }
 0x2f4   :  { %v1745_v17 = vsel %vm1648_vm5, %v8461_v33, 0.0 }
 0x2f9   :  { %1758 = vadd.xlane.f32.xlu1 %v1757_v55 }
 0x2fb   :  { %v8463_v8 = vpop.eup %7837 }
 0x2fc   :  { %v8467_v34 = vpop.eup %7839  ;;  %v1748_v13 = vsel %vm1648_vm5, %v8463_v8, 0.0 }
 0x2fd   :  { %1746 = vadd.xlane.f32.xlu1 %v1745_v17  ;;  %v8471_v35 = vpop.eup %7841  ;;  %1749 = vadd.xlane.f32.xlu0 %v1748_v13  ;;  %v1763_v38 = vsel %vm1648_vm5, %v8467_v34, 0.0 }
 0x2fe   :  { %v8475_v39 = vpop.eup %7843  ;;  %v1754_v40 = vsel %vm1648_vm5, %v8471_v35, 0.0 }
 0x2ff   :  { %v8479_v41 = vpop.eup %7845  ;;  %v1751_v42 = vsel %vm1648_vm5, %v8475_v39, 0.0 }
 0x300   :  { %v1760_v43 = vsel %vm1648_vm5, %v8479_v41, 0.0  ;;  %v8485_v46 = vpop.eup %7847 }
 0x301   :  { %1764 = vadd.xlane.f32.xlu1 %v1763_v38  ;;  %1755 = vadd.xlane.f32.xlu0 %v1754_v40  ;;  %v1766_v48 = vsel %vm1648_vm5, %v8485_v46, 0.0 }
 0x305   :  { %1752 = vadd.xlane.f32.xlu1 %v1751_v42  ;;  %1761 = vadd.xlane.f32.xlu0 %v1760_v43 }
 0x309   :  { %1767 = vadd.xlane.f32.xlu0 %v1766_v48 }
 0x33d   :  { %v1675_v50 = vpop.xlane.xlu1 %1674 }
 0x33e   :  { %v1705_v51 = vsub.f32 %v8395_v19, %v1675_v50 }
 0x340   :  { %v1729_v53 = vmul.f32 1.442695, %v1705_v51 }
 0x341   :  { %v1678_v57 = vpop.xlane.xlu0 %1677  ;;  %v1681_v5 = vpop.xlane.xlu1 %1680 }
 0x342   :  { %7849 = vpow2.f32 %v1729_v53  ;;  %v1706_v6 = vsub.f32 %v8401_v30, %v1678_v57  ;;  %v1707_v20 = vsub.f32 %v8399_v29, %v1681_v5 }
 0x344   :  { %v1731_v7 = vmul.f32 1.442695, %v1706_v6  ;;  %v1733_v9 = vmul.f32 1.442695, %v1707_v20 }
 0x345   :  { %v1684_v24 = vpop.xlane.xlu0 %1683  ;;  %v1687_v10 = vpop.xlane.xlu1 %1686 }
 0x346   :  { %7851 = vpow2.f32 %v1731_v7  ;;  %v1708_v11 = vsub.f32 %v8409_v37, %v1684_v24  ;;  %v1709_v12 = vsub.f32 %v8407_v36, %v1687_v10 }
 0x347   :  { %7853 = vpow2.f32 %v1733_v9 }
 0x348   :  { %v1735_v14 = vmul.f32 1.442695, %v1708_v11  ;;  %v1737_v19 = vmul.f32 1.442695, %v1709_v12 }
 0x349   :  { %v1690_v16 = vpop.xlane.xlu0 %1689  ;;  %v1693_v15 = vpop.xlane.xlu1 %1692 }
 0x34a   :  { %7855 = vpow2.f32 %v1735_v14  ;;  %v1710_v18 = vsub.f32 %v8417_v45, %v1690_v16  ;;  %v1711_v30 = vsub.f32 %v8415_v44, %v1693_v15 }
 0x34b   :  { %7857 = vpow2.f32 %v1737_v19 }
 0x34c   :  { %v1739_v29 = vmul.f32 1.442695, %v1710_v18  ;;  %v1741_v22 = vmul.f32 1.442695, %v1711_v30 }
 0x34d   :  { %v1696_v21 = vpop.xlane.xlu0 %1695  ;;  %v8535_v40 = vpop.permute.xlu1 %2674 }
 0x34e   :  { %7859 = vpow2.f32 %v1739_v29  ;;  %v1712_v23 = vsub.f32 %v8423_v52, %v1696_v21 }
 0x34f   :  { %v8499_v37 = vpop.eup %7849  ;;  %7861 = vpow2.f32 %v1741_v22 }
 0x350   :  { %v1743_v36 = vmul.f32 1.442695, %v1712_v23  ;;  %v1769_v56 = vsel %vm1648_vm5, %v8499_v37, 0.0 }
 0x351   :  { %1770 = vadd.xlane.f32.xlu1 %v1769_v56  ;;  %v8537_v42 = vpop.permute.xlu0 %2597  ;;  %v8539_v43 = vpop.permute.xlu1 %2828 }
 0x352   :  { %7863 = vpow2.f32 %v1743_v36 }
 0x353   :  { %v8503_v26 = vpop.eup %7851 }
 0x354   :  { %v8505_v45 = vpop.eup %7853  ;;  %v1772_v44 = vsel %vm1648_vm5, %v8503_v26, 0.0 }
 0x355   :  { %1773 = vadd.xlane.f32.xlu0 %v1772_v44  ;;  %v1775_v52 = vsel %vm1648_vm5, %v8505_v45, 0.0  ;;  %v8541_v50 = vpop.permute.xlu0 %2751 }
 0x356   :  { %1776 = vadd.xlane.f32.xlu1 %v1775_v52 }
 0x357   :  { %v8511_v47 = vpop.eup %7855 }
 0x358   :  { %v8513_v27 = vpop.eup %7857  ;;  %v1778_v31 = vsel %vm1648_vm5, %v8511_v47, 0.0 }
 0x359   :  { %1779 = vadd.xlane.f32.xlu0 %v1778_v31  ;;  %v1781_v0 = vsel %vm1648_vm5, %v8513_v27, 0.0 }
 0x35a   :  { %1782 = vadd.xlane.f32.xlu1 %v1781_v0 }
 0x35b   :  { %v8519_v1 = vpop.eup %7859 }
 0x35c   :  { %v8521_v4 = vpop.eup %7861  ;;  %v1784_v55 = vsel %vm1648_vm5, %v8519_v1, 0.0 }
 0x35d   :  { %1785 = vadd.xlane.f32.xlu0 %v1784_v55  ;;  %v1787_v17 = vsel %vm1648_vm5, %v8521_v4, 0.0 }
 0x35e   :  { %1788 = vadd.xlane.f32.xlu1 %v1787_v17 }
 0x35f   :  { %v8527_v13 = vpop.eup %7863 }
 0x360   :  { %v1790_v38 = vsel %vm1648_vm5, %v8527_v13, 0.0 }
 0x361   :  { %1791 = vadd.xlane.f32.xlu0 %v1790_v38 }
 0x36f   :  { %2982 = vrot.lane.b32.xlu1 %v8245_v28, %s8046_s24 }
 0x377   :  { %2905 = vrot.lane.b32.xlu0 %v8235_v25, %s8046_s24 }
 0x382   :  { %v1759_v48 = vpop.xlane.xlu1 %1758 }
 0x386   :  { %v1747_v51 = vpop.xlane.xlu1 %1746  ;;  %v1750_v53 = vpop.xlane.xlu0 %1749 }
 0x387   :  { %7865 = vrcp.f32 %v1747_v51 }
 0x388   :  { %7867 = vrcp.f32 %v1750_v53 }
 0x38a   :  { %v1765_v57 = vpop.xlane.xlu1 %1764  ;;  %v1756_v5 = vpop.xlane.xlu0 %1755 }
 0x38b   :  { %7869 = vrcp.f32 %v1756_v5 }
 0x38e   :  { %v1753_v28 = vpop.xlane.xlu1 %1752  ;;  %v1762_v6 = vpop.xlane.xlu0 %1761 }
 0x38f   :  { %7871 = vrcp.f32 %v1753_v28 }
 0x390   :  { %7873 = vrcp.f32 %v1762_v6  ;;  %v144_v6 = vld [vmem:[#allocation5 + $0x38] sm:$0xff] }
 0x391   :  { %7875 = vrcp.f32 %v1759_v48 }
 0x392   :  { %v1768_v25 = vpop.xlane.xlu0 %1767 }
 0x393   :  { %7877 = vrcp.f32 %v1768_v25 }
 0x394   :  { %v7866_v20 = vpop.eup %7865  ;;  %7879 = vrcp.f32 %v1765_v57 }
 0x395   :  { %v7868_v7 = vpop.eup %7867  ;;  %v1809_v9 = vmul.f32 %v7866_v20, %v8461_v33 }
 0x396   :  { %v1810_v24 = vmul.f32 %v7868_v7, %v8463_v8 }
 0x397   :  { %7480 = vmatmul.mubr.msk.f32.vlgmr.msra.gmra.mxu0 %vm1827_vm6, %v1809_v9  ;;  %v143_v9 = vld [vmem:[#allocation5 + $0x30] sm:$0xff] }
 0x398   :  { %7485 = vmatmul.mubr.msk.f32.vlgmr.msra.gmra.mxu1 %vm1827_vm6, %v1810_v24  ;;  %7488 = vmatpush3.msk.msra.mxu0 %vm1831_vm4, %v8427_v58  ;;  %v7870_v10 = vpop.eup %7869 }
 0x399   :  { %7493 = vmatpush3.msk.msra.mxu1 %vm1831_vm4, %v8429_v59  ;;  %7494 = vmatprep.mubr.msk.f32.mxu1 %vm8044_vm2, %v8043_v61  ;;  %v1812_v33 = vmul.f32 %v7870_v10, %v8471_v35 }
 0x39a   :  { %7502 = vmatprep.subr.mxu1 %v8043_v61  ;;  %7489 = vmatprep.mubr.msk.f32.mxu0 %vm8044_vm2, %v8043_v61 }
 0x39b   :  { %7497 = vmatprep.subr.mxu0 %v8043_v61 }
 0x39c   :  { %v7872_v8 = vpop.eup %7871  ;;  %7495 = vmatmul.mubr.msk.f32.vlgmr.msra.gmra.mxu1 %vm1827_vm6, %v1812_v33  ;;  %v142_v33 = vld [vmem:[#allocation5 + $0x28] sm:$0xff] }
 0x39d   :  { %v7874_v58 = vpop.eup %7873  ;;  %7503 = vmatpush3.msk.msra.mxu1 %vm1831_vm4, %v8439_v63  ;;  %7504 = vmatprep.mubr.msk.f32.mxu1 %vm8044_vm2, %v8043_v61  ;;  %v1811_v59 = vmul.f32 %v7872_v8, %v8475_v39 }
 0x39e   :  { %v7876_v11 = vpop.eup %7875  ;;  %7512 = vmatprep.subr.mxu1 %v8043_v61  ;;  %v1814_v35 = vmul.f32 %v7874_v58, %v8479_v41  ;;  %v141_v58 = vld [vmem:[#allocation5 + $0x20] sm:$0xff] }
 0x39f   :  { %7490 = vmatmul.mubr.msk.f32.vlgmr.msra.gmra.mxu0 %vm1827_vm6, %v1811_v59  ;;  %v1813_v63 = vmul.f32 %v7876_v11, %v8457_v32 }
 0x3a0   :  { %7498 = vmatpush3.msk.msra.mxu0 %vm1831_vm4, %v8431_v60  ;;  %7505 = vmatmul.mubr.msk.f32.vlgmr.msra.gmra.mxu1 %vm1827_vm6, %v1814_v35  ;;  %v7878_v12 = vpop.eup %7877 }
 0x3a1   :  { %7513 = vmatpush3.msk.msra.mxu1 %vm1831_vm4, %v8445_v3  ;;  %7499 = vmatprep.mubr.msk.f32.mxu0 %vm8044_vm2, %v8043_v61  ;;  %v7880_v39 = vpop.eup %7879  ;;  %v1816_v41 = vmul.f32 %v7878_v12, %v8485_v46 }
 0x3a2   :  { %7507 = vmatprep.subr.mxu0 %v8043_v61  ;;  %7514 = vmatprep.mubr.msk.f32.mxu1 %vm8044_vm2, %v8043_v61  ;;  %v1815_v60 = vmul.f32 %v7880_v39, %v8467_v34 }
 0x3a3   :  { %7522 = vmatprep.subr.mxu1 %v8043_v61  ;;  %7500 = vmatmul.mubr.msk.f32.vlgmr.msra.gmra.mxu0 %vm1827_vm6, %v1813_v63 }
 0x3a4   :  { %7508 = vmatpush3.msk.msra.mxu0 %vm1831_vm4, %v8435_v62  ;;  %7515 = vmatmul.mubr.msk.f32.vlgmr.msra.gmra.mxu1 %vm1827_vm6, %v1816_v41 }
 0x3a5   :  { %7523 = vmatpush3.msk.msra.mxu1 %vm1831_vm4, %v8489_v49  ;;  %7509 = vmatprep.mubr.msk.f32.mxu0 %vm8044_vm2, %v8043_v61 }
 0x3a6   :  { %7517 = vmatprep.subr.mxu0 %v8043_v61  ;;  %7524 = vmatprep.mubr.msk.f32.mxu1 %vm8044_vm2, %v8043_v61 }
 0x3a7   :  { %7510 = vmatmul.mubr.msk.f32.vlgmr.msra.gmra.mxu0 %vm1827_vm6, %v1815_v60  ;;  %7532 = vmatprep.subr.mxu1 %v8043_v61 }
 0x3a8   :  { %7518 = vmatpush3.msk.msra.mxu0 %vm1831_vm4, %v8441_v2  ;;  %7519 = vmatprep.mubr.msk.f32.mxu0 %vm8044_vm2, %v8043_v61 }
 0x3a9   :  { %7527 = vmatprep.subr.mxu0 %v8043_v61 }
 0x3da   :  { %v1771_v62 = vpop.xlane.xlu1 %1770 }
 0x3db   :  { %7881 = vrcp.f32 %v1771_v62 }
 0x3de   :  { %v1774_v3 = vpop.xlane.xlu0 %1773 }
 0x3df   :  { %7883 = vrcp.f32 %v1774_v3  ;;  %v1777_v32 = vpop.xlane.xlu1 %1776 }
 0x3e0   :  { %7885 = vrcp.f32 %v1777_v32 }
 0x3e2   :  { %v1780_v34 = vpop.xlane.xlu0 %1779 }
 0x3e3   :  { %7887 = vrcp.f32 %v1780_v34  ;;  %v1783_v46 = vpop.xlane.xlu1 %1782 }
 0x3e4   :  { %7889 = vrcp.f32 %v1783_v46 }
 0x3e6   :  { %v1786_v49 = vpop.xlane.xlu0 %1785 }
 0x3e7   :  { %7891 = vrcp.f32 %v1786_v49  ;;  %v1789_v14 = vpop.xlane.xlu1 %1788 }
 0x3e8   :  { %v7882_v19 = vpop.eup %7881  ;;  %7893 = vrcp.f32 %v1789_v14 }
 0x3e9   :  { %v1817_v2 = vmul.f32 %v7882_v19, %v8499_v37 }
 0x3ea   :  { %v1792_v16 = vpop.xlane.xlu0 %1791 }
 0x3eb   :  { %7895 = vrcp.f32 %v1792_v16  ;;  %7520 = vmatmul.mubr.msk.f32.vlgmr.msra.gmra.mxu0 %vm1827_vm6, %v1817_v2  ;;  %v2983_v52 = vpop.permute.xlu1 %2982 }
 0x3ec   :  { %v7884_v15 = vpop.eup %7883  ;;  %7528 = vmatpush3.msk.msra.mxu0 %vm1831_vm4, %v8537_v42  ;;  %7529 = vmatprep.mubr.msk.f32.mxu0 %vm8044_vm2, %v8043_v61 }
 0x3ed   :  { %v7886_v18 = vpop.eup %7885  ;;  %7537 = vmatprep.subr.mxu0 %v8043_v61  ;;  %v1818_v30 = vmul.f32 %v7884_v15, %v8503_v26 }
 0x3ee   :  { %v1819_v29 = vmul.f32 %v7886_v18, %v8505_v45  ;;  %v2906_v56 = vpop.permute.xlu0 %2905 }
 0x3ef   :  { %7525 = vmatmul.mubr.msk.f32.vlgmr.msra.gmra.mxu1 %vm1827_vm6, %v1818_v30 }
 0x3f0   :  { %v7888_v22 = vpop.eup %7887  ;;  %7530 = vmatmul.mubr.msk.f32.vlgmr.msra.gmra.mxu0 %vm1827_vm6, %v1819_v29  ;;  %7533 = vmatpush3.msk.msra.mxu1 %vm1831_vm4, %v8535_v40 }
 0x3f1   :  { %v7890_v21 = vpop.eup %7889  ;;  %7538 = vmatpush3.msk.msra.mxu0 %vm1831_vm4, %v8541_v50  ;;  %7534 = vmatprep.mubr.msk.f32.mxu1 %vm8044_vm2, %v8043_v61  ;;  %v1820_v23 = vmul.f32 %v7888_v22, %v8511_v47 }
 0x3f2   :  { %7539 = vmatprep.mubr.msk.f32.mxu0 %vm8044_vm2, %v8043_v61  ;;  %7542 = vmatprep.subr.mxu1 %v8043_v61  ;;  %v1821_v37 = vmul.f32 %v7890_v21, %v8513_v27 }
 0x3f3   :  { %7547 = vmatprep.subr.mxu0 %v8043_v61  ;;  %7535 = vmatmul.mubr.msk.f32.vlgmr.msra.gmra.mxu1 %vm1827_vm6, %v1820_v23 }
 0x3f4   :  { %v7892_v36 = vpop.eup %7891  ;;  %7540 = vmatmul.mubr.msk.f32.vlgmr.msra.gmra.mxu0 %vm1827_vm6, %v1821_v37  ;;  %7543 = vmatpush3.msk.msra.mxu1 %vm1831_vm4, %v8539_v43 }
 0x3f5   :  { %v7894_v26 = vpop.eup %7893  ;;  %7548 = vmatpush3.msk.msra.mxu0 %vm1831_vm4, %v2906_v56  ;;  %7544 = vmatprep.mubr.msk.f32.mxu1 %vm8044_vm2, %v8043_v61  ;;  %v1822_v45 = vmul.f32 %v7892_v36, %v8519_v1 }
 0x3f6   :  { %7549 = vmatprep.mubr.msk.f32.mxu0 %vm8044_vm2, %v8043_v61  ;;  %7552 = vmatprep.subr.mxu1 %v8043_v61  ;;  %v1823_v44 = vmul.f32 %v7894_v26, %v8521_v4 }
 0x3f7   :  { %7545 = vmatmul.mubr.msk.f32.vlgmr.msra.gmra.mxu1 %vm1827_vm6, %v1822_v45  ;;  %7557 = vmatprep.subr.mxu0 %v144_v6 }
 0x3f8   :  { %v7896_v47 = vpop.eup %7895  ;;  %7550 = vmatmul.mubr.msk.f32.vlgmr.msra.gmra.mxu0 %vm1827_vm6, %v1823_v44  ;;  %7553 = vmatpush3.msk.msra.mxu1 %vm1831_vm4, %v2983_v52 }
 0x3f9   :  { %7554 = vmatprep.mubr.msk.f32.mxu1 %vm8044_vm2, %v8043_v61  ;;  %v1824_v27 = vmul.f32 %v7896_v47, %v8527_v13  ;;  %7558 = vmatpush3.msra.mxu0 %v144_v6 }
 0x3fa   :  { %7559 = vmatprep.subr.mxu0 %v143_v9 }
 0x3fb   :  { %7555 = vmatmul.mubr.msk.f32.vlgmr.msra.gmra.mxu1 %vm1827_vm6, %v1824_v27  ;;  %7560 = vmatpush3.msra.mxu0 %v143_v9  ;;  %v147_v9 = vld [vmem:[#allocation5 + $0x50] sm:$0xff] }
 0x3fc   :  { %7561 = vmatprep.subr.mxu0 %v142_v33 }
 0x3fd   :  { %7562 = vmatpush3.msra.mxu0 %v142_v33  ;;  %v156_v33 = vld [vmem:[#allocation5 + $0x98] sm:$0xff] }
 0x3fe   :  { %7563 = vmatprep.subr.mxu0 %v141_v58 }
 0x3ff   :  { %7564 = vmatpush3.msra.mxu0 %v141_v58  ;;  %v154_v58 = vld [vmem:[#allocation5 + $0x88] sm:$0xff] }
 0x400   :  { %7579 = vmatprep.subr.mxu0 %v156_v33 }
 0x457   :  { %v1900_v31 = vpop.f32.mrf.mxu0 }
 0x458   :  { %v1977_v0 = vpop.f32.mrf.mxu1 }
 0x459   :  { %v7481_v1 = vpop.f32.mrf.mxu0 }
 0x45a   :  { %v7486_v55 = vpop.f32.mrf.mxu1 }
 0x45c   :  { %v2131_v4 = vpop.f32.mrf.mxu1 }
 0x45e   :  { %v7496_v17 = vpop.f32.mrf.mxu1 }
 0x45f   :  { %v2054_v38 = vpop.f32.mrf.mxu0  ;;  %v7977_v17 = vld [vmem:[#allocation2 + $0x8] sm:$0xff] }
 0x460   :  { %v2285_v40 = vpop.f32.mrf.mxu1 }
 0x461   :  { %v7491_v42 = vpop.f32.mrf.mxu0 }
 0x462   :  { %v7506_v43 = vpop.f32.mrf.mxu1  ;;  %v7978_v42 = vld [vmem:[#allocation2] sm:$0xff] }
 0x463   :  { %v2208_v48 = vpop.f32.mrf.mxu0 }
 0x464   :  { %v8641_v50 = vpop.f32.mrf.mxu1 }
 0x465   :  { %v7501_v51 = vpop.f32.mrf.mxu0 }
 0x466   :  { %v7516_v53 = vpop.f32.mrf.mxu1 }
 0x467   :  { %v2362_v57 = vpop.f32.mrf.mxu0 }
 0x469   :  { %v7511_v5 = vpop.f32.mrf.mxu0 }
 0x4ab   :  { %v2516_v13 = vpop.f32.mrf.mxu0 }
 0x4ac   :  { %3067 = vrot.lane.b32.xlu0 %v2516_v13, %s8047_s25 }
 0x4ad   :  { %v7521_v28 = vpop.f32.mrf.mxu0 }
 0x4af   :  { %v2593_v25 = vpop.f32.mrf.mxu1 }
 0x4b0   :  { %v2670_v20 = vpop.f32.mrf.mxu0  ;;  %3069 = vrot.lane.b32.xlu1 %v2593_v25, %s8047_s25 }
 0x4b1   :  { %3071 = vrot.lane.b32.xlu0 %v2670_v20, %s8047_s25  ;;  %v7526_v7 = vpop.f32.mrf.mxu1 }
 0x4b2   :  { %v7531_v24 = vpop.f32.mrf.mxu0  ;;  %v148_v7 = vld [vmem:[#allocation5 + $0x58] sm:$0xff] }
 0x4b3   :  { %v2747_v10 = vpop.f32.mrf.mxu1  ;;  %7568 = vmatprep.subr.mxu1 %v148_v7  ;;  %v146_v24 = vld [vmem:[#allocation5 + $0x48] sm:$0xff] }
 0x4b4   :  { %v2824_v8 = vpop.f32.mrf.mxu0  ;;  %3073 = vrot.lane.b32.xlu1 %v2747_v10, %s8047_s25  ;;  %7569 = vmatpush3.msra.mxu1 %v148_v7  ;;  %v145_v10 = vld [vmem:[#allocation5 + $0x40] sm:$0xff] }
 0x4b5   :  { %3075 = vrot.lane.b32.xlu0 %v2824_v8, %s8047_s25  ;;  %v7536_v59 = vpop.f32.mrf.mxu1  ;;  %7570 = vmatprep.subr.mxu1 %v147_v9  ;;  %v155_v8 = vld [vmem:[#allocation5 + $0x90] sm:$0xff] }
 0x4b6   :  { %v7541_v11 = vpop.f32.mrf.mxu0  ;;  %7571 = vmatpush3.msra.mxu1 %v147_v9  ;;  %v153_v59 = vld [vmem:[#allocation5 + $0x80] sm:$0xff] }
 0x4b7   :  { %v2901_v35 = vpop.f32.mrf.mxu1  ;;  %7572 = vmatprep.subr.mxu1 %v146_v24 }
 0x4b8   :  { %v2978_v12 = vpop.f32.mrf.mxu0  ;;  %3077 = vrot.lane.b32.xlu1 %v2901_v35, %s8047_s25  ;;  %7573 = vmatpush3.msra.mxu1 %v146_v24 }
 0x4b9   :  { %3079 = vrot.lane.b32.xlu0 %v2978_v12, %s8047_s25  ;;  %v7546_v63 = vpop.f32.mrf.mxu1  ;;  %7574 = vmatprep.subr.mxu1 %v145_v10 }
 0x4ba   :  { %v7551_v39 = vpop.f32.mrf.mxu0  ;;  %7575 = vmatpush3.msra.mxu1 %v145_v10  ;;  %v7113_v10 = vld [vmem:[#allocation5 + $0xa6] ss:$0 sm:$0xff] }
 0x4bb   :  { %v3055_v41 = vpop.f32.mrf.mxu1 }
 0x4bc   :  { %3081 = vrot.lane.b32.xlu1 %v3055_v41, %s8047_s25 }
 0x4bd   :  { %v7556_v60 = vpop.f32.mrf.mxu1 }
 0x51e   :  { %v3068_v62 = vpop.permute.xlu0 %3067 }
 0x51f   :  { %v3091_v46 = vsel %vm312_vm3, %v1900_v31, %v3068_v62  ;;  %v7102_v31 = vld [vmem:[#allocation5 + $0xa1] ss:$0 sm:$0xff]  ;;  %v7105_v62 = vld [vmem:[#allocation5 + $0xa2] ss:$0 sm:$0xff] }
 0x522   :  { %v3070_v3 = vpop.permute.xlu1 %3069 }
 0x523   :  { %v3072_v32 = vpop.permute.xlu0 %3071  ;;  %v3092_v34 = vsel %vm312_vm3, %v1977_v0, %v3070_v3 }
 0x524   :  { %v3111_v49 = vcombine.low %v3091_v46, %v3092_v34  ;;  %v3093_v19 = vsel %vm312_vm3, %v2054_v38, %v3072_v32  ;;  %v7106_v32 = vld [vmem:[#allocation5 + $0xa3] ss:$0 sm:$0xff] }
 0x526   :  { %v3074_v14 = vpop.permute.xlu1 %3073  ;;  %v3119_v18 = vrot.slane %v3111_v49, %v8103_v54 }
 0x527   :  { %v3076_v2 = vpop.permute.xlu0 %3075  ;;  %v3094_v16 = vsel %vm312_vm3, %v2131_v4, %v3074_v14 }
 0x528   :  { %v3112_v15 = vcombine.low %v3093_v19, %v3094_v16  ;;  %v3095_v37 = vsel %vm312_vm3, %v2208_v48, %v3076_v2  ;;  %v152_v16 = vld [vmem:[#allocation5 + $0x78] sm:$0xff] }
 0x52a   :  { %v3126_v30 = vrot.slane %v3112_v15, %v8103_v54  ;;  %v3078_v29 = vpop.permute.xlu1 %3077  ;;  %v151_v15 = vld [vmem:[#allocation5 + $0x70] sm:$0xff] }
 0x52b   :  { %v3096_v22 = vsel %vm312_vm3, %v2285_v40, %v3078_v29  ;;  %v3080_v23 = vpop.permute.xlu0 %3079  ;;  %v7107_v29 = vld [vmem:[#allocation5 + $0xa4] ss:$0 sm:$0xff] }
 0x52c   :  { %v3127_v21 = vcombine.low %v3119_v18, %v3126_v30  ;;  %v3128_v36 = vcombine.low %v3095_v37, %v3096_v22  ;;  %v3097_v26 = vsel %vm312_vm3, %v2362_v57, %v3080_v23  ;;  %v150_v18 = vld [vmem:[#allocation5 + $0x68] sm:$0xff]  ;;  %v149_v30 = vld [vmem:[#allocation5 + $0x60] sm:$0xff] }
 0x52e   :  { %7565 = vmatprep.mubr.msk.f32.mxu0 %vm169_vm1, %v3127_v21  ;;  %v3082_v56 = vpop.permute.xlu1 %3081  ;;  %v3136_v52 = vrot.slane %v3128_v36, %v8103_v54 }
 0x52f   :  { %v3098_v45 = vsel %vm312_vm3, %v8641_v50, %v3082_v56 }
 0x530   :  { %v3129_v44 = vcombine.low %v3097_v26, %v3098_v45  ;;  %v7110_v26 = vld [vmem:[#allocation5 + $0xa5] ss:$0 sm:$0xff] }
 0x532   :  { %v3143_v47 = vrot.slane %v3129_v44, %v8103_v54 }
 0x534   :  { %v3144_v27 = vcombine.low %v3136_v52, %v3143_v47 }
 0x536   :  { %7566 = vmatmul.mubr.msk.f32.vlgmr.msra.gmra.mxu0 %vm169_vm1, %v3144_v27 }
 0x537   :  { %7580 = vmatpush3.msra.mxu0 %v156_v33 }
 0x538   :  { %7581 = vmatprep.subr.mxu0 %v155_v8 }
 0x539   :  { %7582 = vmatpush3.msra.mxu0 %v155_v8 }
 0x53a   :  { %7583 = vmatprep.subr.mxu0 %v154_v58 }
 0x53b   :  { %7584 = vmatpush3.msra.mxu0 %v154_v58 }
 0x53c   :  { %7585 = vmatprep.subr.mxu0 %v153_v59 }
 0x53d   :  { %7586 = vmatpush3.msra.mxu0 %v153_v59 }
 0x53e   :  { %7587 = vmatprep.subr.mxu0 %v152_v16 }
 0x53f   :  { %7588 = vmatpush3.msra.mxu0 %v152_v16 }
 0x540   :  { %7589 = vmatprep.subr.mxu0 %v151_v15 }
 0x541   :  { %7590 = vmatpush3.msra.mxu0 %v151_v15 }
 0x542   :  { %7591 = vmatprep.subr.mxu0 %v150_v18 }
 0x543   :  { %7592 = vmatpush3.msra.mxu0 %v150_v18 }
 0x544   :  { %7593 = vmatprep.subr.mxu0 %v149_v30 }
 0x545   :  { %7594 = vmatpush3.msra.mxu0 %v149_v30 }
 0x546   :  { %7619 = vmatprep.subr.mxu0 %v8043_v61 }
 0x5f6   :  { %v7567_v0 = vpop.f32.mrf.mxu0 }
 0x5f7   :  { %v3221_v1 = vadd.f32 %v7567_v0, %v7102_v31 }
 0x5f8   :  { %v3215_v55 = vpop.f32.mrf.mxu0 }
 0x5f9   :  { %v3216_v4 = vadd.f32 %v7102_v31, %v3215_v55  ;;  %v3225_v38 = vadd.f32 %v7977_v17, %v3221_v1 }
 0x5fb   :  { %v3229_v40 = vsel %vm169_vm1, %v3225_v38, 0.0  ;;  %v3224_v43 = vadd.f32 %v7978_v42, %v3216_v4 }
 0x5fc   :  { %3230 = vadd.xlane.f32.xlu1 %v3229_v40 }
 0x5fd   :  { %v3226_v48 = vsel %vm169_vm1, %v3224_v43, 0.0 }
 0x5fe   :  { %3227 = vadd.xlane.f32.xlu0 %v3226_v48 }
 0x685   :  { %v3231_v50 = vpop.xlane.xlu1 %3230 }
 0x686   :  { %v3234_v51 = vmul.f32 0.03125, %v3231_v50 }
 0x687   :  { %v3228_v53 = vpop.xlane.xlu0 %3227 }
 0x688   :  { %v3233_v57 = vmul.f32 0.03125, %v3228_v53  ;;  %v3236_v5 = vsub.f32 %v3225_v38, %v3234_v51  ;;  %v3481_v53 = vld [vmem:[#allocation5 + $0xc0] sm:$0xff] }
 0x689   :  { %7598 = vmatprep.subr.mxu1 %v3481_v53 }
 0x68a   :  { %v3235_v13 = vsub.f32 %v3224_v43, %v3233_v57  ;;  %v3238_v25 = vmul.f32 %v3236_v5, %v3236_v5  ;;  %v3480_v57 = vld [vmem:[#allocation5 + $0xb8] sm:$0xff] }
 0x68c   :  { %v3237_v28 = vmul.f32 %v3235_v13, %v3235_v13  ;;  %v3242_v20 = vsel %vm169_vm1, %v3238_v25, 0.0 }
 0x68e   :  { %v3239_v6 = vsel %vm169_vm1, %v3237_v28, 0.0 }
 0x68f   :  { %3240 = vadd.xlane.f32.xlu0 %v3239_v6 }
 0x693   :  { %3243 = vadd.xlane.f32.xlu0 %v3242_v20 }
 0x718   :  { %v3241_v11 = vpop.xlane.xlu0 %3240 }
 0x719   :  { %v3245_v35 = vmul.f32 0.03125, %v3241_v11  ;;  %v7114_v11 = vld [vmem:[#allocation5 + $0xa7] ss:$0 sm:$0xff] }
 0x71b   :  { %v3247_v12 = vadd.f32 1e-05, %v3245_v35 }
 0x71c   :  { %v3244_v63 = vpop.xlane.xlu0 %3243 }
 0x71d   :  { %7897 = vrsqrt.f32 %v3247_v12  ;;  %v3246_v39 = vmul.f32 0.03125, %v3244_v63 }
 0x71f   :  { %v3248_v41 = vadd.f32 1e-05, %v3246_v39 }
 0x721   :  { %7899 = vrsqrt.f32 %v3248_v41  ;;  %v7115_v41 = vld [vmem:[#allocation5 + $0x148] ss:$0 sm:$0xff] }
 0x72a   :  { %v7898_v60 = vpop.eup %7897 }
 0x72b   :  { %v3251_v3 = vmul.f32 %v7898_v60, %v3235_v13  ;;  %v3478_v13 = vld [vmem:[#allocation5 + $0xa8] sm:$0xff] }
 0x72d   :  { %v3257_v34 = vmul.f32 %v7105_v62, %v3251_v3 }
 0x72e   :  { %v7900_v46 = vpop.eup %7899 }
 0x72f   :  { %v3252_v49 = vmul.f32 %v7900_v46, %v3236_v5  ;;  %v3263_v14 = vadd.f32 %v7106_v32, %v3257_v34  ;;  %v3479_v5 = vld [vmem:[#allocation5 + $0xb0] sm:$0xff] }
 0x731   :  { %v3258_v19 = vmul.f32 %v7105_v62, %v3252_v49  ;;  %7576 = vmatprep.mubr.msk.f32.mxu1 %vm169_vm1, %v3263_v14 }
 0x733   :  { %v3264_v2 = vadd.f32 %v7106_v32, %v3258_v19 }
 0x735   :  { %7577 = vmatmul.mubr.msk.f32.vlgmr.msra.gmra.mxu1 %vm169_vm1, %v3264_v2 }
 0x736   :  { %7599 = vmatpush3.msra.mxu1 %v3481_v53 }
 0x737   :  { %7600 = vmatprep.subr.mxu1 %v3480_v57 }
 0x738   :  { %7601 = vmatpush3.msra.mxu1 %v3480_v57 }
 0x739   :  { %7602 = vmatprep.subr.mxu1 %v3479_v5 }
 0x73a   :  { %7603 = vmatpush3.msra.mxu1 %v3479_v5 }
 0x73b   :  { %7604 = vmatprep.subr.mxu1 %v3478_v13 }
 0x73c   :  { %7605 = vmatpush3.msra.mxu1 %v3478_v13 }
 0x73d   :  { %7609 = vmatprep.subr.mxu1 %v8043_v61 }
 0x7f5   :  { %v7578_v22 = vpop.f32.mrf.mxu1 }
 0x7f6   :  { %v3347_v21 = vadd.f32 %v7578_v22, %v7107_v29 }
 0x7f7   :  { %v3341_v23 = vpop.f32.mrf.mxu1 }
 0x7f8   :  { %v3342_v37 = vadd.f32 %v7107_v29, %v3341_v23  ;;  %v3351_v56 = vmax.f32 %v3347_v21, 0.0 }
 0x7fa   :  { %v3350_v36 = vmax.f32 %v3342_v37, 0.0 }
 0x7fc   :  { %7595 = vmatprep.mubr.msk.f32.mxu0 %vm3356_vm7, %v3350_v36 }
 0x7fd   :  { %7596 = vmatmul.mubr.msk.f32.vlgmr.msra.gmra.mxu0 %vm3356_vm7, %v3351_v56 }
 0x7fe   :  { %7621 = vmatprep.mubr.msk.f32.mxu0 %vm8044_vm2, %v8043_v61 }
 0x8bd   :  { %v7597_v45 = vpop.f32.mrf.mxu0 }
 0x8be   :  { %v3435_v44 = vadd.f32 %v7597_v45, %v7110_v26 }
 0x8bf   :  { %v3429_v52 = vpop.f32.mrf.mxu0 }
 0x8c0   :  { %v3430_v47 = vadd.f32 %v7110_v26, %v3429_v52  ;;  %v3439_v27 = vadd.f32 %v3435_v44, %v3264_v2 }
 0x8c2   :  { %v3443_v31 = vsel %vm169_vm1, %v3439_v27, 0.0  ;;  %v3438_v0 = vadd.f32 %v3430_v47, %v3263_v14 }
 0x8c3   :  { %3444 = vadd.xlane.f32.xlu0 %v3443_v31 }
 0x8c4   :  { %v3440_v1 = vsel %vm169_vm1, %v3438_v0, 0.0 }
 0x8c5   :  { %3441 = vadd.xlane.f32.xlu1 %v3440_v1 }
 0x94c   :  { %v3445_v55 = vpop.xlane.xlu0 %3444 }
 0x94d   :  { %v3447_v4 = vmul.f32 0.03125, %v3445_v55 }
 0x94e   :  { %v3442_v17 = vpop.xlane.xlu1 %3441 }
 0x94f   :  { %v3449_v38 = vsub.f32 %v3439_v27, %v3447_v4  ;;  %v3446_v40 = vmul.f32 0.03125, %v3442_v17 }
 0x951   :  { %v3448_v42 = vsub.f32 %v3438_v0, %v3446_v40  ;;  %v3451_v43 = vmul.f32 %v3449_v38, %v3449_v38 }
 0x953   :  { %v3455_v48 = vsel %vm169_vm1, %v3451_v43, 0.0  ;;  %v3450_v50 = vmul.f32 %v3448_v42, %v3448_v42 }
 0x954   :  { %3456 = vadd.xlane.f32.xlu0 %v3455_v48 }
 0x955   :  { %v3452_v51 = vsel %vm169_vm1, %v3450_v50, 0.0 }
 0x956   :  { %3453 = vadd.xlane.f32.xlu1 %v3452_v51 }
 0x9dd   :  { %v3457_v28 = vpop.xlane.xlu0 %3456 }
 0x9de   :  { %v3459_v6 = vmul.f32 0.03125, %v3457_v28 }
 0x9df   :  { %v3454_v25 = vpop.xlane.xlu1 %3453 }
 0x9e0   :  { %v3461_v20 = vadd.f32 1e-05, %v3459_v6  ;;  %v3458_v7 = vmul.f32 0.03125, %v3454_v25 }
 0x9e2   :  { %7901 = vrsqrt.f32 %v3461_v20  ;;  %v3460_v9 = vadd.f32 1e-05, %v3458_v7 }
 0x9e4   :  { %7903 = vrsqrt.f32 %v3460_v9 }
 0x9ef   :  { %v7902_v24 = vpop.eup %7901 }
 0x9f0   :  { %v3465_v33 = vmul.f32 %v7902_v24, %v3449_v38 }
 0x9f1   :  { %v7904_v8 = vpop.eup %7903 }
 0x9f2   :  { %v3464_v58 = vmul.f32 %v7904_v8, %v3448_v42  ;;  %v3471_v59 = vmul.f32 %v7113_v10, %v3465_v33 }
 0x9f4   :  { %v3470_v35 = vmul.f32 %v7113_v10, %v3464_v58  ;;  %v8684_v63 = vadd.f32 %v7114_v11, %v3471_v59 }
 0x9f6   :  { %v8682_v12 = vadd.f32 %v7114_v11, %v3470_v35 }
 0x9f8   :  { %7606 = vmatprep.mubr.msk.f32.mxu1 %vm169_vm1, %v8682_v12 }
 0x9f9   :  { %7607 = vmatmul.mubr.msk.f32.vlgmr.msra.gmra.mxu1 %vm169_vm1, %v8684_v63 }
 0x9fa   :  { %7611 = vmatprep.mubr.msk.f32.mxu1 %vm8044_vm2, %v8043_v61 }
 0xab9   :  { %v7608_v39 = vpop.f32.mrf.mxu1 }
 0xaba   :  { %v3588_v34 = vadd.f32 %v7608_v39, %v7115_v41 }
 0xabb   :  { %v3582_v60 = vpop.f32.mrf.mxu1 }
 0xabc   :  { %v3583_v62 = vadd.f32 %v7115_v41, %v3582_v60  ;;  %v3610_v14 = vcombine.high %v3588_v34, %v3588_v34  ;;  %v8702_v19 = vrot.slane %v3588_v34, %v8103_v54 }
 0xabe   :  { %v3593_v3 = vcombine.high %v3583_v62, %v3583_v62  ;;  %v3600_v32 = vrot.slane %v3583_v62, %v8103_v54  ;;  %v8713_v16 = vrot.slane %v3610_v14, %v8103_v54  ;;  %v8721_v15 = vcombine.high %v8702_v19, %v8702_v19 }
 0xabf   :  { %v8744_v21 = vrot.slane %v8702_v19, %v8103_v54 }
 0xac0   :  { %3627 = vrot.lane.b32.xlu1 %v3600_v32, %s8042_s22  ;;  %v8694_v46 = vcombine.high %v3600_v32, %v3600_v32  ;;  %v8697_v49 = vrot.slane %v3593_v3, %v8103_v54  ;;  %v3649_v18 = vrot.slane %v3600_v32, %v8103_v54  ;;  %v8729_v30 = vcombine.high %v8713_v16, %v8713_v16 }
 0xac1   :  { %v4147_v37 = vrot.slane %v8713_v16, %v8103_v54  ;;  %v8756_v36 = vrot.slane %v8721_v15, %v8103_v54 }
 0xac2   :  { %3629 = vrot.lane.b32.xlu0 %v8694_v46, %s8042_s22  ;;  %v8710_v2 = vcombine.high %v8697_v49, %v8697_v49  ;;  %v8735_v29 = vrot.slane %v8697_v49, %v8103_v54  ;;  %v3732_v22 = vrot.slane %v8694_v46, %v8103_v54  ;;  %v8762_v56 = vrot.slane %v8729_v30, %v8103_v54 }
 0xac4   :  { %3631 = vrot.lane.b32.xlu1 %v8697_v49, %s8042_s22  ;;  %v3898_v23 = vrot.slane %v8710_v2, %v8103_v54 }
 0xac6   :  { %3635 = vrot.lane.b32.xlu0 %v8702_v19, %s8042_s22 }
 0xac8   :  { %3633 = vrot.lane.b32.xlu1 %v8710_v2, %s8042_s22 }
 0xaca   :  { %3639 = vrot.lane.b32.xlu0 %v8713_v16, %s8042_s22 }
 0xacc   :  { %3637 = vrot.lane.b32.xlu1 %v8721_v15, %s8042_s22 }
 0xace   :  { %3650 = vrot.lane.b32.xlu0 %v3649_v18, %s8045_s23 }
 0xad0   :  { %3641 = vrot.lane.b32.xlu1 %v8729_v30, %s8042_s22 }
 0xad2   :  { %3816 = vrot.lane.b32.xlu0 %v8735_v29, %s8045_s23 }
 0xad4   :  { %3733 = vrot.lane.b32.xlu1 %v3732_v22, %s8045_s23 }
 0xad6   :  { %3982 = vrot.lane.b32.xlu0 %v8744_v21, %s8045_s23 }
 0xad8   :  { %3899 = vrot.lane.b32.xlu1 %v3898_v23, %s8045_s23 }
 0xada   :  { %4148 = vrot.lane.b32.xlu0 %v4147_v37, %s8045_s23 }
 0xadc   :  { %4065 = vrot.lane.b32.xlu1 %v8756_v36, %s8045_s23 }
 0xae0   :  { %4231 = vrot.lane.b32.xlu1 %v8762_v56, %s8045_s23 }
 0xb32   :  { %v8766_v26 = vpop.permute.xlu1 %3627 }
 0xb33   :  { %v4313_v45 = vrot.slane %v8766_v26, %v8103_v54 }
 0xb34   :  { %v8770_v44 = vpop.permute.xlu0 %3629 }
 0xb35   :  { %v8774_v52 = vrot.slane %v8770_v44, %v8103_v54  ;;  %4314 = vrot.lane.b32.xlu0 %v4313_v45, %s8045_s23 }
 0xb36   :  { %v8777_v47 = vpop.permute.xlu1 %3631 }
 0xb37   :  { %v8781_v27 = vrot.slane %v8777_v47, %v8103_v54  ;;  %4397 = vrot.lane.b32.xlu1 %v8774_v52, %s8045_s23 }
 0xb38   :  { %v8785_v31 = vpop.permute.xlu0 %3635 }
 0xb39   :  { %4480 = vrot.lane.b32.xlu0 %v8781_v27, %s8045_s23  ;;  %v8793_v1 = vrot.slane %v8785_v31, %v8103_v54 }
 0xb3a   :  { %v8789_v0 = vpop.permute.xlu1 %3633 }
 0xb3b   :  { %v8797_v55 = vrot.slane %v8789_v0, %v8103_v54 }
 0xb3c   :  { %v8799_v4 = vpop.permute.xlu0 %3639 }
 0xb3d   :  { %4646 = vrot.lane.b32.xlu0 %v8793_v1, %s8045_s23  ;;  %4563 = vrot.lane.b32.xlu1 %v8797_v55, %s8045_s23  ;;  %v8809_v38 = vrot.slane %v8799_v4, %v8103_v54 }
 0xb3e   :  { %v8805_v17 = vpop.permute.xlu1 %3637 }
 0xb3f   :  { %v8813_v40 = vrot.slane %v8805_v17, %v8103_v54 }
 0xb40   :  { %v3651_v42 = vpop.permute.xlu0 %3650 }
 0xb41   :  { %7610 = vmatpush3.xpose.msk.msra.mxu1 %vm312_vm3, %v3651_v42  ;;  %4812 = vrot.lane.b32.xlu0 %v8809_v38, %s8045_s23 }
 0xb42   :  { %4729 = vrot.lane.b32.xlu1 %v8813_v40, %s8045_s23  ;;  %v8820_v43 = vpop.permute.xlu1 %3641  ;;  %7614 = vmatprep.subr.mxu1 %v8043_v61 }
 0xb43   :  { %v8825_v48 = vrot.slane %v8820_v43, %v8103_v54 }
 0xb44   :  { %7612 = vmatmul.mubr.msk.f32.vlgmr.msra.gmra.mxu1 %vm312_vm3, %v3600_v32  ;;  %v3817_v50 = vpop.permute.xlu0 %3816 }
 0xb45   :  { %5240 = vrot.lane.b32.xlu0 %v3732_v22, %s8046_s24  ;;  %7620 = vmatpush3.xpose.msk.msra.mxu0 %vm312_vm3, %v3817_v50 }
 0xb46   :  { %4895 = vrot.lane.b32.xlu1 %v8825_v48, %s8045_s23  ;;  %v3734_v51 = vpop.permute.xlu1 %3733  ;;  %7629 = vmatprep.subr.mxu0 %v8043_v61 }
 0xb47   :  { %7615 = vmatpush3.xpose.msk.msra.mxu1 %vm312_vm3, %v3734_v51  ;;  %7616 = vmatprep.mubr.msk.f32.mxu1 %vm8044_vm2, %v8043_v61 }
 0xb48   :  { %7622 = vmatmul.mubr.msk.f32.vlgmr.msra.gmra.mxu0 %vm312_vm3, %v8697_v49  ;;  %v3983_v53 = vpop.permute.xlu0 %3982  ;;  %7624 = vmatprep.subr.mxu1 %v8043_v61 }
 0xb49   :  { %7630 = vmatpush3.xpose.msk.msra.mxu0 %vm312_vm3, %v3983_v53  ;;  %5394 = vrot.lane.b32.xlu0 %v3898_v23, %s8046_s24 }
 0xb4a   :  { %5163 = vrot.lane.b32.xlu1 %v3649_v18, %s8046_s24  ;;  %7617 = vmatmul.mubr.msk.f32.vlgmr.msra.gmra.mxu1 %vm312_vm3, %v8694_v46  ;;  %v3900_v57 = vpop.permute.xlu1 %3899 }
 0xb4b   :  { %7625 = vmatpush3.xpose.msk.msra.mxu1 %vm312_vm3, %v3900_v57  ;;  %7631 = vmatprep.mubr.msk.f32.mxu0 %vm8044_vm2, %v8043_v61 }
 0xb4c   :  { %7632 = vmatmul.mubr.msk.f32.vlgmr.msra.gmra.mxu0 %vm312_vm3, %v8702_v19  ;;  %7639 = vmatprep.subr.mxu0 %v8043_v61  ;;  %v4149_v5 = vpop.permute.xlu0 %4148 }
 0xb4d   :  { %7626 = vmatprep.mubr.msk.f32.mxu1 %vm8044_vm2, %v8043_v61  ;;  %7640 = vmatpush3.xpose.msk.msra.mxu0 %vm312_vm3, %v4149_v5 }
 0xb4e   :  { %5625 = vrot.lane.b32.xlu0 %v4147_v37, %s8046_s24  ;;  %5317 = vrot.lane.b32.xlu1 %v8735_v29, %s8046_s24  ;;  %v4066_v13 = vpop.permute.xlu1 %4065 }
 0xb4f   :  { %7627 = vmatmul.mubr.msk.f32.vlgmr.msra.gmra.mxu1 %vm312_vm3, %v8710_v2  ;;  %7634 = vmatprep.subr.mxu1 %v8043_v61 }
 0xb50   :  { %7635 = vmatpush3.xpose.msk.msra.mxu1 %vm312_vm3, %v4066_v13  ;;  %7641 = vmatprep.mubr.msk.f32.mxu0 %vm8044_vm2, %v8043_v61 }
 0xb51   :  { %7642 = vmatmul.mubr.msk.f32.vlgmr.msra.gmra.mxu0 %vm312_vm3, %v8713_v16  ;;  %7636 = vmatprep.mubr.msk.f32.mxu1 %vm8044_vm2, %v8043_v61 }
 0xb52   :  { %5779 = vrot.lane.b32.xlu0 %v4313_v45, %s8046_s24  ;;  %5471 = vrot.lane.b32.xlu1 %v8744_v21, %s8046_s24  ;;  %v4232_v28 = vpop.permute.xlu1 %4231 }
 0xb53   :  { %7637 = vmatmul.mubr.msk.f32.vlgmr.msra.gmra.mxu1 %vm312_vm3, %v8721_v15  ;;  %7644 = vmatprep.subr.mxu1 %v8043_v61 }
 0xb54   :  { %7645 = vmatpush3.xpose.msk.msra.mxu1 %vm312_vm3, %v4232_v28  ;;  %7646 = vmatprep.mubr.msk.f32.mxu1 %vm8044_vm2, %v8043_v61 }
 0xb55   :  { %7649 = vmatprep.subr.mxu0 %v8043_v61  ;;  %7654 = vmatprep.subr.mxu1 %v8043_v61 }
 0xb56   :  { %5548 = vrot.lane.b32.xlu1 %v8756_v36, %s8046_s24  ;;  %7651 = vmatprep.mubr.msk.f32.mxu0 %vm8044_vm2, %v8043_v61 }
 0xb57   :  { %7647 = vmatmul.mubr.msk.f32.vlgmr.msra.gmra.mxu1 %vm312_vm3, %v8729_v30 }
 0xb58   :  { %7656 = vmatprep.mubr.msk.f32.mxu1 %vm8044_vm2, %v8043_v61 }
 0xb5a   :  { %5702 = vrot.lane.b32.xlu1 %v8762_v56, %s8046_s24 }
 0xb5e   :  { %5856 = vrot.lane.b32.xlu1 %v8774_v52, %s8046_s24 }
 0xba7   :  { %v4315_v6 = vpop.permute.xlu0 %4314 }
 0xba8   :  { %7650 = vmatpush3.xpose.msk.msra.mxu0 %vm312_vm3, %v4315_v6 }
 0xba9   :  { %v4398_v25 = vpop.permute.xlu1 %4397  ;;  %7659 = vmatprep.subr.mxu0 %v8043_v61 }
 0xbaa   :  { %7655 = vmatpush3.xpose.msk.msra.mxu1 %vm312_vm3, %v4398_v25 }
 0xbab   :  { %7652 = vmatmul.mubr.msk.f32.vlgmr.msra.gmra.mxu0 %vm312_vm3, %v8766_v26  ;;  %v4481_v20 = vpop.permute.xlu0 %4480  ;;  %7664 = vmatprep.subr.mxu1 %v8043_v61 }
 0xbac   :  { %7660 = vmatpush3.xpose.msk.msra.mxu0 %vm312_vm3, %v4481_v20  ;;  %7661 = vmatprep.mubr.msk.f32.mxu0 %vm8044_vm2, %v8043_v61 }
 0xbad   :  { %7657 = vmatmul.mubr.msk.f32.vlgmr.msra.gmra.mxu1 %vm312_vm3, %v8770_v44  ;;  %7669 = vmatprep.subr.mxu0 %v8043_v61 }
 0xbae   :  { %7666 = vmatprep.mubr.msk.f32.mxu1 %vm8044_vm2, %v8043_v61 }
 0xbaf   :  { %7662 = vmatmul.mubr.msk.f32.vlgmr.msra.gmra.mxu0 %vm312_vm3, %v8777_v47  ;;  %v4647_v7 = vpop.permute.xlu0 %4646  ;;  %v4564_v9 = vpop.permute.xlu1 %4563 }
 0xbb0   :  { %7665 = vmatpush3.xpose.msk.msra.mxu1 %vm312_vm3, %v4564_v9  ;;  %7670 = vmatpush3.xpose.msk.msra.mxu0 %vm312_vm3, %v4647_v7 }
 0xbb1   :  { %7671 = vmatprep.mubr.msk.f32.mxu0 %vm8044_vm2, %v8043_v61  ;;  %7679 = vmatprep.subr.mxu0 %v8043_v61 }
 0xbb2   :  { %7674 = vmatprep.subr.mxu1 %v8043_v61 }
 0xbb3   :  { %7672 = vmatmul.mubr.msk.f32.vlgmr.msra.gmra.mxu0 %vm312_vm3, %v8785_v31  ;;  %v4813_v24 = vpop.permute.xlu0 %4812  ;;  %7667 = vmatmul.mubr.msk.f32.vlgmr.msra.gmra.mxu1 %vm312_vm3, %v8789_v0 }
 0xbb4   :  { %v4730_v10 = vpop.permute.xlu1 %4729  ;;  %7680 = vmatpush3.xpose.msk.msra.mxu0 %vm312_vm3, %v4813_v24  ;;  %7676 = vmatprep.mubr.msk.f32.mxu1 %vm8044_vm2, %v8043_v61 }
 0xbb5   :  { %7675 = vmatpush3.xpose.msk.msra.mxu1 %vm312_vm3, %v4730_v10  ;;  %7681 = vmatprep.mubr.msk.f32.mxu0 %vm8044_vm2, %v8043_v61 }
 0xbb6   :  { %7684 = vmatprep.subr.mxu1 %v8043_v61  ;;  %7689 = vmatprep.subr.mxu0 %v8043_v61 }
 0xbb7   :  { %7682 = vmatmul.mubr.msk.f32.vlgmr.msra.gmra.mxu0 %vm312_vm3, %v8799_v4  ;;  %v5241_v8 = vpop.permute.xlu0 %5240 }
 0xbb8   :  { %7677 = vmatmul.mubr.msk.f32.vlgmr.msra.gmra.mxu1 %vm312_vm3, %v8805_v17  ;;  %v4896_v33 = vpop.permute.xlu1 %4895  ;;  %7691 = vmatprep.mubr.msk.f32.mxu0 %vm8044_vm2, %v8043_v61 }
 0xbb9   :  { %7685 = vmatpush3.xpose.msk.msra.mxu1 %vm312_vm3, %v4896_v33  ;;  %7686 = vmatprep.mubr.msk.f32.mxu1 %vm8044_vm2, %v8043_v61 }
 0xbba   :  { %7694 = vmatprep.subr.mxu1 %v8043_v61 }
 0xbbc   :  { %7687 = vmatmul.mubr.msk.f32.vlgmr.msra.gmra.mxu1 %vm312_vm3, %v8820_v43  ;;  %v5164_v58 = vpop.permute.xlu1 %5163 }
 0xbbd   :  { %7690 = vmatpush3.msk.msra.mxu0 %vm1831_vm4, %v5164_v58  ;;  %7695 = vmatpush3.msk.msra.mxu1 %vm1831_vm4, %v5241_v8 }
 0xbbe   :  { %7699 = vmatprep.subr.mxu0 %v8043_v61  ;;  %7696 = vmatprep.mubr.msk.f32.mxu1 %vm8044_vm2, %v8043_v61 }
 0xbbf   :  { %7704 = vmatprep.subr.mxu1 %v8043_v61 }
 0xc04   :  { %v3722_v59 = vpop.f32.mrf.mxu1 }
 0xc05   :  { %v8941_v11 = vmul.f32 0.25, %v3722_v59 }
 0xc06   :  { %v7613_v35 = vpop.f32.mrf.mxu1 }
 0xc07   :  { %v4987_v39 = vsel %vm1648_vm5, %v8941_v11, -inf }
 0xc08   :  { %v3888_v41 = vpop.f32.mrf.mxu0  ;;  %4988 = vmax.xlane.f32.xlu0 %v4987_v39 }
 0xc09   :  { %v8945_v60 = vmul.f32 0.25, %v3888_v41 }
 0xc0a   :  { %v3805_v62 = vpop.f32.mrf.mxu1  ;;  %v7623_v3 = vpop.f32.mrf.mxu0 }
 0xc0b   :  { %v8947_v32 = vmul.f32 0.25, %v3805_v62  ;;  %v4993_v34 = vsel %vm1648_vm5, %v8945_v60, -inf }
 0xc0c   :  { %v7618_v46 = vpop.f32.mrf.mxu1  ;;  %v4054_v49 = vpop.f32.mrf.mxu0  ;;  %4994 = vmax.xlane.f32.xlu0 %v4993_v34 }
 0xc0d   :  { %v8951_v14 = vmul.f32 0.25, %v4054_v49  ;;  %v4990_v19 = vsel %vm1648_vm5, %v8947_v32, -inf  ;;  %v9001_v34 = vpop.permute.xlu1 %5317 }
 0xc0e   :  { %v7633_v2 = vpop.f32.mrf.mxu0  ;;  %4991 = vmax.xlane.f32.xlu1 %v4990_v19 }
 0xc0f   :  { %v3971_v16 = vpop.f32.mrf.mxu1  ;;  %v4999_v29 = vsel %vm1648_vm5, %v8951_v14, -inf }
 0xc10   :  { %v8955_v15 = vmul.f32 0.25, %v3971_v16 }
 0xc11   :  { %v7628_v18 = vpop.f32.mrf.mxu1  ;;  %v4220_v30 = vpop.f32.mrf.mxu0 }
 0xc12   :  { %v8959_v22 = vmul.f32 0.25, %v4220_v30  ;;  %5000 = vmax.xlane.f32.xlu1 %v4999_v29  ;;  %v4996_v21 = vsel %vm1648_vm5, %v8955_v15, -inf  ;;  %v9007_v16 = vpop.permute.xlu1 %5471  ;;  %v9009_v18 = vpop.permute.xlu0 %5394 }
 0xc13   :  { %v7643_v23 = vpop.f32.mrf.mxu0  ;;  %4997 = vmax.xlane.f32.xlu0 %v4996_v21  ;;  %v4137_v37 = vpop.f32.mrf.mxu1 }
 0xc14   :  { %v8963_v36 = vmul.f32 0.25, %v4137_v37  ;;  %v5005_v26 = vsel %vm1648_vm5, %v8959_v22, -inf }
 0xc15   :  { %v7638_v56 = vpop.f32.mrf.mxu1 }
 0xc16   :  { %5006 = vmax.xlane.f32.xlu1 %v5005_v26  ;;  %v5002_v45 = vsel %vm1648_vm5, %v8963_v36, -inf  ;;  %v9011_v30 = vpop.permute.xlu1 %5548  ;;  %v9013_v29 = vpop.permute.xlu0 %5625 }
 0xc17   :  { %5003 = vmax.xlane.f32.xlu0 %v5002_v45  ;;  %v4303_v44 = vpop.f32.mrf.mxu1 }
 0xc18   :  { %v8969_v52 = vmul.f32 0.25, %v4303_v44 }
 0xc19   :  { %v7648_v47 = vpop.f32.mrf.mxu1 }
 0xc1a   :  { %v5008_v31 = vsel %vm1648_vm5, %v8969_v52, -inf  ;;  %v9017_v21 = vpop.permute.xlu1 %5702  ;;  %v9019_v23 = vpop.permute.xlu0 %5779 }
 0xc1b   :  { %5009 = vmax.xlane.f32.xlu0 %v5008_v31 }
 0xc1e   :  { %v9023_v56 = vpop.permute.xlu1 %5856 }
 0xc6b   :  { %v4386_v0 = vpop.f32.mrf.mxu0 }
 0xc6c   :  { %v8973_v4 = vmul.f32 0.25, %v4386_v0 }
 0xc6d   :  { %v7653_v17 = vpop.f32.mrf.mxu0  ;;  %v4469_v42 = vpop.f32.mrf.mxu1 }
 0xc6e   :  { %v8975_v43 = vmul.f32 0.25, %v4469_v42  ;;  %v5011_v50 = vsel %vm1648_vm5, %v8973_v4, -inf }
 0xc6f   :  { %v4552_v51 = vpop.f32.mrf.mxu0  ;;  %5012 = vmax.xlane.f32.xlu1 %v5011_v50  ;;  %v7658_v53 = vpop.f32.mrf.mxu1 }
 0xc70   :  { %v8979_v57 = vmul.f32 0.25, %v4552_v51  ;;  %v5014_v5 = vsel %vm1648_vm5, %v8975_v43, -inf }
 0xc71   :  { %v7663_v13 = vpop.f32.mrf.mxu0  ;;  %5015 = vmax.xlane.f32.xlu0 %v5014_v5 }
 0xc72   :  { %v5017_v28 = vsel %vm1648_vm5, %v8979_v57, -inf }
 0xc73   :  { %v4718_v6 = vpop.f32.mrf.mxu0  ;;  %5018 = vmax.xlane.f32.xlu1 %v5017_v28  ;;  %v4635_v25 = vpop.f32.mrf.mxu1 }
 0xc74   :  { %v8985_v20 = vmul.f32 0.25, %v4718_v6  ;;  %v8987_v7 = vmul.f32 0.25, %v4635_v25 }
 0xc75   :  { %v7668_v9 = vpop.f32.mrf.mxu1  ;;  %v7673_v24 = vpop.f32.mrf.mxu0 }
 0xc76   :  { %v5023_v10 = vsel %vm1648_vm5, %v8985_v20, -inf  ;;  %v5020_v33 = vsel %vm1648_vm5, %v8987_v7, -inf }
 0xc77   :  { %v4884_v8 = vpop.f32.mrf.mxu0  ;;  %5024 = vmax.xlane.f32.xlu1 %v5023_v10  ;;  %5021 = vmax.xlane.f32.xlu0 %v5020_v33 }
 0xc78   :  { %v8993_v58 = vmul.f32 0.25, %v4884_v8  ;;  %v4801_v59 = vpop.f32.mrf.mxu1 }
 0xc79   :  { %v8995_v35 = vmul.f32 0.25, %v4801_v59  ;;  %v7683_v39 = vpop.f32.mrf.mxu0 }
 0xc7a   :  { %v7678_v41 = vpop.f32.mrf.mxu1  ;;  %v5029_v62 = vsel %vm1648_vm5, %v8993_v58, -inf }
 0xc7b   :  { %5030 = vmax.xlane.f32.xlu1 %v5029_v62  ;;  %v5026_v3 = vsel %vm1648_vm5, %v8995_v35, -inf }
 0xc7c   :  { %5027 = vmax.xlane.f32.xlu0 %v5026_v3  ;;  %v4967_v46 = vpop.f32.mrf.mxu1 }
 0xc7d   :  { %v9003_v49 = vmul.f32 0.25, %v4967_v46 }
 0xc7e   :  { %v7688_v19 = vpop.f32.mrf.mxu1 }
 0xc7f   :  { %v5032_v2 = vsel %vm1648_vm5, %v9003_v49, -inf }
 0xc80   :  { %5033 = vmax.xlane.f32.xlu0 %v5032_v2 }
 0xc8c   :  { %6010 = vrot.lane.b32.xlu1 %v8797_v55, %s8046_s24 }
 0xc90   :  { %6164 = vrot.lane.b32.xlu1 %v8813_v40, %s8046_s24 }
 0xc91   :  { %v4989_v37 = vpop.xlane.xlu0 %4988 }
 0xc92   :  { %v5035_v55 = vsub.f32 %v8941_v11, %v4989_v37 }
 0xc94   :  { %v5051_v31 = vmul.f32 1.442695, %v5035_v55 }
 0xc95   :  { %v4995_v45 = vpop.xlane.xlu0 %4994 }
 0xc96   :  { %5933 = vrot.lane.b32.xlu0 %v8781_v27, %s8046_s24  ;;  %v5037_v0 = vsub.f32 %v8945_v60, %v4995_v45  ;;  %7905 = vpow2.f32 %v5051_v31 }
 0xc97   :  { %v4992_v26 = vpop.xlane.xlu1 %4991 }
 0xc98   :  { %v5036_v40 = vsub.f32 %v8947_v32, %v4992_v26  ;;  %v5055_v17 = vmul.f32 1.442695, %v5037_v0 }
 0xc9a   :  { %6087 = vrot.lane.b32.xlu0 %v8793_v1, %s8046_s24  ;;  %v5053_v27 = vmul.f32 1.442695, %v5036_v40  ;;  %7907 = vpow2.f32 %v5055_v17 }
 0xc9b   :  { %v5001_v47 = vpop.xlane.xlu1 %5000 }
 0xc9c   :  { %v4998_v44 = vpop.xlane.xlu0 %4997  ;;  %v5039_v42 = vsub.f32 %v8951_v14, %v5001_v47  ;;  %7909 = vpow2.f32 %v5053_v27 }
 0xc9d   :  { %v5038_v51 = vsub.f32 %v8955_v15, %v4998_v44 }
 0xc9e   :  { %v5059_v1 = vmul.f32 1.442695, %v5039_v42 }
 0xc9f   :  { %v5007_v53 = vpop.xlane.xlu1 %5006  ;;  %v5057_v5 = vmul.f32 1.442695, %v5038_v51 }
 0xca0   :  { %v5004_v50 = vpop.xlane.xlu0 %5003  ;;  %v5041_v11 = vsub.f32 %v8959_v22, %v5007_v53  ;;  %7911 = vpow2.f32 %v5059_v1 }
 0xca1   :  { %v5040_v13 = vsub.f32 %v8963_v36, %v5004_v50  ;;  %7913 = vpow2.f32 %v5057_v5 }
 0xca2   :  { %v5063_v32 = vmul.f32 1.442695, %v5041_v11 }
 0xca3   :  { %v5061_v28 = vmul.f32 1.442695, %v5040_v13  ;;  %v9037_v6 = vpop.eup %7905 }
 0xca4   :  { %v5010_v60 = vpop.xlane.xlu0 %5009  ;;  %7915 = vpow2.f32 %v5063_v32  ;;  %v5083_v25 = vsel %vm1648_vm5, %v9037_v6, 0.0 }
 0xca5   :  { %v5042_v14 = vsub.f32 %v8969_v52, %v5010_v60  ;;  %7917 = vpow2.f32 %v5061_v28 }
 0xca7   :  { %v5065_v15 = vmul.f32 1.442695, %v5042_v14  ;;  %v9041_v22 = vpop.eup %7907 }
 0xca8   :  { %v5089_v9 = vsel %vm1648_vm5, %v9041_v22, 0.0 }
 0xca9   :  { %7919 = vpow2.f32 %v5065_v15  ;;  %v9043_v36 = vpop.eup %7909 }
 0xcaa   :  { %v5086_v52 = vsel %vm1648_vm5, %v9043_v36, 0.0 }
 0xcad   :  { %v9047_v24 = vpop.eup %7911 }
 0xcae   :  { %v9051_v10 = vpop.eup %7913  ;;  %v5095_v33 = vsel %vm1648_vm5, %v9047_v24, 0.0 }
 0xcaf   :  { %v5092_v59 = vsel %vm1648_vm5, %v9051_v10, 0.0 }
 0xcb1   :  { %v9055_v8 = vpop.eup %7915 }
 0xcb2   :  { %v9059_v39 = vpop.eup %7917  ;;  %v5101_v41 = vsel %vm1648_vm5, %v9055_v8, 0.0 }
 0xcb3   :  { %v5098_v62 = vsel %vm1648_vm5, %v9059_v39, 0.0 }
 0xcb4   :  { %5084 = vadd.xlane.f32.xlu1 %v5083_v25 }
 0xcb6   :  { %v9065_v3 = vpop.eup %7919 }
 0xcb7   :  { %v5104_v46 = vsel %vm1648_vm5, %v9065_v3, 0.0 }
 0xcb8   :  { %5090 = vadd.xlane.f32.xlu1 %v5089_v9 }
 0xcb9   :  { %5087 = vadd.xlane.f32.xlu0 %v5086_v52 }
 0xcbc   :  { %5096 = vadd.xlane.f32.xlu1 %v5095_v33 }
 0xcbd   :  { %5093 = vadd.xlane.f32.xlu0 %v5092_v59 }
 0xcc0   :  { %5102 = vadd.xlane.f32.xlu1 %v5101_v41 }
 0xcc1   :  { %5099 = vadd.xlane.f32.xlu0 %v5098_v62 }
 0xcc5   :  { %5105 = vadd.xlane.f32.xlu0 %v5104_v46 }
 0xcf8   :  { %v5013_v19 = vpop.xlane.xlu1 %5012 }
 0xcf9   :  { %v5043_v2 = vsub.f32 %v8973_v4, %v5013_v19 }
 0xcfa   :  { %v5016_v37 = vpop.xlane.xlu0 %5015 }
 0xcfb   :  { %v5067_v26 = vmul.f32 1.442695, %v5043_v2  ;;  %v5044_v45 = vsub.f32 %v8975_v43, %v5016_v37 }
 0xcfc   :  { %v5019_v55 = vpop.xlane.xlu1 %5018 }
 0xcfd   :  { %7921 = vpow2.f32 %v5067_v26  ;;  %v5069_v44 = vmul.f32 1.442695, %v5044_v45  ;;  %v5045_v47 = vsub.f32 %v8979_v57, %v5019_v55 }
 0xcff   :  { %7923 = vpow2.f32 %v5069_v44  ;;  %v5071_v31 = vmul.f32 1.442695, %v5045_v47 }
 0xd00   :  { %v5022_v0 = vpop.xlane.xlu0 %5021  ;;  %v5025_v40 = vpop.xlane.xlu1 %5024 }
 0xd01   :  { %7925 = vpow2.f32 %v5071_v31  ;;  %v5046_v17 = vsub.f32 %v8987_v7, %v5022_v0  ;;  %v5047_v42 = vsub.f32 %v8985_v20, %v5025_v40 }
 0xd03   :  { %v5073_v50 = vmul.f32 1.442695, %v5046_v17  ;;  %v5075_v4 = vmul.f32 1.442695, %v5047_v42 }
 0xd04   :  { %v5031_v27 = vpop.xlane.xlu1 %5030 }
 0xd05   :  { %7927 = vpow2.f32 %v5073_v50  ;;  %v5028_v51 = vpop.xlane.xlu0 %5027  ;;  %v5049_v43 = vsub.f32 %v8993_v58, %v5031_v27 }
 0xd06   :  { %7929 = vpow2.f32 %v5075_v4  ;;  %v5048_v53 = vsub.f32 %v8995_v35, %v5028_v51 }
 0xd07   :  { %v5079_v57 = vmul.f32 1.442695, %v5049_v43 }
 0xd08   :  { %v5077_v1 = vmul.f32 1.442695, %v5048_v53  ;;  %v9111_v62 = vpop.permute.xlu1 %6010 }
 0xd09   :  { %7931 = vpow2.f32 %v5079_v57  ;;  %v5034_v11 = vpop.xlane.xlu0 %5033 }
 0xd0a   :  { %v9076_v5 = vpop.eup %7921  ;;  %7933 = vpow2.f32 %v5077_v1  ;;  %v5050_v7 = vsub.f32 %v9003_v49, %v5034_v11 }
 0xd0b   :  { %v5107_v20 = vsel %vm1648_vm5, %v9076_v5, 0.0 }
 0xd0c   :  { %v9081_v13 = vpop.eup %7923  ;;  %v5081_v60 = vmul.f32 1.442695, %v5050_v7  ;;  %5108 = vadd.xlane.f32.xlu1 %v5107_v20  ;;  %v9117_v19 = vpop.permute.xlu1 %6164 }
 0xd0d   :  { %v5110_v58 = vsel %vm1648_vm5, %v9081_v13, 0.0  ;;  %v9115_v46 = vpop.permute.xlu0 %5933 }
 0xd0e   :  { %v9085_v35 = vpop.eup %7925  ;;  %7935 = vpow2.f32 %v5081_v60  ;;  %5111 = vadd.xlane.f32.xlu0 %v5110_v58 }
 0xd0f   :  { %v5113_v32 = vsel %vm1648_vm5, %v9085_v35, 0.0 }
 0xd10   :  { %5114 = vadd.xlane.f32.xlu1 %v5113_v32 }
 0xd11   :  { %v9119_v37 = vpop.permute.xlu0 %6087 }
 0xd12   :  { %v9089_v28 = vpop.eup %7927 }
 0xd13   :  { %v9091_v49 = vpop.eup %7929  ;;  %v5116_v14 = vsel %vm1648_vm5, %v9089_v28, 0.0 }
 0xd14   :  { %5117 = vadd.xlane.f32.xlu0 %v5116_v14  ;;  %v5119_v15 = vsel %vm1648_vm5, %v9091_v49, 0.0 }
 0xd15   :  { %5120 = vadd.xlane.f32.xlu1 %v5119_v15 }
 0xd16   :  { %v9097_v25 = vpop.eup %7931 }
 0xd17   :  { %v9099_v9 = vpop.eup %7933  ;;  %v5125_v52 = vsel %vm1648_vm5, %v9097_v25, 0.0 }
 0xd18   :  { %v5122_v33 = vsel %vm1648_vm5, %v9099_v9, 0.0 }
 0xd19   :  { %5123 = vadd.xlane.f32.xlu0 %v5122_v33  ;;  %5126 = vadd.xlane.f32.xlu1 %v5125_v52 }
 0xd1b   :  { %v9105_v59 = vpop.eup %7935 }
 0xd1c   :  { %v5128_v41 = vsel %vm1648_vm5, %v9105_v59, 0.0 }
 0xd1d   :  { %5129 = vadd.xlane.f32.xlu0 %v5128_v41 }
 0xd2a   :  { %6318 = vrot.lane.b32.xlu1 %v8825_v48, %s8046_s24 }
 0xd33   :  { %6241 = vrot.lane.b32.xlu0 %v8809_v38, %s8046_s24 }
 0xd3d   :  { %v5085_v2 = vpop.xlane.xlu1 %5084 }
 0xd3e   :  { %7937 = vrcp.f32 %v5085_v2 }
 0xd41   :  { %v5091_v26 = vpop.xlane.xlu1 %5090 }
 0xd42   :  { %v5088_v45 = vpop.xlane.xlu0 %5087  ;;  %7939 = vrcp.f32 %v5091_v26 }
 0xd43   :  { %7941 = vrcp.f32 %v5088_v45 }
 0xd45   :  { %v5097_v55 = vpop.xlane.xlu1 %5096 }
 0xd46   :  { %v5094_v44 = vpop.xlane.xlu0 %5093  ;;  %7943 = vrcp.f32 %v5097_v55 }
 0xd47   :  { %7945 = vrcp.f32 %v5094_v44 }
 0xd49   :  { %v5103_v48 = vpop.xlane.xlu1 %5102 }
 0xd4a   :  { %v5100_v47 = vpop.xlane.xlu0 %5099  ;;  %7947 = vrcp.f32 %v5103_v48 }
 0xd4b   :  { %v7938_v38 = vpop.eup %7937  ;;  %7949 = vrcp.f32 %v5100_v47 }
 0xd4c   :  { %v5147_v31 = vmul.f32 %v7938_v38, %v9037_v6 }
 0xd4e   :  { %v5106_v0 = vpop.xlane.xlu0 %5105  ;;  %7692 = vmatmul.mubr.msk.f32.vlgmr.msra.gmra.mxu0 %vm1827_vm6, %v5147_v31 }
 0xd4f   :  { %v7940_v40 = vpop.eup %7939  ;;  %7951 = vrcp.f32 %v5106_v0  ;;  %7700 = vmatpush3.msk.msra.mxu0 %vm1831_vm4, %v9001_v34  ;;  %7701 = vmatprep.mubr.msk.f32.mxu0 %vm8044_vm2, %v8043_v61 }
 0xd50   :  { %v7942_v17 = vpop.eup %7941  ;;  %7709 = vmatprep.subr.mxu0 %v8043_v61  ;;  %v5149_v42 = vmul.f32 %v7940_v40, %v9041_v22 }
 0xd51   :  { %v5148_v50 = vmul.f32 %v7942_v17, %v9043_v36  ;;  %v3485_v17 = vld [vmem:[#allocation5 + $0xe0] sm:$0xff] }
 0xd52   :  { %7702 = vmatmul.mubr.msk.f32.vlgmr.msra.gmra.mxu0 %vm1827_vm6, %v5149_v42 }
 0xd53   :  { %v7944_v6 = vpop.eup %7943  ;;  %7697 = vmatmul.mubr.msk.f32.vlgmr.msra.gmra.mxu1 %vm1827_vm6, %v5148_v50  ;;  %7710 = vmatpush3.msk.msra.mxu0 %vm1831_vm4, %v9007_v16  ;;  %v3484_v50 = vld [vmem:[#allocation5 + $0xd8] sm:$0xff] }
 0xd54   :  { %v7946_v4 = vpop.eup %7945  ;;  %7705 = vmatpush3.msk.msra.mxu1 %vm1831_vm4, %v9009_v18  ;;  %7706 = vmatprep.mubr.msk.f32.mxu1 %vm8044_vm2, %v8043_v61  ;;  %v5151_v34 = vmul.f32 %v7944_v6, %v9047_v24 }
 0xd55   :  { %7711 = vmatprep.mubr.msk.f32.mxu0 %vm8044_vm2, %v8043_v61  ;;  %7714 = vmatprep.subr.mxu1 %v8043_v61  ;;  %v5150_v22 = vmul.f32 %v7946_v4, %v9051_v10  ;;  %v3483_v4 = vld [vmem:[#allocation5 + $0xd0] sm:$0xff] }
 0xd56   :  { %7719 = vmatprep.subr.mxu0 %v8043_v61  ;;  %7712 = vmatmul.mubr.msk.f32.vlgmr.msra.gmra.mxu0 %vm1827_vm6, %v5151_v34 }
 0xd57   :  { %v7948_v16 = vpop.eup %7947  ;;  %7707 = vmatmul.mubr.msk.f32.vlgmr.msra.gmra.mxu1 %vm1827_vm6, %v5150_v22  ;;  %7720 = vmatpush3.msk.msra.mxu0 %vm1831_vm4, %v9013_v29 }
 0xd58   :  { %v7950_v18 = vpop.eup %7949  ;;  %7715 = vmatpush3.msk.msra.mxu1 %vm1831_vm4, %v9011_v30  ;;  %7716 = vmatprep.mubr.msk.f32.mxu1 %vm8044_vm2, %v8043_v61  ;;  %v5153_v36 = vmul.f32 %v7948_v16, %v9055_v8  ;;  %v3482_v16 = vld [vmem:[#allocation5 + $0xc8] sm:$0xff] }
 0xd59   :  { %7721 = vmatprep.mubr.msk.f32.mxu0 %vm8044_vm2, %v8043_v61  ;;  %7724 = vmatprep.subr.mxu1 %v8043_v61  ;;  %v5152_v24 = vmul.f32 %v7950_v18, %v9059_v39 }
 0xd5a   :  { %7729 = vmatprep.subr.mxu0 %v8043_v61  ;;  %7722 = vmatmul.mubr.msk.f32.vlgmr.msra.gmra.mxu0 %vm1827_vm6, %v5153_v36 }
 0xd5b   :  { %7717 = vmatmul.mubr.msk.f32.vlgmr.msra.gmra.mxu1 %vm1827_vm6, %v5152_v24  ;;  %7730 = vmatpush3.msk.msra.mxu0 %vm1831_vm4, %v9019_v23 }
 0xd5c   :  { %v7952_v30 = vpop.eup %7951  ;;  %7725 = vmatpush3.msk.msra.mxu1 %vm1831_vm4, %v9017_v21  ;;  %7726 = vmatprep.mubr.msk.f32.mxu1 %vm8044_vm2, %v8043_v61 }
 0xd5d   :  { %7734 = vmatprep.subr.mxu1 %v8043_v61  ;;  %v5154_v29 = vmul.f32 %v7952_v30, %v9065_v3  ;;  %7731 = vmatprep.mubr.msk.f32.mxu0 %vm8044_vm2, %v8043_v61 }
 0xd5e   :  { %7739 = vmatprep.subr.mxu0 %v8043_v61 }
 0xd5f   :  { %7727 = vmatmul.mubr.msk.f32.vlgmr.msra.gmra.mxu1 %vm1827_vm6, %v5154_v29 }
 0xd60   :  { %7735 = vmatpush3.msk.msra.mxu1 %vm1831_vm4, %v9023_v56  ;;  %7736 = vmatprep.mubr.msk.f32.mxu1 %vm8044_vm2, %v8043_v61 }
 0xd61   :  { %7744 = vmatprep.subr.mxu1 %v8043_v61 }
 0xd95   :  { %v5109_v21 = vpop.xlane.xlu1 %5108 }
 0xd96   :  { %7953 = vrcp.f32 %v5109_v21 }
 0xd97   :  { %v5112_v23 = vpop.xlane.xlu0 %5111 }
 0xd98   :  { %7955 = vrcp.f32 %v5112_v23 }
 0xd99   :  { %v5115_v10 = vpop.xlane.xlu1 %5114 }
 0xd9a   :  { %7957 = vrcp.f32 %v5115_v10 }
 0xd9d   :  { %v5118_v8 = vpop.xlane.xlu0 %5117 }
 0xd9e   :  { %7959 = vrcp.f32 %v5118_v8  ;;  %v5121_v39 = vpop.xlane.xlu1 %5120 }
 0xd9f   :  { %7961 = vrcp.f32 %v5121_v39 }
 0xda2   :  { %v5124_v3 = vpop.xlane.xlu0 %5123  ;;  %v5127_v27 = vpop.xlane.xlu1 %5126 }
 0xda3   :  { %v7954_v51 = vpop.eup %7953  ;;  %7963 = vrcp.f32 %v5124_v3 }
 0xda4   :  { %7965 = vrcp.f32 %v5127_v27  ;;  %v5155_v56 = vmul.f32 %v7954_v51, %v9076_v5 }
 0xda5   :  { %v7956_v43 = vpop.eup %7955 }
 0xda6   :  { %v5130_v53 = vpop.xlane.xlu0 %5129  ;;  %7732 = vmatmul.mubr.msk.f32.vlgmr.msra.gmra.mxu0 %vm1827_vm6, %v5155_v56  ;;  %v5156_v57 = vmul.f32 %v7956_v43, %v9081_v13 }
 0xda7   :  { %v7958_v1 = vpop.eup %7957  ;;  %7967 = vrcp.f32 %v5130_v53  ;;  %7740 = vmatpush3.msk.msra.mxu0 %vm1831_vm4, %v9115_v46  ;;  %7741 = vmatprep.mubr.msk.f32.mxu0 %vm8044_vm2, %v8043_v61 }
 0xda8   :  { %7737 = vmatmul.mubr.msk.f32.vlgmr.msra.gmra.mxu1 %vm1827_vm6, %v5156_v57  ;;  %7749 = vmatprep.subr.mxu0 %v8043_v61  ;;  %v5157_v11 = vmul.f32 %v7958_v1, %v9085_v35 }
 0xda9   :  { %7745 = vmatpush3.msk.msra.mxu1 %vm1831_vm4, %v9111_v62  ;;  %7746 = vmatprep.mubr.msk.f32.mxu1 %vm8044_vm2, %v8043_v61 }
 0xdaa   :  { %7742 = vmatmul.mubr.msk.f32.vlgmr.msra.gmra.mxu0 %vm1827_vm6, %v5157_v11  ;;  %7754 = vmatprep.subr.mxu1 %v8043_v61  ;;  %v6242_v60 = vpop.permute.xlu0 %6241 }
 0xdab   :  { %v7960_v5 = vpop.eup %7959  ;;  %7750 = vmatpush3.msk.msra.mxu0 %vm1831_vm4, %v9119_v37  ;;  %7751 = vmatprep.mubr.msk.f32.mxu0 %vm8044_vm2, %v8043_v61 }
 0xdac   :  { %v7962_v7 = vpop.eup %7961  ;;  %7759 = vmatprep.subr.mxu0 %v8043_v61  ;;  %v5158_v20 = vmul.f32 %v7960_v5, %v9089_v28 }
 0xdad   :  { %v5159_v13 = vmul.f32 %v7962_v7, %v9091_v49  ;;  %v6319_v49 = vpop.permute.xlu1 %6318 }
 0xdae   :  { %7747 = vmatmul.mubr.msk.f32.vlgmr.msra.gmra.mxu1 %vm1827_vm6, %v5158_v20 }
 0xdaf   :  { %7752 = vmatmul.mubr.msk.f32.vlgmr.msra.gmra.mxu0 %vm1827_vm6, %v5159_v13  ;;  %7755 = vmatpush3.msk.msra.mxu1 %vm1831_vm4, %v9117_v19 }
 0xdb0   :  { %v7964_v58 = vpop.eup %7963  ;;  %7760 = vmatpush3.msk.msra.mxu0 %vm1831_vm4, %v6242_v60  ;;  %7756 = vmatprep.mubr.msk.f32.mxu1 %vm8044_vm2, %v8043_v61 }
 0xdb1   :  { %v7966_v35 = vpop.eup %7965  ;;  %7761 = vmatprep.mubr.msk.f32.mxu0 %vm8044_vm2, %v8043_v61  ;;  %7764 = vmatprep.subr.mxu1 %v8043_v61  ;;  %v5160_v32 = vmul.f32 %v7964_v58, %v9099_v9 }
 0xdb2   :  { %v5161_v28 = vmul.f32 %v7966_v35, %v9097_v25  ;;  %7769 = vmatprep.subr.mxu0 %v3485_v17 }
 0xdb3   :  { %7757 = vmatmul.mubr.msk.f32.vlgmr.msra.gmra.mxu1 %vm1827_vm6, %v5160_v32 }
 0xdb4   :  { %v7968_v14 = vpop.eup %7967  ;;  %7762 = vmatmul.mubr.msk.f32.vlgmr.msra.gmra.mxu0 %vm1827_vm6, %v5161_v28  ;;  %7765 = vmatpush3.msk.msra.mxu1 %vm1831_vm4, %v6319_v49 }
 0xdb5   :  { %7766 = vmatprep.mubr.msk.f32.mxu1 %vm8044_vm2, %v8043_v61  ;;  %v5162_v15 = vmul.f32 %v7968_v14, %v9105_v59  ;;  %7770 = vmatpush3.msra.mxu0 %v3485_v17  ;;  %v3487_v17 = vld [vmem:[#allocation5 + $0xf0] sm:$0xff] }
 0xdb6   :  { %7771 = vmatprep.subr.mxu0 %v3484_v50 }
 0xdb7   :  { %7767 = vmatmul.mubr.msk.f32.vlgmr.msra.gmra.mxu1 %vm1827_vm6, %v5162_v15  ;;  %7772 = vmatpush3.msra.mxu0 %v3484_v50  ;;  %v3497_v50 = vld [vmem:[#allocation5 + $0x140] sm:$0xff] }
 0xdb8   :  { %7773 = vmatprep.subr.mxu0 %v3483_v4 }
 0xdb9   :  { %7774 = vmatpush3.msra.mxu0 %v3483_v4  ;;  %v3495_v4 = vld [vmem:[#allocation5 + $0x130] sm:$0xff] }
 0xdba   :  { %7775 = vmatprep.subr.mxu0 %v3482_v16 }
 0xdbb   :  { %7776 = vmatpush3.msra.mxu0 %v3482_v16 }
 0xdbc   :  { %7791 = vmatprep.subr.mxu0 %v3497_v50 }
 0xe0e   :  { %v5236_v52 = vpop.f32.mrf.mxu0 }
 0xe10   :  { %v7693_v33 = vpop.f32.mrf.mxu0 }
 0xe12   :  { %v5390_v9 = vpop.f32.mrf.mxu0 }
 0xe13   :  { %v5313_v41 = vpop.f32.mrf.mxu1 }
 0xe14   :  { %v7703_v25 = vpop.f32.mrf.mxu0 }
 0xe15   :  { %v7698_v62 = vpop.f32.mrf.mxu1 }
 0xe16   :  { %v9219_v46 = vpop.f32.mrf.mxu0 }
 0xe17   :  { %v5467_v19 = vpop.f32.mrf.mxu1 }
 0xe18   :  { %v7713_v2 = vpop.f32.mrf.mxu0 }
 0xe19   :  { %v7708_v37 = vpop.f32.mrf.mxu1 }
 0xe1a   :  { %v9221_v26 = vpop.f32.mrf.mxu0 }
 0xe1b   :  { %v5621_v45 = vpop.f32.mrf.mxu1 }
 0xe1c   :  { %v7723_v55 = vpop.f32.mrf.mxu0 }
 0xe1d   :  { %v7718_v44 = vpop.f32.mrf.mxu1 }
 0xe1f   :  { %v5775_v48 = vpop.f32.mrf.mxu1 }
 0xe21   :  { %v7728_v59 = vpop.f32.mrf.mxu1 }
 0xe66   :  { %v5852_v47 = vpop.f32.mrf.mxu0 }
 0xe67   :  { %6403 = vrot.lane.b32.xlu0 %v5852_v47, %s8047_s25 }
 0xe68   :  { %v7733_v38 = vpop.f32.mrf.mxu0  ;;  %v5929_v31 = vpop.f32.mrf.mxu1 }
 0xe69   :  { %6405 = vrot.lane.b32.xlu1 %v5929_v31, %s8047_s25 }
 0xe6a   :  { %v7738_v0 = vpop.f32.mrf.mxu1  ;;  %v6006_v40 = vpop.f32.mrf.mxu0 }
 0xe6b   :  { %6407 = vrot.lane.b32.xlu0 %v6006_v40, %s8047_s25  ;;  %v3488_v40 = vld [vmem:[#allocation5 + $0xf8] sm:$0xff] }
 0xe6c   :  { %v7743_v42 = vpop.f32.mrf.mxu0 }
 0xe6d   :  { %v3486_v42 = vld [vmem:[#allocation5 + $0xe8] sm:$0xff] }
 0xe6e   :  { %v6083_v6 = vpop.f32.mrf.mxu1 }
 0xe6f   :  { %v6160_v34 = vpop.f32.mrf.mxu0  ;;  %6409 = vrot.lane.b32.xlu1 %v6083_v6, %s8047_s25  ;;  %v3496_v6 = vld [vmem:[#allocation5 + $0x138] sm:$0xff] }
 0xe70   :  { %6411 = vrot.lane.b32.xlu0 %v6160_v34, %s8047_s25  ;;  %v7748_v22 = vpop.f32.mrf.mxu1  ;;  %v3494_v34 = vld [vmem:[#allocation5 + $0x128] sm:$0xff] }
 0xe71   :  { %v7753_v18 = vpop.f32.mrf.mxu0 }
 0xe73   :  { %v6237_v36 = vpop.f32.mrf.mxu1 }
 0xe74   :  { %v6314_v24 = vpop.f32.mrf.mxu0  ;;  %6413 = vrot.lane.b32.xlu1 %v6237_v36, %s8047_s25 }
 0xe75   :  { %6415 = vrot.lane.b32.xlu0 %v6314_v24, %s8047_s25  ;;  %v7758_v30 = vpop.f32.mrf.mxu1 }
 0xe76   :  { %v7763_v29 = vpop.f32.mrf.mxu0 }
 0xe77   :  { %v6391_v21 = vpop.f32.mrf.mxu1 }
 0xe78   :  { %6417 = vrot.lane.b32.xlu1 %v6391_v21, %s8047_s25  ;;  %v7185_v21 = vld [vmem:[#allocation5 + $0x14a] ss:$0 sm:$0xff] }
 0xe79   :  { %v7768_v23 = vpop.f32.mrf.mxu1 }
 0xed9   :  { %v6404_v10 = vpop.permute.xlu0 %6403 }
 0xeda   :  { %v6427_v27 = vsel %vm312_vm3, %v5236_v52, %v6404_v10  ;;  %v7186_v10 = vld [vmem:[#allocation5 + $0x14b] ss:$0 sm:$0xff] }
 0xedb   :  { %v6406_v8 = vpop.permute.xlu1 %6405 }
 0xedc   :  { %v6428_v3 = vsel %vm312_vm3, %v5313_v41, %v6406_v8 }
 0xedd   :  { %v6408_v39 = vpop.permute.xlu0 %6407  ;;  %v6447_v51 = vcombine.low %v6427_v27, %v6428_v3 }
 0xede   :  { %v6429_v43 = vsel %vm312_vm3, %v5390_v9, %v6408_v39  ;;  %v7182_v9 = vld [vmem:[#allocation5 + $0x149] ss:$0 sm:$0xff] }
 0xedf   :  { %v6455_v11 = vrot.slane %v6447_v51, %v8103_v54 }
 0xee1   :  { %v6410_v56 = vpop.permute.xlu1 %6409 }
 0xee2   :  { %v6412_v53 = vpop.permute.xlu0 %6411  ;;  %v6430_v57 = vsel %vm312_vm3, %v5467_v19, %v6410_v56 }
 0xee3   :  { %v6448_v1 = vcombine.low %v6429_v43, %v6430_v57  ;;  %v6431_v58 = vsel %vm312_vm3, %v9219_v46, %v6412_v53  ;;  %v3493_v43 = vld [vmem:[#allocation5 + $0x120] sm:$0xff]  ;;  %v3492_v53 = vld [vmem:[#allocation5 + $0x118] sm:$0xff]  ;;  %v3491_v57 = vld [vmem:[#allocation5 + $0x110] sm:$0xff] }
 0xee5   :  { %v6462_v5 = vrot.slane %v6448_v1, %v8103_v54  ;;  %v3490_v1 = vld [vmem:[#allocation5 + $0x108] sm:$0xff] }
 0xee6   :  { %v6414_v7 = vpop.permute.xlu1 %6413 }
 0xee7   :  { %v6463_v20 = vcombine.low %v6455_v11, %v6462_v5  ;;  %v6432_v13 = vsel %vm312_vm3, %v5621_v45, %v6414_v7  ;;  %v6416_v60 = vpop.permute.xlu0 %6415  ;;  %v7187_v11 = vld [vmem:[#allocation5 + $0x14c] ss:$0 sm:$0xff] }
 0xee8   :  { %v6464_v35 = vcombine.low %v6431_v58, %v6432_v13  ;;  %v6433_v28 = vsel %vm312_vm3, %v9221_v26, %v6416_v60 }
 0xee9   :  { %7777 = vmatprep.mubr.msk.f32.mxu0 %vm169_vm1, %v6463_v20 }
 0xeea   :  { %v6418_v32 = vpop.permute.xlu1 %6417  ;;  %v6472_v15 = vrot.slane %v6464_v35, %v8103_v54  ;;  %v7190_v35 = vld [vmem:[#allocation5 + $0x14d] ss:$0 sm:$0xff] }
 0xeeb   :  { %v6434_v49 = vsel %vm312_vm3, %v5775_v48, %v6418_v32 }
 0xeec   :  { %v6465_v14 = vcombine.low %v6433_v28, %v6434_v49 }
 0xeee   :  { %v6479_v52 = vrot.slane %v6465_v14, %v8103_v54 }
 0xef0   :  { %v6480_v33 = vcombine.low %v6472_v15, %v6479_v52 }
 0xef2   :  { %7778 = vmatmul.mubr.msk.f32.vlgmr.msra.gmra.mxu0 %vm169_vm1, %v6480_v33 }
 0xef3   :  { %7792 = vmatpush3.msra.mxu0 %v3497_v50 }
 0xef4   :  { %7793 = vmatprep.subr.mxu0 %v3496_v6 }
 0xef5   :  { %7794 = vmatpush3.msra.mxu0 %v3496_v6 }
 0xef6   :  { %7795 = vmatprep.subr.mxu0 %v3495_v4 }
 0xef7   :  { %7796 = vmatpush3.msra.mxu0 %v3495_v4 }
 0xef8   :  { %7797 = vmatprep.subr.mxu0 %v3494_v34 }
 0xef9   :  { %7798 = vmatpush3.msra.mxu0 %v3494_v34 }
 0xefa   :  { %7799 = vmatprep.subr.mxu0 %v3493_v43 }
 0xefb   :  { %7800 = vmatpush3.msra.mxu0 %v3493_v43 }
 0xefc   :  { %7801 = vmatprep.subr.mxu0 %v3492_v53 }
 0xefd   :  { %7802 = vmatpush3.msra.mxu0 %v3492_v53 }
 0xefe   :  { %7803 = vmatprep.subr.mxu0 %v3491_v57 }
 0xeff   :  { %7804 = vmatpush3.msra.mxu0 %v3491_v57 }
 0xf00   :  { %7805 = vmatprep.subr.mxu0 %v3490_v1 }
 0xf01   :  { %7806 = vmatpush3.msra.mxu0 %v3490_v1 }
 0xfb2   :  { %v7779_v41 = vpop.f32.mrf.mxu0 }
 0xfb3   :  { %v6557_v25 = vadd.f32 %v7779_v41, %v7182_v9 }
 0xfb4   :  { %v6551_v62 = vpop.f32.mrf.mxu0 }
 0xfb5   :  { %v6561_v46 = vadd.f32 %v6557_v25, %v8684_v63  ;;  %v6552_v19 = vadd.f32 %v7182_v9, %v6551_v62 }
 0xfb7   :  { %v6560_v2 = vadd.f32 %v6552_v19, %v8682_v12  ;;  %v6565_v37 = vsel %vm169_vm1, %v6561_v46, 0.0  ;;  %v3489_v12 = vld [vmem:[#allocation5 + $0x100] sm:$0xff] }
 0xfb8   :  { %6566 = vadd.xlane.f32.xlu1 %v6565_v37  ;;  %7780 = vmatprep.subr.mxu1 %v3489_v12 }
 0xfb9   :  { %v6562_v26 = vsel %vm169_vm1, %v6560_v2, 0.0  ;;  %7781 = vmatpush3.msra.mxu1 %v3489_v12 }
 0xfba   :  { %6563 = vadd.xlane.f32.xlu0 %v6562_v26  ;;  %7782 = vmatprep.subr.mxu1 %v3488_v40 }
 0xfbb   :  { %7783 = vmatpush3.msra.mxu1 %v3488_v40 }
 0xfbc   :  { %7784 = vmatprep.subr.mxu1 %v3487_v17 }
 0xfbd   :  { %7785 = vmatpush3.msra.mxu1 %v3487_v17 }
 0xfbe   :  { %7786 = vmatprep.subr.mxu1 %v3486_v42 }
 0xfbf   :  { %7787 = vmatpush3.msra.mxu1 %v3486_v42  ;;  %v7193_v42 = vld [vmem:[#allocation5 + $0x14e] ss:$0 sm:$0xff] }
 0xfc0   :  { %7810 = vmatprep.subr.mxu1 %v8043_v61 }
0x1041   :  { %v6567_v45 = vpop.xlane.xlu1 %6566 }
0x1042   :  { %v6569_v55 = vmul.f32 0.03125, %v6567_v45 }
0x1043   :  { %v6564_v44 = vpop.xlane.xlu0 %6563 }
0x1044   :  { %v6568_v48 = vmul.f32 0.03125, %v6564_v44  ;;  %v6571_v59 = vsub.f32 %v6561_v46, %v6569_v55  ;;  %v6815_v44 = vld [vmem:[#allocation5 + $0x168] sm:$0xff] }
0x1046   :  { %v6570_v47 = vsub.f32 %v6560_v2, %v6568_v48  ;;  %v6573_v0 = vmul.f32 %v6571_v59, %v6571_v59  ;;  %v6814_v48 = vld [vmem:[#allocation5 + $0x160] sm:$0xff] }
0x1048   :  { %v6572_v38 = vmul.f32 %v6570_v47, %v6570_v47  ;;  %v6577_v63 = vsel %vm169_vm1, %v6573_v0, 0.0 }
0x104a   :  { %v6574_v31 = vsel %vm169_vm1, %v6572_v38, 0.0 }
0x104b   :  { %6575 = vadd.xlane.f32.xlu0 %v6574_v31 }
0x104f   :  { %6578 = vadd.xlane.f32.xlu0 %v6577_v63 }
0x10d4   :  { %v6576_v22 = vpop.xlane.xlu0 %6575 }
0x10d5   :  { %v6580_v16 = vmul.f32 0.03125, %v6576_v22  ;;  %v7194_v22 = vld [vmem:[#allocation5 + $0x14f] ss:$0 sm:$0xff] }
0x10d7   :  { %v6582_v18 = vadd.f32 1e-05, %v6580_v16 }
0x10d8   :  { %v6579_v36 = vpop.xlane.xlu0 %6578 }
0x10d9   :  { %7969 = vrsqrt.f32 %v6582_v18  ;;  %v6581_v24 = vmul.f32 0.03125, %v6579_v36 }
0x10db   :  { %v6583_v30 = vadd.f32 1e-05, %v6581_v24 }
0x10dd   :  { %7971 = vrsqrt.f32 %v6583_v30 }
0x10e6   :  { %v7970_v29 = vpop.eup %7969 }
0x10e7   :  { %v6586_v23 = vmul.f32 %v7970_v29, %v6570_v47  ;;  %v6812_v47 = vld [vmem:[#allocation5 + $0x150] sm:$0xff] }
0x10e9   :  { %v6592_v8 = vmul.f32 %v7185_v21, %v6586_v23 }
0x10ea   :  { %v7972_v39 = vpop.eup %7971 }
0x10eb   :  { %v6587_v3 = vmul.f32 %v7972_v39, %v6571_v59  ;;  %v6598_v27 = vadd.f32 %v7186_v10, %v6592_v8  ;;  %v6813_v59 = vld [vmem:[#allocation5 + $0x158] sm:$0xff] }
0x10ed   :  { %v6593_v51 = vmul.f32 %v7185_v21, %v6587_v3  ;;  %7788 = vmatprep.mubr.msk.f32.mxu1 %vm169_vm1, %v6598_v27 }
0x10ef   :  { %v6599_v56 = vadd.f32 %v7186_v10, %v6593_v51 }
0x10f1   :  { %7789 = vmatmul.mubr.msk.f32.vlgmr.msra.gmra.mxu1 %vm169_vm1, %v6599_v56 }
0x10f2   :  { %7818 = vmatprep.mubr.msk.f32.mxu1 %vm8044_vm2, %v8043_v61  ;;  %7811 = vmatpush3.msra.mxu1 %v6815_v44 }
0x10f3   :  { %7812 = vmatprep.subr.mxu1 %v8043_v61 }
0x10f4   :  { %7813 = vmatpush3.msra.mxu1 %v6814_v48 }
0x10f5   :  { %7814 = vmatprep.subr.mxu1 %v8043_v61 }
0x10f6   :  { %7815 = vmatpush3.msra.mxu1 %v6813_v59 }
0x10f7   :  { %7816 = vmatprep.subr.mxu1 %v8043_v61 }
0x10f8   :  { %7817 = vmatpush3.msra.mxu1 %v6812_v47 }
0x11b1   :  { %v7790_v5 = vpop.f32.mrf.mxu1 }
0x11b2   :  { %v6682_v7 = vadd.f32 %v7790_v5, %v7187_v11 }
0x11b3   :  { %v6676_v20 = vpop.f32.mrf.mxu1 }
0x11b4   :  { %v6677_v13 = vadd.f32 %v7187_v11, %v6676_v20  ;;  %v6686_v58 = vmax.f32 %v6682_v7, 0.0 }
0x11b6   :  { %v6685_v60 = vmax.f32 %v6677_v13, 0.0 }
0x11b8   :  { %7807 = vmatprep.mubr.msk.f32.mxu0 %vm3356_vm7, %v6685_v60 }
0x11b9   :  { %7808 = vmatmul.mubr.msk.f32.vlgmr.msra.gmra.mxu0 %vm3356_vm7, %v6686_v58 }
0x1279   :  { %v7809_v32 = vpop.f32.mrf.mxu0 }
0x127a   :  { %v6769_v28 = vadd.f32 %v7809_v32, %v7190_v35 }
0x127b   :  { %v6763_v49 = vpop.f32.mrf.mxu0 }
0x127c   :  { %v6773_v14 = vadd.f32 %v6769_v28, %v6599_v56  ;;  %v6764_v15 = vadd.f32 %v7190_v35, %v6763_v49 }
0x127e   :  { %v6772_v52 = vadd.f32 %v6764_v15, %v6598_v27  ;;  %v6777_v33 = vsel %vm169_vm1, %v6773_v14, 0.0 }
0x127f   :  { %6778 = vadd.xlane.f32.xlu0 %v6777_v33 }
0x1280   :  { %v6774_v9 = vsel %vm169_vm1, %v6772_v52, 0.0 }
0x1281   :  { %6775 = vadd.xlane.f32.xlu1 %v6774_v9 }
0x1308   :  { %v6779_v41 = vpop.xlane.xlu0 %6778 }
0x1309   :  { %v6781_v25 = vmul.f32 0.03125, %v6779_v41 }
0x130a   :  { %v6776_v62 = vpop.xlane.xlu1 %6775 }
0x130b   :  { %v6783_v46 = vsub.f32 %v6773_v14, %v6781_v25  ;;  %v6780_v19 = vmul.f32 0.03125, %v6776_v62 }
0x130d   :  { %v6782_v2 = vsub.f32 %v6772_v52, %v6780_v19  ;;  %v6785_v37 = vmul.f32 %v6783_v46, %v6783_v46 }
0x130f   :  { %v6789_v26 = vsel %vm169_vm1, %v6785_v37, 0.0  ;;  %v6784_v45 = vmul.f32 %v6782_v2, %v6782_v2 }
0x1310   :  { %6790 = vadd.xlane.f32.xlu0 %v6789_v26 }
0x1311   :  { %v6786_v55 = vsel %vm169_vm1, %v6784_v45, 0.0 }
0x1312   :  { %6787 = vadd.xlane.f32.xlu1 %v6786_v55 }
0x1399   :  { %v6791_v38 = vpop.xlane.xlu0 %6790 }
0x139a   :  { %v6793_v31 = vmul.f32 0.03125, %v6791_v38 }
0x139b   :  { %v6788_v0 = vpop.xlane.xlu1 %6787 }
0x139c   :  { %v6795_v63 = vadd.f32 1e-05, %v6793_v31  ;;  %v6792_v12 = vmul.f32 0.03125, %v6788_v0 }
0x139e   :  { %7973 = vrsqrt.f32 %v6795_v63  ;;  %v6794_v40 = vadd.f32 1e-05, %v6792_v12 }
0x13a0   :  { %7975 = vrsqrt.f32 %v6794_v40 }
0x13ab   :  { %v7974_v17 = vpop.eup %7973 }
0x13ac   :  { %v6799_v50 = vmul.f32 %v7974_v17, %v6783_v46 }
0x13ad   :  { %v7976_v6 = vpop.eup %7975 }
0x13ae   :  { %v6798_v4 = vmul.f32 %v7976_v6, %v6782_v2  ;;  %v6805_v34 = vmul.f32 %v7193_v42, %v6799_v50 }
0x13b0   :  { %v6804_v16 = vmul.f32 %v7193_v42, %v6798_v4  ;;  %v6811_v36 = vadd.f32 %v7194_v22, %v6805_v34 }
0x13b2   :  { %v6810_v18 = vadd.f32 %v7194_v22, %v6804_v16  ;;  %v6843_v21 = vrot.slane %v6811_v36, %v8103_v54  ;;  %v6836_v39 = vcombine.high %v6811_v36, %v6811_v36 }
0x13b4   :  { %v6819_v61 = vcombine.high %v6810_v18, %v6810_v18  ;;  %v6826_v24 = vrot.slane %v6810_v18, %v8103_v54  ;;  %v6850_v56 = vrot.slane %v6836_v39, %v8103_v54  ;;  %v6851_v43 = vcombine.high %v6843_v21, %v6843_v21 }
0x13b5   :  { %v6869_v1 = vsel %vm6861_vm8, %v6843_v21, 0.0 }
0x13b6   :  { %v6833_v30 = vrot.slane %v6819_v61, %v8103_v54  ;;  %v6834_v29 = vcombine.high %v6826_v24, %v6826_v24  ;;  %v6862_v23 = vsel %vm6861_vm8, %v6826_v24, 0.0  ;;  %v6852_v5 = vcombine.high %v6850_v56, %v6850_v56  ;;  %v7195_v54 = vld [vmem:[#allocation5 + $0x170] ss:$0 sm:$0xff] }
0x13b7   :  { %v6871_v7 = vsel %vm6861_vm8, %v6851_v43, 0.0  ;;  %v6873_v13 = vsel %vm6861_vm8, %v6850_v56, 0.0 }
0x13b8   :  { %v6863_v10 = vsel %vm6861_vm8, %v6834_v29, 0.0  ;;  %v6835_v8 = vcombine.high %v6833_v30, %v6833_v30  ;;  %v6865_v27 = vsel %vm6861_vm8, %v6833_v30, 0.0  ;;  %v6875_v58 = vsel %vm6861_vm8, %v6852_v5, 0.0 }
0x13b9   :  { %v6864_v3 = vadd.f32 %v6863_v10, %v6862_v23 }
0x13ba   :  { %v6867_v53 = vsel %vm6861_vm8, %v6835_v8, 0.0 }
0x13bb   :  { %v6866_v51 = vadd.f32 %v6865_v27, %v6864_v3 }
0x13bd   :  { %v6868_v57 = vadd.f32 %v6867_v53, %v6866_v51 }
0x13bf   :  { %v6870_v11 = vadd.f32 %v6869_v1, %v6868_v57 }
0x13c1   :  { %v6872_v20 = vadd.f32 %v6871_v7, %v6870_v11 }
0x13c3   :  { %v6874_v60 = vadd.f32 %v6873_v13, %v6872_v20 }
0x13c5   :  { %v6876_v35 = vadd.f32 %v6875_v58, %v6874_v60 }
0x13c7   :  { %v6878_v32 = vmul.f32 0.125, %v6876_v35 }
0x13c9   :  { %7819 = vmatmul.mubr.msk.f32.vlgmr.msra.gmra.mxu1 %vm169_vm1, %v6878_v32 }
0x1489   :  { %v6952_v28 = vpop.f32.mrf.mxu1 }
0x148a   :  { %v6953_v49 = vadd.f32 %v7195_v54, %v6952_v28 }
0x148b   :  { %v7820_v14 = vpop.f32.mrf.mxu1 }
0x148c   :  { %6956 = vst [vmem:[#allocation8] sm:$0x3] %v6953_v49 }
0x148d   :  { %8022 = shalt.err (!%p8019_p0)
}
0x148e   :  { %6966 = dma.vmem_to_hbm [thread:$0]  %s6964_s27, 32, %s9285_s2, [#allocation7]  }
0x148f   :  { %8035 = dma.done.wait [#allocation7], 32  }
0x1490   :  { %8036 = vsyncadd [#allocation7], 4294967264 }
0x1491   :  { %6970 = vsyncpa [#allocation6], 1 }
0x1492   :  { %6971 = vsyncpa [#allocation7], 1 }

</bundles_post_ra>
